<compile_context>
chip_gen: v7x
topology: tpu7x:2x2x1
jax: 0.10.0
libtpu: 0.0.40
codegen_flags: <defaults>
</compile_context>

<pallas_src>
import math
import jax
import jax.numpy as jnp
from jax.experimental import pallas as pl
from jax.experimental.pallas import tpu as pltpu

D_MODEL = 128
N_HEADS = 8
D_K = D_MODEL // N_HEADS
LN_EPS = 1e-5

_ROWS_TARGET = 256   # target MXU rows (Bt*A) per grid step (>=256 fills v6e/v7x MXU)
_BT_CAP = 64         # hard cap on the batch tile


def _make_kernel(return_attn):
    def kernel(x_ref, mask_ref, wqkv_ref, bqkv_ref, wo_ref, bo_ref,
               gamma_ref, beta_ref, *rest):
        # x_ref: (Bt, A, D); mask_ref: (Bt, A, A); wqkv: (D, 3D) [bf16 or f32]
        # bqkv: (1, 3D) f32; wo: (D, D) [bf16 or f32]; bo/gamma/beta: (1, D) f32
        # out_ref: (Bt, A, D) f32; attn_ref: (Bt, A, H*A) f32 (lane-dense slab)
        # ctx_scr: (Bt, A, D) f32 VMEM scratch
        if return_attn:
            out_ref, attn_ref, ctx_scr = rest
        else:
            out_ref, ctx_scr = rest
            attn_ref = None

        Bt, A, D = x_ref.shape
        x2d = x_ref[...].reshape(Bt * A, D)                        # (Bt*A, D) f32

        # Fused QKV projection: one (Bt*A, D) x (D, 3D) MXU push.
        # bf16 inputs (if wrapper cast the weights) with f32 accumulation.
        x_mm = x2d.astype(wqkv_ref.dtype)
        qkv = jnp.dot(x_mm, wqkv_ref[...],
                      preferred_element_type=jnp.float32) + bqkv_ref[0]   # (Bt*A, 3D) f32

        # Additive mask bias, hoisted out of the head loop.  |score/4| << ULP(1e9),
        # so adding -1e9 is bit-identical to masked_fill(-1e9); fully masked rows
        # therefore give a uniform (non-NaN) attention row, like the reference.
        neg_bias = jnp.where(mask_ref[...] == 0.0,
                             jnp.float32(-1e9), jnp.float32(0.0))          # (Bt, A, A)

        scale = jnp.float32(1.0 / math.sqrt(D_K))
        for h in range(N_HEADS):              # static unroll; each op batched over Bt
            qh = qkv[:, h * D_K:(h + 1) * D_K].reshape(Bt, A, D_K)
            kh = qkv[:, D + h * D_K:D + (h + 1) * D_K].reshape(Bt, A, D_K)
            vh = qkv[:, 2 * D + h * D_K:2 * D + (h + 1) * D_K].reshape(Bt, A, D_K)

            # Contract last dims of both operands (no explicit kh.T); f32 path.
            s = jnp.einsum('bqd,bkd->bqk', qh, kh,
                           preferred_element_type=jnp.float32) * scale + neg_bias
            m = jnp.max(s, axis=-1, keepdims=True)
            e = jnp.exp(s - m)
            p = e / jnp.sum(e, axis=-1, keepdims=True)              # (Bt, A, A)

            if attn_ref is not None:
                # Write this head's weights straight into the lane-dense slab.
                attn_ref[:, :, h * A:(h + 1) * A] = p
            # Write this head's context straight into the VMEM scratch slab.
            ctx_scr[:, :, h * D_K:(h + 1) * D_K] = jnp.einsum(
                'bqk,bkd->bqd', p, vh, preferred_element_type=jnp.float32)

        context = ctx_scr[...].reshape(Bt * A, D).astype(wo_ref.dtype)
        o = jnp.dot(context, wo_ref[...],
                    preferred_element_type=jnp.float32) + bo_ref[0]

        # Residual + LayerNorm (f32 throughout).
        r = o + x2d
        mean = jnp.mean(r, axis=-1, keepdims=True)
        var = jnp.mean((r - mean) ** 2, axis=-1, keepdims=True)
        y = (r - mean) * jax.lax.rsqrt(var + LN_EPS) * gamma_ref[0] + beta_ref[0]

        out_ref[...] = y.reshape(Bt, A, D)

    return kernel


def _choose_batch_tile(B, A):
    """Pick (Bt, padded_B).

    Targets Bt*A >= _ROWS_TARGET MXU rows per grid step (the previous <=64-row
    tiles left the MXU <25% filled and paid ~0.35us pipeline overhead per tiny
    step).  If B doesn't divide, tiles are balanced and B is padded up by at
    most Bt-1 rows, so prime/odd batch sizes no longer collapse to Bt=1.
    """
    bt_max = max(1, min(_BT_CAP, _ROWS_TARGET // max(A, 1)))
    if B <= bt_max:
        return B, B                       # one fat step (fine on 1-TC parts)
    n_steps = -(-B // bt_max)             # ceil
    bt = -(-B // n_steps)                 # balanced tile -> minimal padding
    return bt, n_steps * bt


def mha_coordination(agent_states, mask, params, *,
                     return_attn=True, use_bf16_matmul=True):
    """agent_states: (B, A, D) f32; mask: (B, A, A) f32 (0/1).

    Returns (output, attn) with attn shaped (B, H, A, A), or (output, None)
    when return_attn=False.
    """
    B, A, D = agent_states.shape
    assert D == D_MODEL
    Bt, Bpad = _choose_batch_tile(B, A)

    if Bpad != B:
        pad = Bpad - B
        x_p = jnp.pad(agent_states, ((0, pad), (0, 0), (0, 0)))
        mask_p = jnp.pad(mask, ((0, pad), (0, 0), (0, 0)))
    else:
        x_p, mask_p = agent_states, mask

    # Fused QKV weights/biases (stored pre-transposed: y = x @ W + b).
    # Weights go to bf16 for the MXU (halves the weight DMA too); biases stay f32.
    w_dtype = jnp.bfloat16 if use_bf16_matmul else jnp.float32
    w_qkv = jnp.concatenate(
        [params["wq"], params["wk"], params["wv"]], axis=1).astype(w_dtype)   # (D, 3D)
    b_qkv = jnp.concatenate(
        [params["bq"], params["bk"], params["bv"]], axis=1)                   # (1, 3D)
    w_o = params["wo"].astype(w_dtype)

    const2d = lambda b: (0, 0)
    batch3 = lambda b: (b, 0, 0)

    in_specs = [
        pl.BlockSpec((Bt, A, D), batch3),            # x
        pl.BlockSpec((Bt, A, A), batch3),            # mask
        pl.BlockSpec((D, 3 * D), const2d),           # fused Wqkv
        pl.BlockSpec((1, 3 * D), const2d),           # fused bqkv
        pl.BlockSpec((D, D), const2d),               # Wo
        pl.BlockSpec((1, D), const2d),               # bo
        pl.BlockSpec((1, D), const2d),               # gamma
        pl.BlockSpec((1, D), const2d),               # beta
    ]
    out_specs = [pl.BlockSpec((Bt, A, D), batch3)]
    out_shape = [jax.ShapeDtypeStruct((Bpad, A, D), jnp.float32)]
    if return_attn:
        out_specs.append(pl.BlockSpec((Bt, A, N_HEADS * A), batch3))
        out_shape.append(jax.ShapeDtypeStruct((Bpad, A, N_HEADS * A), jnp.float32))

    results = pl.pallas_call(
        _make_kernel(return_attn),
        out_shape=out_shape,
        grid_spec=pltpu.PrefetchScalarGridSpec(
            num_scalar_prefetch=0,
            grid=(Bpad // Bt,),
            in_specs=in_specs,
            out_specs=out_specs,
            scratch_shapes=[pltpu.VMEM((Bt, A, D), jnp.float32)],   # per-head context slab
        ),
        compiler_params=pltpu.CompilerParams(
            dimension_semantics=("parallel",)),   # batch axis shards across v7x cores
    )(x_p, mask_p, w_qkv, b_qkv, w_o, params["bo"], params["gamma"], params["beta"])

    out = results[0][:B]
    if not return_attn:
        return out, None
    # Rearrange the lane-dense attn slab back to the module's (B, H, A, A).
    attn = results[1][:B].reshape(B, A, N_HEADS, A).transpose(0, 2, 1, 3)
    return out, attn


def init_params(key, d_model=D_MODEL):
    # Deterministic init mimicking nn.Linear default: U(-1/sqrt(in), 1/sqrt(in)).
    bound = 1.0 / math.sqrt(d_model)
    keys = jax.random.split(key, 8)
    u = lambda k, shape: jax.random.uniform(k, shape, jnp.float32, -bound, bound)
    # Weights stored pre-transposed: y = x @ W + b
    return {
        "wq": u(keys[0], (d_model, d_model)), "bq": u(keys[1], (1, d_model)),
        "wk": u(keys[2], (d_model, d_model)), "bk": u(keys[3], (1, d_model)),
        "wv": u(keys[4], (d_model, d_model)), "bv": u(keys[5], (1, d_model)),
        "wo": u(keys[6], (d_model, d_model)), "bo": u(keys[7], (1, d_model)),
        "gamma": jnp.ones((1, d_model), jnp.float32),
        "beta": jnp.zeros((1, d_model), jnp.float32),
    }


def reference(agent_states, mask, params, *, bf16_projections=False):
    """Pure-JAX reference mirroring the PyTorch forward (eval mode).

    With bf16_projections=True the four Linear matmul inputs are rounded to
    bf16 (f32 accumulation), mirroring the kernel's mixed precision exactly.
    """
    def rnd(t):
        return t.astype(jnp.bfloat16).astype(jnp.float32) if bf16_projections else t

    with jax.default_matmul_precision("highest"):
        B, A, D = agent_states.shape
        x = agent_states
        q = rnd(x) @ rnd(params["wq"]) + params["bq"][0]
        k = rnd(x) @ rnd(params["wk"]) + params["bk"][0]
        v = rnd(x) @ rnd(params["wv"]) + params["bv"][0]
        q = q.reshape(B, A, N_HEADS, D_K).transpose(0, 2, 1, 3)
        k = k.reshape(B, A, N_HEADS, D_K).transpose(0, 2, 1, 3)
        v = v.reshape(B, A, N_HEADS, D_K).transpose(0, 2, 1, 3)
        scores = jnp.einsum("bhqd,bhkd->bhqk", q, k) / math.sqrt(D_K)
        scores = jnp.where(mask[:, None, :, :] == 0.0, -1e9, scores)
        attn = jax.nn.softmax(scores, axis=-1)
        ctx = jnp.einsum("bhqk,bhkd->bhqd", attn, v)
        ctx = ctx.transpose(0, 2, 1, 3).reshape(B, A, D)
        o = rnd(ctx) @ rnd(params["wo"]) + params["bo"][0]
        r = o + x
        mean = jnp.mean(r, axis=-1, keepdims=True)
        var = jnp.mean((r - mean) ** 2, axis=-1, keepdims=True)
        out = (r - mean) / jnp.sqrt(var + LN_EPS) * params["gamma"][0] + params["beta"][0]
    return out, attn


if __name__ == "__main__":
    key = jax.random.PRNGKey(0)
    k_x, k_m, k_p = jax.random.split(key, 3)
    params = init_params(k_p)

    mha_fn = jax.jit(mha_coordination,
                     static_argnames=("return_attn", "use_bf16_matmul"))

    # Config 1 exercises the single-fat-step path; config 2 exercises batch
    # tiling (multiple grid steps) plus batch padding (70 -> 72, Bt=24).
    for B, A in ((4, 8), (70, 8)):
        kx = jax.random.fold_in(k_x, B)
        km = jax.random.fold_in(k_m, B)
        agent_states = jax.random.normal(kx, (B, A, D_MODEL), jnp.float32)
        # Random 0/1 mask; keep the diagonal unmasked so every real row has >=1 key.
        mask = (jax.random.uniform(km, (B, A, A)) > 0.3).astype(jnp.float32)
        mask = jnp.maximum(mask, jnp.eye(A, dtype=jnp.float32)[None])

        out, attn = mha_fn(agent_states, mask, params)
        out, attn = jax.block_until_ready((out, attn))

        # Strict check vs a reference with matched mixed precision (bf16 matmul
        # inputs, f32 accumulation).  Tolerance accounts for bf16 re-rounding of
        # the context activations at rounding boundaries + summation order.
        ref_out_mp, ref_attn_mp = reference(agent_states, mask, params,
                                            bf16_projections=True)
        assert jnp.allclose(out, ref_out_mp, atol=2e-3, rtol=1e-3), f"out mismatch (B={B})"
        assert jnp.allclose(attn, ref_attn_mp, atol=3e-5, rtol=1e-4), f"attn mismatch (B={B})"

        # Sanity check vs the pure-f32 reference (bounds the bf16 projection error).
        ref_out, ref_attn = reference(agent_states, mask, params,
                                      bf16_projections=False)
        assert jnp.allclose(out, ref_out, atol=3e-2, rtol=3e-2), f"out f32 sanity (B={B})"
        assert jnp.allclose(attn, ref_attn, atol=1e-2), f"attn f32 sanity (B={B})"

        # Variant without the attention writeback.
        out2, attn2 = mha_fn(agent_states, mask, params, return_attn=False)
        out2 = jax.block_until_ready(out2)
        assert attn2 is None
        assert jnp.allclose(out2, ref_out_mp, atol=2e-3, rtol=1e-3), f"no-attn out mismatch (B={B})"

    print("KERNEL_OK")
</pallas_src>

<mosaic_0001>
module attributes {stable_mosaic.version = 11 : i64} {
  func.func @kernel(%arg0: i32, %arg1: memref<4x8x128xf32, #tpu.memory_space<vmem>>, %arg2: memref<4x8x8xf32, #tpu.memory_space<vmem>>, %arg3: memref<128x384xbf16, #tpu.memory_space<vmem>>, %arg4: memref<1x384xf32, #tpu.memory_space<vmem>>, %arg5: memref<128x128xbf16, #tpu.memory_space<vmem>>, %arg6: memref<1x128xf32, #tpu.memory_space<vmem>>, %arg7: memref<1x128xf32, #tpu.memory_space<vmem>>, %arg8: memref<1x128xf32, #tpu.memory_space<vmem>>, %arg9: memref<4x8x128xf32, #tpu.memory_space<vmem>>, %arg10: memref<4x8x64xf32, #tpu.memory_space<vmem>>, %arg11: memref<4x8x128xf32, #tpu.memory_space<vmem>>) attributes {dimension_semantics = [#tpu.dimension_semantics<parallel>], iteration_bounds = array<i64: 1>, scalar_prefetch = 0 : i64, scratch_operands = 1 : i64, tpu.core_type = #tpu.core_type<tc>, window_params = [{transform_indices = @transform_0, window_bounds = array<i64: 4, 8, 128>}, {transform_indices = @transform_1, window_bounds = array<i64: 4, 8, 8>}, {pipeline_mode = #tpu.pipeline_mode<synchronous>, transform_indices = @transform_2, window_bounds = array<i64: 128, 384>}, {pipeline_mode = #tpu.pipeline_mode<synchronous>, transform_indices = @transform_3, window_bounds = array<i64: 1, 384>}, {pipeline_mode = #tpu.pipeline_mode<synchronous>, transform_indices = @transform_4, window_bounds = array<i64: 128, 128>}, {pipeline_mode = #tpu.pipeline_mode<synchronous>, transform_indices = @transform_5, window_bounds = array<i64: 1, 128>}, {pipeline_mode = #tpu.pipeline_mode<synchronous>, transform_indices = @transform_6, window_bounds = array<i64: 1, 128>}, {pipeline_mode = #tpu.pipeline_mode<synchronous>, transform_indices = @transform_7, window_bounds = array<i64: 1, 128>}, {transform_indices = @transform_8, window_bounds = array<i64: 4, 8, 128>}, {transform_indices = @transform_9, window_bounds = array<i64: 4, 8, 64>}]} {
    %c0 = arith.constant 0 : index
    %c0_0 = arith.constant 0 : index
    %c0_1 = arith.constant 0 : index
    %0 = vector.load %arg1[%c0, %c0_0, %c0_1] : memref<4x8x128xf32, #tpu.memory_space<vmem>>, vector<4x8x128xf32>
    %1 = vector.shape_cast %0 : vector<4x8x128xf32> to vector<32x128xf32>
    %2 = arith.truncf %1 : vector<32x128xf32> to vector<32x128xbf16>
    %c0_2 = arith.constant 0 : index
    %c0_3 = arith.constant 0 : index
    %3 = vector.load %arg3[%c0_2, %c0_3] : memref<128x384xbf16, #tpu.memory_space<vmem>>, vector<128x384xbf16>
    %cst = arith.constant dense<0.000000e+00> : vector<32x384xf32>
    %4 = tpu.matmul %2, %3, %cst {dimension_numbers = #tpu.dot_dimension_numbers<[1], [0], [0], [1], [0, 0, 1, 1], [], []>} : vector<32x128xbf16>, vector<128x384xbf16>, vector<32x384xf32> -> vector<32x384xf32>
    %c0_4 = arith.constant 0 : index
    %c0_5 = arith.constant 0 : index
    %5 = vector.load %arg4[%c0_4, %c0_5] : memref<1x384xf32, #tpu.memory_space<vmem>>, vector<1x384xf32>
    %6 = vector.shape_cast %5 : vector<1x384xf32> to vector<384xf32>
    %7 = vector.shape_cast %6 : vector<384xf32> to vector<1x384xf32>
    %8 = vector.broadcast %7 : vector<1x384xf32> to vector<32x384xf32>
    %9 = arith.addf %4, %8 : vector<32x384xf32>
    %c0_6 = arith.constant 0 : index
    %c0_7 = arith.constant 0 : index
    %c0_8 = arith.constant 0 : index
    %10 = vector.load %arg2[%c0_6, %c0_7, %c0_8] : memref<4x8x8xf32, #tpu.memory_space<vmem>>, vector<4x8x8xf32>
    %cst_9 = arith.constant 0.000000e+00 : f32
    %11 = vector.broadcast %cst_9 : f32 to vector<4x8x8xf32>
    %12 = arith.cmpf oeq, %10, %11 : vector<4x8x8xf32>
    %cst_10 = arith.constant -1.000000e+09 : f32
    %cst_11 = arith.constant 0.000000e+00 : f32
    %13 = vector.broadcast %cst_10 : f32 to vector<4x8x8xf32>
    %14 = vector.broadcast %cst_11 : f32 to vector<4x8x8xf32>
    %15 = arith.select %12, %13, %14 : vector<4x8x8xi1>, vector<4x8x8xf32>
    %16 = vector.extract_strided_slice %9 {offsets = [0, 0], sizes = [32, 16], strides = [1, 1]} : vector<32x384xf32> to vector<32x16xf32>
    %17 = vector.shape_cast %16 : vector<32x16xf32> to vector<4x8x16xf32>
    %18 = vector.extract_strided_slice %9 {offsets = [0, 128], sizes = [32, 16], strides = [1, 1]} : vector<32x384xf32> to vector<32x16xf32>
    %19 = vector.shape_cast %18 : vector<32x16xf32> to vector<4x8x16xf32>
    %20 = vector.extract_strided_slice %9 {offsets = [0, 256], sizes = [32, 16], strides = [1, 1]} : vector<32x384xf32> to vector<32x16xf32>
    %21 = vector.shape_cast %20 : vector<32x16xf32> to vector<4x8x16xf32>
    "tpu.trace_start"() <{level = 10 : i32, message = "bqd,bkd->bqk"}> : () -> ()
    %cst_12 = arith.constant dense<0.000000e+00> : vector<4x8x8xf32>
    %22 = tpu.matmul %17, %19, %cst_12 {dimension_numbers = #tpu.dot_dimension_numbers<[2], [2], [1], [1], [0, 0, 0, 1, 1, 1], [0], [0]>} : vector<4x8x16xf32>, vector<4x8x16xf32>, vector<4x8x8xf32> -> vector<4x8x8xf32>
    "tpu.trace_stop"() : () -> ()
    %cst_13 = arith.constant 2.500000e-01 : f32
    %23 = vector.broadcast %cst_13 : f32 to vector<4x8x8xf32>
    %24 = arith.mulf %22, %23 : vector<4x8x8xf32>
    %25 = arith.addf %24, %15 : vector<4x8x8xf32>
    %cst_14 = arith.constant dense<0xFF800000> : vector<4x8xf32>
    %26 = vector.multi_reduction <maximumf>, %25, %cst_14 [2] : vector<4x8x8xf32> to vector<4x8xf32>
    %27 = vector.shape_cast %26 : vector<4x8xf32> to vector<4x8x1xf32>
    %28 = vector.broadcast %27 : vector<4x8x1xf32> to vector<4x8x8xf32>
    %29 = arith.subf %25, %28 : vector<4x8x8xf32>
    %30 = math.exp %29 : vector<4x8x8xf32>
    %cst_15 = arith.constant dense<0.000000e+00> : vector<4x8xf32>
    %31 = vector.multi_reduction <add>, %30, %cst_15 [2] : vector<4x8x8xf32> to vector<4x8xf32>
    %32 = vector.shape_cast %31 : vector<4x8xf32> to vector<4x8x1xf32>
    %33 = vector.broadcast %32 : vector<4x8x1xf32> to vector<4x8x8xf32>
    %34 = arith.divf %30, %33 : vector<4x8x8xf32>
    %c0_16 = arith.constant 0 : index
    %c0_17 = arith.constant 0 : index
    %c0_18 = arith.constant 0 : index
    %35 = vector.load %arg10[%c0_16, %c0_17, %c0_18] : memref<4x8x64xf32, #tpu.memory_space<vmem>>, vector<4x8x8xf32>
    tpu.vector_store %arg10[%c0_16, %c0_17, %c0_18], %34 {strides = array<i32>} : memref<4x8x64xf32, #tpu.memory_space<vmem>>, vector<4x8x8xf32>,
    "tpu.trace_start"() <{level = 10 : i32, message = "bqk,bkd->bqd"}> : () -> ()
    %cst_19 = arith.constant dense<0.000000e+00> : vector<4x8x16xf32>
    %36 = tpu.matmul %34, %21, %cst_19 {dimension_numbers = #tpu.dot_dimension_numbers<[2], [1], [1], [2], [0, 0, 0, 1, 1, 2], [0], [0]>} : vector<4x8x8xf32>, vector<4x8x16xf32>, vector<4x8x16xf32> -> vector<4x8x16xf32>
    "tpu.trace_stop"() : () -> ()
    %c0_20 = arith.constant 0 : index
    %c0_21 = arith.constant 0 : index
    %c0_22 = arith.constant 0 : index
    %37 = vector.load %arg11[%c0_20, %c0_21, %c0_22] : memref<4x8x128xf32, #tpu.memory_space<vmem>>, vector<4x8x16xf32>
    tpu.vector_store %arg11[%c0_20, %c0_21, %c0_22], %36 {strides = array<i32>} : memref<4x8x128xf32, #tpu.memory_space<vmem>>, vector<4x8x16xf32>,
    %38 = vector.extract_strided_slice %9 {offsets = [0, 16], sizes = [32, 16], strides = [1, 1]} : vector<32x384xf32> to vector<32x16xf32>
    %39 = vector.shape_cast %38 : vector<32x16xf32> to vector<4x8x16xf32>
    %40 = vector.extract_strided_slice %9 {offsets = [0, 144], sizes = [32, 16], strides = [1, 1]} : vector<32x384xf32> to vector<32x16xf32>
    %41 = vector.shape_cast %40 : vector<32x16xf32> to vector<4x8x16xf32>
    %42 = vector.extract_strided_slice %9 {offsets = [0, 272], sizes = [32, 16], strides = [1, 1]} : vector<32x384xf32> to vector<32x16xf32>
    %43 = vector.shape_cast %42 : vector<32x16xf32> to vector<4x8x16xf32>
    "tpu.trace_start"() <{level = 10 : i32, message = "bqd,bkd->bqk"}> : () -> ()
    %cst_23 = arith.constant dense<0.000000e+00> : vector<4x8x8xf32>
    %44 = tpu.matmul %39, %41, %cst_23 {dimension_numbers = #tpu.dot_dimension_numbers<[2], [2], [1], [1], [0, 0, 0, 1, 1, 1], [0], [0]>} : vector<4x8x16xf32>, vector<4x8x16xf32>, vector<4x8x8xf32> -> vector<4x8x8xf32>
    "tpu.trace_stop"() : () -> ()
    %cst_24 = arith.constant 2.500000e-01 : f32
    %45 = vector.broadcast %cst_24 : f32 to vector<4x8x8xf32>
    %46 = arith.mulf %44, %45 : vector<4x8x8xf32>
    %47 = arith.addf %46, %15 : vector<4x8x8xf32>
    %cst_25 = arith.constant dense<0xFF800000> : vector<4x8xf32>
    %48 = vector.multi_reduction <maximumf>, %47, %cst_25 [2] : vector<4x8x8xf32> to vector<4x8xf32>
    %49 = vector.shape_cast %48 : vector<4x8xf32> to vector<4x8x1xf32>
    %50 = vector.broadcast %49 : vector<4x8x1xf32> to vector<4x8x8xf32>
    %51 = arith.subf %47, %50 : vector<4x8x8xf32>
    %52 = math.exp %51 : vector<4x8x8xf32>
    %cst_26 = arith.constant dense<0.000000e+00> : vector<4x8xf32>
    %53 = vector.multi_reduction <add>, %52, %cst_26 [2] : vector<4x8x8xf32> to vector<4x8xf32>
    %54 = vector.shape_cast %53 : vector<4x8xf32> to vector<4x8x1xf32>
    %55 = vector.broadcast %54 : vector<4x8x1xf32> to vector<4x8x8xf32>
    %56 = arith.divf %52, %55 : vector<4x8x8xf32>
    %c0_27 = arith.constant 0 : index
    %c0_28 = arith.constant 0 : index
    %c8 = arith.constant 8 : index
    %57 = vector.load %arg10[%c0_27, %c0_28, %c8] : memref<4x8x64xf32, #tpu.memory_space<vmem>>, vector<4x8x8xf32>
    tpu.vector_store %arg10[%c0_27, %c0_28, %c8], %56 {strides = array<i32>} : memref<4x8x64xf32, #tpu.memory_space<vmem>>, vector<4x8x8xf32>,
    "tpu.trace_start"() <{level = 10 : i32, message = "bqk,bkd->bqd"}> : () -> ()
    %cst_29 = arith.constant dense<0.000000e+00> : vector<4x8x16xf32>
    %58 = tpu.matmul %56, %43, %cst_29 {dimension_numbers = #tpu.dot_dimension_numbers<[2], [1], [1], [2], [0, 0, 0, 1, 1, 2], [0], [0]>} : vector<4x8x8xf32>, vector<4x8x16xf32>, vector<4x8x16xf32> -> vector<4x8x16xf32>
    "tpu.trace_stop"() : () -> ()
    %c0_30 = arith.constant 0 : index
    %c0_31 = arith.constant 0 : index
    %c16 = arith.constant 16 : index
    %59 = vector.load %arg11[%c0_30, %c0_31, %c16] : memref<4x8x128xf32, #tpu.memory_space<vmem>>, vector<4x8x16xf32>
    tpu.vector_store %arg11[%c0_30, %c0_31, %c16], %58 {strides = array<i32>} : memref<4x8x128xf32, #tpu.memory_space<vmem>>, vector<4x8x16xf32>,
    %60 = vector.extract_strided_slice %9 {offsets = [0, 32], sizes = [32, 16], strides = [1, 1]} : vector<32x384xf32> to vector<32x16xf32>
    %61 = vector.shape_cast %60 : vector<32x16xf32> to vector<4x8x16xf32>
    %62 = vector.extract_strided_slice %9 {offsets = [0, 160], sizes = [32, 16], strides = [1, 1]} : vector<32x384xf32> to vector<32x16xf32>
    %63 = vector.shape_cast %62 : vector<32x16xf32> to vector<4x8x16xf32>
    %64 = vector.extract_strided_slice %9 {offsets = [0, 288], sizes = [32, 16], strides = [1, 1]} : vector<32x384xf32> to vector<32x16xf32>
    %65 = vector.shape_cast %64 : vector<32x16xf32> to vector<4x8x16xf32>
    "tpu.trace_start"() <{level = 10 : i32, message = "bqd,bkd->bqk"}> : () -> ()
    %cst_32 = arith.constant dense<0.000000e+00> : vector<4x8x8xf32>
    %66 = tpu.matmul %61, %63, %cst_32 {dimension_numbers = #tpu.dot_dimension_numbers<[2], [2], [1], [1], [0, 0, 0, 1, 1, 1], [0], [0]>} : vector<4x8x16xf32>, vector<4x8x16xf32>, vector<4x8x8xf32> -> vector<4x8x8xf32>
    "tpu.trace_stop"() : () -> ()
    %cst_33 = arith.constant 2.500000e-01 : f32
    %67 = vector.broadcast %cst_33 : f32 to vector<4x8x8xf32>
    %68 = arith.mulf %66, %67 : vector<4x8x8xf32>
    %69 = arith.addf %68, %15 : vector<4x8x8xf32>
    %cst_34 = arith.constant dense<0xFF800000> : vector<4x8xf32>
    %70 = vector.multi_reduction <maximumf>, %69, %cst_34 [2] : vector<4x8x8xf32> to vector<4x8xf32>
    %71 = vector.shape_cast %70 : vector<4x8xf32> to vector<4x8x1xf32>
    %72 = vector.broadcast %71 : vector<4x8x1xf32> to vector<4x8x8xf32>
    %73 = arith.subf %69, %72 : vector<4x8x8xf32>
    %74 = math.exp %73 : vector<4x8x8xf32>
    %cst_35 = arith.constant dense<0.000000e+00> : vector<4x8xf32>
    %75 = vector.multi_reduction <add>, %74, %cst_35 [2] : vector<4x8x8xf32> to vector<4x8xf32>
    %76 = vector.shape_cast %75 : vector<4x8xf32> to vector<4x8x1xf32>
    %77 = vector.broadcast %76 : vector<4x8x1xf32> to vector<4x8x8xf32>
    %78 = arith.divf %74, %77 : vector<4x8x8xf32>
    %c0_36 = arith.constant 0 : index
    %c0_37 = arith.constant 0 : index
    %c16_38 = arith.constant 16 : index
    %79 = vector.load %arg10[%c0_36, %c0_37, %c16_38] : memref<4x8x64xf32, #tpu.memory_space<vmem>>, vector<4x8x8xf32>
    tpu.vector_store %arg10[%c0_36, %c0_37, %c16_38], %78 {strides = array<i32>} : memref<4x8x64xf32, #tpu.memory_space<vmem>>, vector<4x8x8xf32>,
    "tpu.trace_start"() <{level = 10 : i32, message = "bqk,bkd->bqd"}> : () -> ()
    %cst_39 = arith.constant dense<0.000000e+00> : vector<4x8x16xf32>
    %80 = tpu.matmul %78, %65, %cst_39 {dimension_numbers = #tpu.dot_dimension_numbers<[2], [1], [1], [2], [0, 0, 0, 1, 1, 2], [0], [0]>} : vector<4x8x8xf32>, vector<4x8x16xf32>, vector<4x8x16xf32> -> vector<4x8x16xf32>
    "tpu.trace_stop"() : () -> ()
    %c0_40 = arith.constant 0 : index
    %c0_41 = arith.constant 0 : index
    %c32 = arith.constant 32 : index
    %81 = vector.load %arg11[%c0_40, %c0_41, %c32] : memref<4x8x128xf32, #tpu.memory_space<vmem>>, vector<4x8x16xf32>
    tpu.vector_store %arg11[%c0_40, %c0_41, %c32], %80 {strides = array<i32>} : memref<4x8x128xf32, #tpu.memory_space<vmem>>, vector<4x8x16xf32>,
    %82 = vector.extract_strided_slice %9 {offsets = [0, 48], sizes = [32, 16], strides = [1, 1]} : vector<32x384xf32> to vector<32x16xf32>
    %83 = vector.shape_cast %82 : vector<32x16xf32> to vector<4x8x16xf32>
    %84 = vector.extract_strided_slice %9 {offsets = [0, 176], sizes = [32, 16], strides = [1, 1]} : vector<32x384xf32> to vector<32x16xf32>
    %85 = vector.shape_cast %84 : vector<32x16xf32> to vector<4x8x16xf32>
    %86 = vector.extract_strided_slice %9 {offsets = [0, 304], sizes = [32, 16], strides = [1, 1]} : vector<32x384xf32> to vector<32x16xf32>
    %87 = vector.shape_cast %86 : vector<32x16xf32> to vector<4x8x16xf32>
    "tpu.trace_start"() <{level = 10 : i32, message = "bqd,bkd->bqk"}> : () -> ()
    %cst_42 = arith.constant dense<0.000000e+00> : vector<4x8x8xf32>
    %88 = tpu.matmul %83, %85, %cst_42 {dimension_numbers = #tpu.dot_dimension_numbers<[2], [2], [1], [1], [0, 0, 0, 1, 1, 1], [0], [0]>} : vector<4x8x16xf32>, vector<4x8x16xf32>, vector<4x8x8xf32> -> vector<4x8x8xf32>
    "tpu.trace_stop"() : () -> ()
    %cst_43 = arith.constant 2.500000e-01 : f32
    %89 = vector.broadcast %cst_43 : f32 to vector<4x8x8xf32>
    %90 = arith.mulf %88, %89 : vector<4x8x8xf32>
    %91 = arith.addf %90, %15 : vector<4x8x8xf32>
    %cst_44 = arith.constant dense<0xFF800000> : vector<4x8xf32>
    %92 = vector.multi_reduction <maximumf>, %91, %cst_44 [2] : vector<4x8x8xf32> to vector<4x8xf32>
    %93 = vector.shape_cast %92 : vector<4x8xf32> to vector<4x8x1xf32>
    %94 = vector.broadcast %93 : vector<4x8x1xf32> to vector<4x8x8xf32>
    %95 = arith.subf %91, %94 : vector<4x8x8xf32>
    %96 = math.exp %95 : vector<4x8x8xf32>
    %cst_45 = arith.constant dense<0.000000e+00> : vector<4x8xf32>
    %97 = vector.multi_reduction <add>, %96, %cst_45 [2] : vector<4x8x8xf32> to vector<4x8xf32>
    %98 = vector.shape_cast %97 : vector<4x8xf32> to vector<4x8x1xf32>
    %99 = vector.broadcast %98 : vector<4x8x1xf32> to vector<4x8x8xf32>
    %100 = arith.divf %96, %99 : vector<4x8x8xf32>
    %c0_46 = arith.constant 0 : index
    %c0_47 = arith.constant 0 : index
    %c24 = arith.constant 24 : index
    %101 = vector.load %arg10[%c0_46, %c0_47, %c24] : memref<4x8x64xf32, #tpu.memory_space<vmem>>, vector<4x8x8xf32>
    tpu.vector_store %arg10[%c0_46, %c0_47, %c24], %100 {strides = array<i32>} : memref<4x8x64xf32, #tpu.memory_space<vmem>>, vector<4x8x8xf32>,
    "tpu.trace_start"() <{level = 10 : i32, message = "bqk,bkd->bqd"}> : () -> ()
    %cst_48 = arith.constant dense<0.000000e+00> : vector<4x8x16xf32>
    %102 = tpu.matmul %100, %87, %cst_48 {dimension_numbers = #tpu.dot_dimension_numbers<[2], [1], [1], [2], [0, 0, 0, 1, 1, 2], [0], [0]>} : vector<4x8x8xf32>, vector<4x8x16xf32>, vector<4x8x16xf32> -> vector<4x8x16xf32>
    "tpu.trace_stop"() : () -> ()
    %c0_49 = arith.constant 0 : index
    %c0_50 = arith.constant 0 : index
    %c48 = arith.constant 48 : index
    %103 = vector.load %arg11[%c0_49, %c0_50, %c48] : memref<4x8x128xf32, #tpu.memory_space<vmem>>, vector<4x8x16xf32>
    tpu.vector_store %arg11[%c0_49, %c0_50, %c48], %102 {strides = array<i32>} : memref<4x8x128xf32, #tpu.memory_space<vmem>>, vector<4x8x16xf32>,
    %104 = vector.extract_strided_slice %9 {offsets = [0, 64], sizes = [32, 16], strides = [1, 1]} : vector<32x384xf32> to vector<32x16xf32>
    %105 = vector.shape_cast %104 : vector<32x16xf32> to vector<4x8x16xf32>
    %106 = vector.extract_strided_slice %9 {offsets = [0, 192], sizes = [32, 16], strides = [1, 1]} : vector<32x384xf32> to vector<32x16xf32>
    %107 = vector.shape_cast %106 : vector<32x16xf32> to vector<4x8x16xf32>
    %108 = vector.extract_strided_slice %9 {offsets = [0, 320], sizes = [32, 16], strides = [1, 1]} : vector<32x384xf32> to vector<32x16xf32>
    %109 = vector.shape_cast %108 : vector<32x16xf32> to vector<4x8x16xf32>
    "tpu.trace_start"() <{level = 10 : i32, message = "bqd,bkd->bqk"}> : () -> ()
    %cst_51 = arith.constant dense<0.000000e+00> : vector<4x8x8xf32>
    %110 = tpu.matmul %105, %107, %cst_51 {dimension_numbers = #tpu.dot_dimension_numbers<[2], [2], [1], [1], [0, 0, 0, 1, 1, 1], [0], [0]>} : vector<4x8x16xf32>, vector<4x8x16xf32>, vector<4x8x8xf32> -> vector<4x8x8xf32>
    "tpu.trace_stop"() : () -> ()
    %cst_52 = arith.constant 2.500000e-01 : f32
    %111 = vector.broadcast %cst_52 : f32 to vector<4x8x8xf32>
    %112 = arith.mulf %110, %111 : vector<4x8x8xf32>
    %113 = arith.addf %112, %15 : vector<4x8x8xf32>
    %cst_53 = arith.constant dense<0xFF800000> : vector<4x8xf32>
    %114 = vector.multi_reduction <maximumf>, %113, %cst_53 [2] : vector<4x8x8xf32> to vector<4x8xf32>
    %115 = vector.shape_cast %114 : vector<4x8xf32> to vector<4x8x1xf32>
    %116 = vector.broadcast %115 : vector<4x8x1xf32> to vector<4x8x8xf32>
    %117 = arith.subf %113, %116 : vector<4x8x8xf32>
    %118 = math.exp %117 : vector<4x8x8xf32>
    %cst_54 = arith.constant dense<0.000000e+00> : vector<4x8xf32>
    %119 = vector.multi_reduction <add>, %118, %cst_54 [2] : vector<4x8x8xf32> to vector<4x8xf32>
    %120 = vector.shape_cast %119 : vector<4x8xf32> to vector<4x8x1xf32>
    %121 = vector.broadcast %120 : vector<4x8x1xf32> to vector<4x8x8xf32>
    %122 = arith.divf %118, %121 : vector<4x8x8xf32>
    %c0_55 = arith.constant 0 : index
    %c0_56 = arith.constant 0 : index
    %c32_57 = arith.constant 32 : index
    %123 = vector.load %arg10[%c0_55, %c0_56, %c32_57] : memref<4x8x64xf32, #tpu.memory_space<vmem>>, vector<4x8x8xf32>
    tpu.vector_store %arg10[%c0_55, %c0_56, %c32_57], %122 {strides = array<i32>} : memref<4x8x64xf32, #tpu.memory_space<vmem>>, vector<4x8x8xf32>,
    "tpu.trace_start"() <{level = 10 : i32, message = "bqk,bkd->bqd"}> : () -> ()
    %cst_58 = arith.constant dense<0.000000e+00> : vector<4x8x16xf32>
    %124 = tpu.matmul %122, %109, %cst_58 {dimension_numbers = #tpu.dot_dimension_numbers<[2], [1], [1], [2], [0, 0, 0, 1, 1, 2], [0], [0]>} : vector<4x8x8xf32>, vector<4x8x16xf32>, vector<4x8x16xf32> -> vector<4x8x16xf32>
    "tpu.trace_stop"() : () -> ()
    %c0_59 = arith.constant 0 : index
    %c0_60 = arith.constant 0 : index
    %c64 = arith.constant 64 : index
    %125 = vector.load %arg11[%c0_59, %c0_60, %c64] : memref<4x8x128xf32, #tpu.memory_space<vmem>>, vector<4x8x16xf32>
    tpu.vector_store %arg11[%c0_59, %c0_60, %c64], %124 {strides = array<i32>} : memref<4x8x128xf32, #tpu.memory_space<vmem>>, vector<4x8x16xf32>,
    %126 = vector.extract_strided_slice %9 {offsets = [0, 80], sizes = [32, 16], strides = [1, 1]} : vector<32x384xf32> to vector<32x16xf32>
    %127 = vector.shape_cast %126 : vector<32x16xf32> to vector<4x8x16xf32>
    %128 = vector.extract_strided_slice %9 {offsets = [0, 208], sizes = [32, 16], strides = [1, 1]} : vector<32x384xf32> to vector<32x16xf32>
    %129 = vector.shape_cast %128 : vector<32x16xf32> to vector<4x8x16xf32>
    %130 = vector.extract_strided_slice %9 {offsets = [0, 336], sizes = [32, 16], strides = [1, 1]} : vector<32x384xf32> to vector<32x16xf32>
    %131 = vector.shape_cast %130 : vector<32x16xf32> to vector<4x8x16xf32>
    "tpu.trace_start"() <{level = 10 : i32, message = "bqd,bkd->bqk"}> : () -> ()
    %cst_61 = arith.constant dense<0.000000e+00> : vector<4x8x8xf32>
    %132 = tpu.matmul %127, %129, %cst_61 {dimension_numbers = #tpu.dot_dimension_numbers<[2], [2], [1], [1], [0, 0, 0, 1, 1, 1], [0], [0]>} : vector<4x8x16xf32>, vector<4x8x16xf32>, vector<4x8x8xf32> -> vector<4x8x8xf32>
    "tpu.trace_stop"() : () -> ()
    %cst_62 = arith.constant 2.500000e-01 : f32
    %133 = vector.broadcast %cst_62 : f32 to vector<4x8x8xf32>
    %134 = arith.mulf %132, %133 : vector<4x8x8xf32>
    %135 = arith.addf %134, %15 : vector<4x8x8xf32>
    %cst_63 = arith.constant dense<0xFF800000> : vector<4x8xf32>
    %136 = vector.multi_reduction <maximumf>, %135, %cst_63 [2] : vector<4x8x8xf32> to vector<4x8xf32>
    %137 = vector.shape_cast %136 : vector<4x8xf32> to vector<4x8x1xf32>
    %138 = vector.broadcast %137 : vector<4x8x1xf32> to vector<4x8x8xf32>
    %139 = arith.subf %135, %138 : vector<4x8x8xf32>
    %140 = math.exp %139 : vector<4x8x8xf32>
    %cst_64 = arith.constant dense<0.000000e+00> : vector<4x8xf32>
    %141 = vector.multi_reduction <add>, %140, %cst_64 [2] : vector<4x8x8xf32> to vector<4x8xf32>
    %142 = vector.shape_cast %141 : vector<4x8xf32> to vector<4x8x1xf32>
    %143 = vector.broadcast %142 : vector<4x8x1xf32> to vector<4x8x8xf32>
    %144 = arith.divf %140, %143 : vector<4x8x8xf32>
    %c0_65 = arith.constant 0 : index
    %c0_66 = arith.constant 0 : index
    %c40 = arith.constant 40 : index
    %145 = vector.load %arg10[%c0_65, %c0_66, %c40] : memref<4x8x64xf32, #tpu.memory_space<vmem>>, vector<4x8x8xf32>
    tpu.vector_store %arg10[%c0_65, %c0_66, %c40], %144 {strides = array<i32>} : memref<4x8x64xf32, #tpu.memory_space<vmem>>, vector<4x8x8xf32>,
    "tpu.trace_start"() <{level = 10 : i32, message = "bqk,bkd->bqd"}> : () -> ()
    %cst_67 = arith.constant dense<0.000000e+00> : vector<4x8x16xf32>
    %146 = tpu.matmul %144, %131, %cst_67 {dimension_numbers = #tpu.dot_dimension_numbers<[2], [1], [1], [2], [0, 0, 0, 1, 1, 2], [0], [0]>} : vector<4x8x8xf32>, vector<4x8x16xf32>, vector<4x8x16xf32> -> vector<4x8x16xf32>
    "tpu.trace_stop"() : () -> ()
    %c0_68 = arith.constant 0 : index
    %c0_69 = arith.constant 0 : index
    %c80 = arith.constant 80 : index
    %147 = vector.load %arg11[%c0_68, %c0_69, %c80] : memref<4x8x128xf32, #tpu.memory_space<vmem>>, vector<4x8x16xf32>
    tpu.vector_store %arg11[%c0_68, %c0_69, %c80], %146 {strides = array<i32>} : memref<4x8x128xf32, #tpu.memory_space<vmem>>, vector<4x8x16xf32>,
    %148 = vector.extract_strided_slice %9 {offsets = [0, 96], sizes = [32, 16], strides = [1, 1]} : vector<32x384xf32> to vector<32x16xf32>
    %149 = vector.shape_cast %148 : vector<32x16xf32> to vector<4x8x16xf32>
    %150 = vector.extract_strided_slice %9 {offsets = [0, 224], sizes = [32, 16], strides = [1, 1]} : vector<32x384xf32> to vector<32x16xf32>
    %151 = vector.shape_cast %150 : vector<32x16xf32> to vector<4x8x16xf32>
    %152 = vector.extract_strided_slice %9 {offsets = [0, 352], sizes = [32, 16], strides = [1, 1]} : vector<32x384xf32> to vector<32x16xf32>
    %153 = vector.shape_cast %152 : vector<32x16xf32> to vector<4x8x16xf32>
    "tpu.trace_start"() <{level = 10 : i32, message = "bqd,bkd->bqk"}> : () -> ()
    %cst_70 = arith.constant dense<0.000000e+00> : vector<4x8x8xf32>
    %154 = tpu.matmul %149, %151, %cst_70 {dimension_numbers = #tpu.dot_dimension_numbers<[2], [2], [1], [1], [0, 0, 0, 1, 1, 1], [0], [0]>} : vector<4x8x16xf32>, vector<4x8x16xf32>, vector<4x8x8xf32> -> vector<4x8x8xf32>
    "tpu.trace_stop"() : () -> ()
    %cst_71 = arith.constant 2.500000e-01 : f32
    %155 = vector.broadcast %cst_71 : f32 to vector<4x8x8xf32>
    %156 = arith.mulf %154, %155 : vector<4x8x8xf32>
    %157 = arith.addf %156, %15 : vector<4x8x8xf32>
    %cst_72 = arith.constant dense<0xFF800000> : vector<4x8xf32>
    %158 = vector.multi_reduction <maximumf>, %157, %cst_72 [2] : vector<4x8x8xf32> to vector<4x8xf32>
    %159 = vector.shape_cast %158 : vector<4x8xf32> to vector<4x8x1xf32>
    %160 = vector.broadcast %159 : vector<4x8x1xf32> to vector<4x8x8xf32>
    %161 = arith.subf %157, %160 : vector<4x8x8xf32>
    %162 = math.exp %161 : vector<4x8x8xf32>
    %cst_73 = arith.constant dense<0.000000e+00> : vector<4x8xf32>
    %163 = vector.multi_reduction <add>, %162, %cst_73 [2] : vector<4x8x8xf32> to vector<4x8xf32>
    %164 = vector.shape_cast %163 : vector<4x8xf32> to vector<4x8x1xf32>
    %165 = vector.broadcast %164 : vector<4x8x1xf32> to vector<4x8x8xf32>
    %166 = arith.divf %162, %165 : vector<4x8x8xf32>
    %c0_74 = arith.constant 0 : index
    %c0_75 = arith.constant 0 : index
    %c48_76 = arith.constant 48 : index
    %167 = vector.load %arg10[%c0_74, %c0_75, %c48_76] : memref<4x8x64xf32, #tpu.memory_space<vmem>>, vector<4x8x8xf32>
    tpu.vector_store %arg10[%c0_74, %c0_75, %c48_76], %166 {strides = array<i32>} : memref<4x8x64xf32, #tpu.memory_space<vmem>>, vector<4x8x8xf32>,
    "tpu.trace_start"() <{level = 10 : i32, message = "bqk,bkd->bqd"}> : () -> ()
    %cst_77 = arith.constant dense<0.000000e+00> : vector<4x8x16xf32>
    %168 = tpu.matmul %166, %153, %cst_77 {dimension_numbers = #tpu.dot_dimension_numbers<[2], [1], [1], [2], [0, 0, 0, 1, 1, 2], [0], [0]>} : vector<4x8x8xf32>, vector<4x8x16xf32>, vector<4x8x16xf32> -> vector<4x8x16xf32>
    "tpu.trace_stop"() : () -> ()
    %c0_78 = arith.constant 0 : index
    %c0_79 = arith.constant 0 : index
    %c96 = arith.constant 96 : index
    %169 = vector.load %arg11[%c0_78, %c0_79, %c96] : memref<4x8x128xf32, #tpu.memory_space<vmem>>, vector<4x8x16xf32>
    tpu.vector_store %arg11[%c0_78, %c0_79, %c96], %168 {strides = array<i32>} : memref<4x8x128xf32, #tpu.memory_space<vmem>>, vector<4x8x16xf32>,
    %170 = vector.extract_strided_slice %9 {offsets = [0, 112], sizes = [32, 16], strides = [1, 1]} : vector<32x384xf32> to vector<32x16xf32>
    %171 = vector.shape_cast %170 : vector<32x16xf32> to vector<4x8x16xf32>
    %172 = vector.extract_strided_slice %9 {offsets = [0, 240], sizes = [32, 16], strides = [1, 1]} : vector<32x384xf32> to vector<32x16xf32>
    %173 = vector.shape_cast %172 : vector<32x16xf32> to vector<4x8x16xf32>
    %174 = vector.extract_strided_slice %9 {offsets = [0, 368], sizes = [32, 16], strides = [1, 1]} : vector<32x384xf32> to vector<32x16xf32>
    %175 = vector.shape_cast %174 : vector<32x16xf32> to vector<4x8x16xf32>
    "tpu.trace_start"() <{level = 10 : i32, message = "bqd,bkd->bqk"}> : () -> ()
    %cst_80 = arith.constant dense<0.000000e+00> : vector<4x8x8xf32>
    %176 = tpu.matmul %171, %173, %cst_80 {dimension_numbers = #tpu.dot_dimension_numbers<[2], [2], [1], [1], [0, 0, 0, 1, 1, 1], [0], [0]>} : vector<4x8x16xf32>, vector<4x8x16xf32>, vector<4x8x8xf32> -> vector<4x8x8xf32>
    "tpu.trace_stop"() : () -> ()
    %cst_81 = arith.constant 2.500000e-01 : f32
    %177 = vector.broadcast %cst_81 : f32 to vector<4x8x8xf32>
    %178 = arith.mulf %176, %177 : vector<4x8x8xf32>
    %179 = arith.addf %178, %15 : vector<4x8x8xf32>
    %cst_82 = arith.constant dense<0xFF800000> : vector<4x8xf32>
    %180 = vector.multi_reduction <maximumf>, %179, %cst_82 [2] : vector<4x8x8xf32> to vector<4x8xf32>
    %181 = vector.shape_cast %180 : vector<4x8xf32> to vector<4x8x1xf32>
    %182 = vector.broadcast %181 : vector<4x8x1xf32> to vector<4x8x8xf32>
    %183 = arith.subf %179, %182 : vector<4x8x8xf32>
    %184 = math.exp %183 : vector<4x8x8xf32>
    %cst_83 = arith.constant dense<0.000000e+00> : vector<4x8xf32>
    %185 = vector.multi_reduction <add>, %184, %cst_83 [2] : vector<4x8x8xf32> to vector<4x8xf32>
    %186 = vector.shape_cast %185 : vector<4x8xf32> to vector<4x8x1xf32>
    %187 = vector.broadcast %186 : vector<4x8x1xf32> to vector<4x8x8xf32>
    %188 = arith.divf %184, %187 : vector<4x8x8xf32>
    %c0_84 = arith.constant 0 : index
    %c0_85 = arith.constant 0 : index
    %c56 = arith.constant 56 : index
    %189 = vector.load %arg10[%c0_84, %c0_85, %c56] : memref<4x8x64xf32, #tpu.memory_space<vmem>>, vector<4x8x8xf32>
    tpu.vector_store %arg10[%c0_84, %c0_85, %c56], %188 {strides = array<i32>} : memref<4x8x64xf32, #tpu.memory_space<vmem>>, vector<4x8x8xf32>,
    "tpu.trace_start"() <{level = 10 : i32, message = "bqk,bkd->bqd"}> : () -> ()
    %cst_86 = arith.constant dense<0.000000e+00> : vector<4x8x16xf32>
    %190 = tpu.matmul %188, %175, %cst_86 {dimension_numbers = #tpu.dot_dimension_numbers<[2], [1], [1], [2], [0, 0, 0, 1, 1, 2], [0], [0]>} : vector<4x8x8xf32>, vector<4x8x16xf32>, vector<4x8x16xf32> -> vector<4x8x16xf32>
    "tpu.trace_stop"() : () -> ()
    %c0_87 = arith.constant 0 : index
    %c0_88 = arith.constant 0 : index
    %c112 = arith.constant 112 : index
    %191 = vector.load %arg11[%c0_87, %c0_88, %c112] : memref<4x8x128xf32, #tpu.memory_space<vmem>>, vector<4x8x16xf32>
    tpu.vector_store %arg11[%c0_87, %c0_88, %c112], %190 {strides = array<i32>} : memref<4x8x128xf32, #tpu.memory_space<vmem>>, vector<4x8x16xf32>,
    %c0_89 = arith.constant 0 : index
    %c0_90 = arith.constant 0 : index
    %c0_91 = arith.constant 0 : index
    %192 = vector.load %arg11[%c0_89, %c0_90, %c0_91] : memref<4x8x128xf32, #tpu.memory_space<vmem>>, vector<4x8x128xf32>
    %193 = vector.shape_cast %192 : vector<4x8x128xf32> to vector<32x128xf32>
    %194 = arith.truncf %193 : vector<32x128xf32> to vector<32x128xbf16>
    %c0_92 = arith.constant 0 : index
    %c0_93 = arith.constant 0 : index
    %195 = vector.load %arg5[%c0_92, %c0_93] : memref<128x128xbf16, #tpu.memory_space<vmem>>, vector<128x128xbf16>
    %cst_94 = arith.constant dense<0.000000e+00> : vector<32x128xf32>
    %196 = tpu.matmul %194, %195, %cst_94 {dimension_numbers = #tpu.dot_dimension_numbers<[1], [0], [0], [1], [0, 0, 1, 1], [], []>} : vector<32x128xbf16>, vector<128x128xbf16>, vector<32x128xf32> -> vector<32x128xf32>
    %c0_95 = arith.constant 0 : index
    %c0_96 = arith.constant 0 : index
    %197 = vector.load %arg6[%c0_95, %c0_96] : memref<1x128xf32, #tpu.memory_space<vmem>>, vector<1x128xf32>
    %198 = vector.shape_cast %197 : vector<1x128xf32> to vector<128xf32>
    %199 = vector.shape_cast %198 : vector<128xf32> to vector<1x128xf32>
    %200 = vector.broadcast %199 : vector<1x128xf32> to vector<32x128xf32>
    %201 = arith.addf %196, %200 : vector<32x128xf32>
    %202 = arith.addf %201, %1 : vector<32x128xf32>
    %cst_97 = arith.constant dense<0.000000e+00> : vector<32xf32>
    %203 = vector.multi_reduction <add>, %202, %cst_97 [1] : vector<32x128xf32> to vector<32xf32>
    %204 = vector.shape_cast %203 : vector<32xf32> to vector<32x1xf32>
    %cst_98 = arith.constant 1.280000e+02 : f32
    %205 = vector.broadcast %cst_98 : f32 to vector<32x1xf32>
    %206 = arith.divf %204, %205 : vector<32x1xf32>
    %207 = vector.broadcast %206 : vector<32x1xf32> to vector<32x128xf32>
    %208 = arith.subf %202, %207 : vector<32x128xf32>
    %209 = arith.mulf %208, %208 : vector<32x128xf32>
    %cst_99 = arith.constant dense<0.000000e+00> : vector<32xf32>
    %210 = vector.multi_reduction <add>, %209, %cst_99 [1] : vector<32x128xf32> to vector<32xf32>
    %211 = vector.shape_cast %210 : vector<32xf32> to vector<32x1xf32>
    %cst_100 = arith.constant 1.280000e+02 : f32
    %212 = vector.broadcast %cst_100 : f32 to vector<32x1xf32>
    %213 = arith.divf %211, %212 : vector<32x1xf32>
    %214 = vector.broadcast %206 : vector<32x1xf32> to vector<32x128xf32>
    %215 = arith.subf %202, %214 : vector<32x128xf32>
    %cst_101 = arith.constant 9.99999974E-6 : f32
    %216 = vector.broadcast %cst_101 : f32 to vector<32x1xf32>
    %217 = arith.addf %213, %216 : vector<32x1xf32>
    %218 = math.rsqrt %217 : vector<32x1xf32>
    %219 = vector.broadcast %218 : vector<32x1xf32> to vector<32x128xf32>
    %220 = arith.mulf %215, %219 : vector<32x128xf32>
    %c0_102 = arith.constant 0 : index
    %c0_103 = arith.constant 0 : index
    %221 = vector.load %arg7[%c0_102, %c0_103] : memref<1x128xf32, #tpu.memory_space<vmem>>, vector<1x128xf32>
    %222 = vector.shape_cast %221 : vector<1x128xf32> to vector<128xf32>
    %223 = vector.shape_cast %222 : vector<128xf32> to vector<1x128xf32>
    %224 = vector.broadcast %223 : vector<1x128xf32> to vector<32x128xf32>
    %225 = arith.mulf %220, %224 : vector<32x128xf32>
    %c0_104 = arith.constant 0 : index
    %c0_105 = arith.constant 0 : index
    %226 = vector.load %arg8[%c0_104, %c0_105] : memref<1x128xf32, #tpu.memory_space<vmem>>, vector<1x128xf32>
    %227 = vector.shape_cast %226 : vector<1x128xf32> to vector<128xf32>
    %228 = vector.shape_cast %227 : vector<128xf32> to vector<1x128xf32>
    %229 = vector.broadcast %228 : vector<1x128xf32> to vector<32x128xf32>
    %230 = arith.addf %225, %229 : vector<32x128xf32>
    %231 = vector.shape_cast %230 : vector<32x128xf32> to vector<4x8x128xf32>
    %c0_106 = arith.constant 0 : index
    %c0_107 = arith.constant 0 : index
    %c0_108 = arith.constant 0 : index
    %232 = vector.load %arg9[%c0_106, %c0_107, %c0_108] : memref<4x8x128xf32, #tpu.memory_space<vmem>>, vector<4x8x128xf32>
    tpu.vector_store %arg9[%c0_106, %c0_107, %c0_108], %231 {strides = array<i32>} : memref<4x8x128xf32, #tpu.memory_space<vmem>>, vector<4x8x128xf32>,
    return
  }
  func.func @transform_0(%arg0: i32) -> (i32, i32, i32) {
    %c0_i32 = arith.constant 0 : i32
    %c0_i32_0 = arith.constant 0 : i32
    %c0_i32_1 = arith.constant 0 : i32
    return %arg0, %c0_i32, %c0_i32_0 : i32, i32, i32
  }
  func.func @transform_1(%arg0: i32) -> (i32, i32, i32) {
    %c0_i32 = arith.constant 0 : i32
    %c0_i32_0 = arith.constant 0 : i32
    %c0_i32_1 = arith.constant 0 : i32
    return %arg0, %c0_i32, %c0_i32_0 : i32, i32, i32
  }
  func.func @transform_2(%arg0: i32) -> (i32, i32) {
    %c0_i32 = arith.constant 0 : i32
    %c0_i32_0 = arith.constant 0 : i32
    %c0_i32_1 = arith.constant 0 : i32
    return %c0_i32, %c0_i32_0 : i32, i32
  }
  func.func @transform_3(%arg0: i32) -> (i32, i32) {
    %c0_i32 = arith.constant 0 : i32
    %c0_i32_0 = arith.constant 0 : i32
    %c0_i32_1 = arith.constant 0 : i32
    return %c0_i32, %c0_i32_0 : i32, i32
  }
  func.func @transform_4(%arg0: i32) -> (i32, i32) {
    %c0_i32 = arith.constant 0 : i32
    %c0_i32_0 = arith.constant 0 : i32
    %c0_i32_1 = arith.constant 0 : i32
    return %c0_i32, %c0_i32_0 : i32, i32
  }
  func.func @transform_5(%arg0: i32) -> (i32, i32) {
    %c0_i32 = arith.constant 0 : i32
    %c0_i32_0 = arith.constant 0 : i32
    %c0_i32_1 = arith.constant 0 : i32
    return %c0_i32, %c0_i32_0 : i32, i32
  }
  func.func @transform_6(%arg0: i32) -> (i32, i32) {
    %c0_i32 = arith.constant 0 : i32
    %c0_i32_0 = arith.constant 0 : i32
    %c0_i32_1 = arith.constant 0 : i32
    return %c0_i32, %c0_i32_0 : i32, i32
  }
  func.func @transform_7(%arg0: i32) -> (i32, i32) {
    %c0_i32 = arith.constant 0 : i32
    %c0_i32_0 = arith.constant 0 : i32
    %c0_i32_1 = arith.constant 0 : i32
    return %c0_i32, %c0_i32_0 : i32, i32
  }
  func.func @transform_8(%arg0: i32) -> (i32, i32, i32) {
    %c0_i32 = arith.constant 0 : i32
    %c0_i32_0 = arith.constant 0 : i32
    %c0_i32_1 = arith.constant 0 : i32
    return %arg0, %c0_i32, %c0_i32_0 : i32, i32, i32
  }
  func.func @transform_9(%arg0: i32) -> (i32, i32, i32) {
    %c0_i32 = arith.constant 0 : i32
    %c0_i32_0 = arith.constant 0 : i32
    %c0_i32_1 = arith.constant 0 : i32
    return %arg0, %c0_i32, %c0_i32_0 : i32, i32, i32
  }
}

</mosaic_0001>

<bundles_post_ra>
// kernel: mha_coordination.1
= control target key start
LH: loop header
LB: loop body
LE: loop exit
PB: predicated region body
PF: predicated region fallthrough
CT: control target
= control target key end

     0   :  { %v7014_v2 = vmov 0   ;;  %s8273_s0 = inlined_call_operand.vmem [shape: f32[4,8,128], index: 0, kind: input, shape index: {}]   ;;  %s8274_s1 = inlined_call_operand.vmem [shape: f32[4,8,8], index: 1, kind: input, shape index: {}]   ;;  %s8275_s2 = inlined_call_operand.vmem [shape: bf16[128,384], index: 2, kind: input, shape index: {}]   ;;  %s8276_s3 = inlined_call_operand.vmem [shape: f32[1,384], index: 3, kind: input, shape index: {}]   ;;  %s8277_s4 = inlined_call_operand.vmem [shape: bf16[128,128], index: 4, kind: input, shape index: {}]   ;;  %s8278_s5 = inlined_call_operand.vmem [shape: f32[1,128], index: 5, kind: input, shape index: {}]   ;;  %s8279_s6 = inlined_call_operand.vmem [shape: f32[1,128], index: 6, kind: input, shape index: {}]   ;;  %s8280_s7 = inlined_call_operand.vmem [shape: f32[1,128], index: 7, kind: input, shape index: {}]   ;;  %s8281_s8 = inlined_call_operand.hbm [shape: f32[4,8,128], index: 8, kind: output, shape index: {0}]   ;;  %s8282_s9 = inlined_call_operand.vmem [shape: f32[4,8,64], index: 9, kind: output, shape index: {1}]  }
   0x1   :  { %v6810_v0 = vld [vmem:[%s8275_s2 + $0x4] ss:$12 sps:$4 sm:$0xff]   ;;  %v6812_v1 = vld [vmem:[%s8275_s2] ss:$12 sps:$4 sm:$0xff]   ;;  %248 = vmatprep.mubr.bf16.mxu1 %v7014_v2  ;;  %v6813_v3 = vld [vmem:[%s8275_s2 + $0x1c] ss:$12 sps:$4 sm:$0xff]  }
   0x2   :  { %216 = vmatprep.subr.bf16.mxu1 %v6810_v0  ;;  %v6815_v4 = vld [vmem:[%s8275_s2 + $0x18] ss:$12 sps:$4 sm:$0xff]   ;;  %v6816_v5 = vld [vmem:[%s8275_s2 + $0x34] ss:$12 sps:$4 sm:$0xff]   ;;  %v6818_v6 = vld [vmem:[%s8275_s2 + $0x30] ss:$12 sps:$4 sm:$0xff]  }
   0x3   :  { %217 = vmatpush1.bf16.msra.mxu1 %v6812_v1  ;;  %v6819_v7 = vld [vmem:[%s8275_s2 + $0x4c] ss:$12 sps:$4 sm:$0xff]   ;;  %v33_v8 = vld [vmem:[%s8273_s0] sm:$0xff]  ;;  %v6821_v9 = vld [vmem:[%s8275_s2 + $0x48] ss:$12 sps:$4 sm:$0xff]  }
   0x4   :  { %218 = vmatprep.subr.bf16.mxu1 %v6813_v3  ;;  %v34_v10 = vld [vmem:[%s8273_s0 + $0x8] sm:$0xff]  ;;  %v6822_v11 = vld [vmem:[%s8275_s2 + $0x64] ss:$12 sps:$4 sm:$0xff]   ;;  %v6828_v16 = vld [vmem:[%s8275_s2 + $0x94] ss:$12 sps:$4 sm:$0xff]  }
   0x5   :  { %v37_v12 = vpack.c.bf16 %v34_v10, %v33_v8  ;;  %v6824_v13 = vld [vmem:[%s8275_s2 + $0x60] ss:$12 sps:$4 sm:$0xff]   ;;  %v6825_v14 = vld [vmem:[%s8275_s2 + $0x7c] ss:$12 sps:$4 sm:$0xff]   ;;  %v6827_v15 = vld [vmem:[%s8275_s2 + $0x78] ss:$12 sps:$4 sm:$0xff]  }
   0x6   :  { %v6830_v17 = vld [vmem:[%s8275_s2 + $0x90] ss:$12 sps:$4 sm:$0xff]  }
   0x7   :  { %219 = vmatpush1.bf16.msra.mxu1 %v6815_v4  ;;  %6450 = vmatprep.mubr.bf16.mxu0 %v37_v12 }
   0x8   :  { %220 = vmatprep.subr.bf16.mxu1 %v6816_v5 }
   0xb   :  { %221 = vmatpush1.bf16.msra.mxu1 %v6818_v6 }
   0xc   :  { %222 = vmatprep.subr.bf16.mxu1 %v6819_v7 }
   0xf   :  { %223 = vmatpush1.bf16.msra.mxu1 %v6821_v9 }
  0x10   :  { %224 = vmatprep.subr.bf16.mxu1 %v6822_v11 }
  0x13   :  { %225 = vmatpush1.bf16.msra.mxu1 %v6824_v13 }
  0x14   :  { %226 = vmatprep.subr.bf16.mxu1 %v6825_v14 }
  0x17   :  { %227 = vmatpush1.bf16.msra.mxu1 %v6827_v15 }
  0x18   :  { %15 = vsyncpa [#allocation4], 0  ;;  %228 = vmatprep.subr.bf16.mxu1 %v6828_v16  ;;  %v6831_v18 = vld [vmem:[%s8275_s2 + $0xac] ss:$12 sps:$4 sm:$0xff]   ;;  %v6833_v19 = vld [vmem:[%s8275_s2 + $0xa8] ss:$12 sps:$4 sm:$0xff]   ;;  %v73_v24 = vlaneseq }
  0x19   :  { %v35_v20 = vld [vmem:[%s8273_s0 + $0x10] sm:$0xff]  ;;  %v36_v21 = vld [vmem:[%s8273_s0 + $0x18] sm:$0xff]  ;;  %v8283_v23 = vmov 0.0   ;;  %vm7016_vm0 = vmmov 0   ;;  %v7152_v27 = vld [vmem:[%s8276_s3] sm:$0x7] }
  0x1a   :  { %v7140_v22 = vpack.c.bf16 %v36_v21, %v35_v20  ;;  %v7146_v25 = vshrl.u32 %v73_v24, 7  ;;  %vm330_vm1 = vcmask 130048   ;;  %v6834_v47 = vld [vmem:[%s8275_s2 + $0x8] ss:$12 sps:$4 sm:$0xff]   ;;  %v6835_v48 = vld [vmem:[%s8275_s2 + $0x20] ss:$12 sps:$4 sm:$0xff]  }
  0x1b   :  { %229 = vmatpush1.bf16.msra.mxu1 %v6830_v17  ;;  %6434 = vmatprep.subr.bf16.mxu0 %v6834_v47  ;;  %v6836_v49 = vld [vmem:[%s8275_s2 + $0x38] ss:$12 sps:$4 sm:$0xff]   ;;  %v6837_v50 = vld [vmem:[%s8275_s2 + $0x50] ss:$12 sps:$4 sm:$0xff]   ;;  %v6838_v51 = vld [vmem:[%s8275_s2 + $0x68] ss:$12 sps:$4 sm:$0xff]  }
  0x1c   :  { %230 = vmatprep.subr.bf16.mxu1 %v6831_v18  ;;  %v79_v26 = vsub.s32 1, %v7146_v25  ;;  %v75_v28 = vsub.s32 0, %v7146_v25  ;;  %6435 = vmatpush3.bf16.msra.mxu0 %v6834_v47  ;;  %v6839_v52 = vld [vmem:[%s8275_s2 + $0x80] ss:$12 sps:$4 sm:$0xff]   ;;  %v6840_v53 = vld [vmem:[%s8275_s2 + $0x98] ss:$12 sps:$4 sm:$0xff]  }
  0x1d   :  { %6436 = vmatprep.subr.bf16.mxu0 %v6835_v48  ;;  %v6841_v54 = vld [vmem:[%s8275_s2 + $0xb0] ss:$12 sps:$4 sm:$0xff]   ;;  %v318_v55 = vld [vmem:[%s8274_s1] sm:$0xff]  ;;  %v319_v56 = vld [vmem:[%s8274_s1 + $0x8] sm:$0xff]  ;;  %vm643_vm4 = vcmask 64512   ;;  %s7018_s17 = smov 96  }
  0x1e   :  { %v80_v29 = vrot.slane %v7152_v27, %v79_v26  ;;  %v76_v31 = vrot.slane %v7152_v27, %v75_v28  ;;  %vm322_vm2 = vcmp.eq.f32.partialorder %v318_v55, 0.0  ;;  %vm323_vm3 = vcmp.eq.f32.partialorder %v319_v56, 0.0  ;;  %v320_v61 = vld [vmem:[%s8274_s1 + $0x10] sm:$0xff]  ;;  %v321_v4 = vld [vmem:[%s8274_s1 + $0x18] sm:$0xff]  ;;  %s7017_s1 = smov 112   ;;  %s7019_s18 = smov 80  }
  0x1f   :  { %231 = vmatpush1.bf16.msra.mxu1 %v6833_v19  ;;  %v7236_v58 = vsel %vm322_vm2, -1e+09, %v8283_v23  ;;  %v7243_v0 = vsel %vm323_vm3, -1e+09, %v8283_v23  ;;  %vm324_vm5 = vcmp.eq.f32.partialorder %v320_v61, 0.0  ;;  %vm325_vm6 = vcmp.eq.f32.partialorder %v321_v4, 0.0 }
  0x20   :  { %6454 = vmatprep.subr.mxu1 %v8283_v23  ;;  %6437 = vmatpush3.bf16.msra.mxu0 %v6835_v48  ;;  %v7251_v7 = vsel %vm324_vm5, -1e+09, %v8283_v23  ;;  %v7256_v13 = vsel %vm325_vm6, -1e+09, %v8283_v23  ;;  %s7020_s19 = smov 64   ;;  %s7021_s20 = smov 48  }
  0x21   :  { %6438 = vmatprep.subr.bf16.mxu0 %v6836_v49  ;;  %s7022_s21 = smov 32   ;;  %s7023_s22 = smov 16   ;;  %vm1693_vm7 = vcmask 261248   ;;  %vm2399_vm8 = vcmask 392448   ;;  %vm3105_vm9 = vcmask 523648   ;;  %vm3811_vm10 = vcmask 654848  }
  0x22   :  { %249 = vmatmul.mubr.bf16.vlgmr.msra.gmra.mrb[0].mxu1 %v37_v12  ;;  %vm4517_vm11 = vcmask 786048   ;;  %vm5223_vm12 = vcmask 917248   ;;  %s7024_s27 = smov 8   ;;  %vm5929_vm13 = vcmask 1048448   ;;  %s7025_s11 = smov 24   ;;  %vm1368_vm14 = vcmask 130112  }
  0x23   :  { %258 = vmatprep.mubr.bf16.mxu1 %v7014_v2  ;;  %vm2078_vm15 = vcmask 195712   ;;  %s7026_s28 = smov 40   ;;  %vm4196_vm2 = vcmask 392512   ;;  %vm4902_vm3 = vcmask 458112  }
  0x24   :  { %6439 = vmatpush3.bf16.msra.mxu0 %v6836_v49 }
  0x25   :  { %6440 = vmatprep.subr.bf16.mxu0 %v6837_v50 }
  0x28   :  { %6441 = vmatpush3.bf16.msra.mxu0 %v6837_v50 }
  0x29   :  { %6442 = vmatprep.subr.bf16.mxu0 %v6838_v51 }
  0x2a   :  { %259 = vmatmul.mubr.bf16.gmra.mrb[4].mxu1 %v7140_v22 }
  0x2b   :  { %6456 = vmatprep.mubr.msk.f32.mxu1 %vm7016_vm0, %v8283_v23 }
  0x2c   :  { %6443 = vmatpush3.bf16.msra.mxu0 %v6838_v51 }
  0x2d   :  { %6444 = vmatprep.subr.bf16.mxu0 %v6839_v52 }
  0x30   :  { %6445 = vmatpush3.bf16.msra.mxu0 %v6839_v52 }
  0x31   :  { %6446 = vmatprep.subr.bf16.mxu0 %v6840_v53 }
  0x34   :  { %6447 = vmatpush3.bf16.msra.mxu0 %v6840_v53 }
  0x35   :  { %6448 = vmatprep.subr.bf16.mxu0 %v6841_v54 }
  0x38   :  { %6449 = vmatpush3.bf16.msra.mxu0 %v6841_v54 }
  0x39   :  { %6484 = vmatprep.subr.mxu0 %v8283_v23 }
  0x3b   :  { %6451 = vmatmul.mubr.bf16.vlgmr.msra.gmra.mrb[0].mxu0 %v7140_v22 }
  0x3c   :  { %6486 = vmatprep.mubr.msk.f32.mxu0 %vm7016_vm0, %v8283_v23 }
  0xf5   :  { %v250_v30 = vpop.f32.mrb[0].mxu1 }
  0xf6   :  { %v252_v32 = vpop.f32.mrb[1].mxu1  ;;  %v7161_v36 = vadd.f32 %v250_v30, %v76_v31 }
  0xf7   :  { %v7157_v33 = vadd.f32 %v252_v32, %v80_v29  ;;  %v254_v34 = vpop.f32.mrb[2].mxu1 }
  0xf8   :  { %v256_v35 = vpop.f32.mrb[3].mxu1  ;;  %v7172_v39 = vadd.f32 %v254_v34, %v76_v31 }
  0xf9   :  { %6455 = vmatpush3.xpose.msk.msra.mxu1 %vm330_vm1, %v7157_v33  ;;  %v7164_v37 = vadd.f32 %v256_v35, %v80_v29 }
  0xfa   :  { %6459 = vmatprep.subr.mxu1 %v8283_v23 }
  0xfc   :  { %6457 = vmatmul.mubr.msk.f32.vlgmr.msra.gmra.mrb[8].mxu1 %vm330_vm1, %v7161_v36 }
  0xfd   :  { %v260_v38 = vpop.f32.mrb[4].mxu1  ;;  %6460 = vmatpush3.xpose.msk.msra.mxu1 %vm330_vm1, %v7164_v37  ;;  %6461 = vmatprep.mubr.msk.f32.mxu1 %vm7016_vm0, %v8283_v23 }
  0xfe   :  { %v262_v40 = vpop.f32.mrb[5].mxu1  ;;  %6464 = vmatprep.subr.mxu1 %v8283_v23  ;;  %v7177_v43 = vadd.f32 %v260_v38, %v76_v31 }
  0xff   :  { %v7175_v41 = vadd.f32 %v262_v40, %v80_v29  ;;  %v264_v42 = vpop.f32.mrb[6].mxu1 }
 0x100   :  { %6462 = vmatmul.mubr.msk.f32.vlgmr.msra.gmra.mrb[10].mxu1 %vm330_vm1, %v7172_v39  ;;  %v266_v44 = vpop.f32.mrb[7].mxu1  ;;  %v7188_v46 = vadd.f32 %v264_v42, %v76_v31  ;;  %v83_v42 = vsub.s32 2, %v7146_v25 }
 0x101   :  { %6465 = vmatpush3.xpose.msk.msra.mxu1 %vm330_vm1, %v7175_v41  ;;  %v7183_v45 = vadd.f32 %v266_v44, %v80_v29  ;;  %6466 = vmatprep.mubr.msk.f32.mxu1 %vm7016_vm0, %v8283_v23 }
 0x102   :  { %6469 = vmatprep.subr.mxu1 %v8283_v23  ;;  %v84_v44 = vrot.slane %v7152_v27, %v83_v42 }
 0x104   :  { %6467 = vmatmul.mubr.msk.f32.vlgmr.msra.gmra.mrb[12].mxu1 %vm330_vm1, %v7177_v43 }
 0x105   :  { %6470 = vmatpush3.xpose.msk.msra.mxu1 %vm330_vm1, %v7183_v45  ;;  %6471 = vmatprep.mubr.msk.f32.mxu1 %vm7016_vm0, %v8283_v23 }
 0x106   :  { %6474 = vmatprep.subr.mxu1 %v8283_v23 }
 0x108   :  { %6472 = vmatmul.mubr.msk.f32.vlgmr.msra.gmra.mrb[14].mxu1 %vm330_vm1, %v7188_v46 }
 0x109   :  { %6476 = vmatprep.mubr.msk.f32.mxu1 %vm7016_vm0, %v8283_v23 }
 0x10e   :  { %v6452_v47 = vpop.f32.mrb[0].mxu0 }
 0x10f   :  { %v303_v48 = vpop.f32.mrb[1].mxu0  ;;  %v7268_v49 = vadd.f32 %v6452_v47, %v84_v44 }
 0x110   :  { %v7270_v50 = vadd.f32 %v303_v48, %v84_v44  ;;  %v6453_v51 = vpop.f32.mrb[2].mxu0 }
 0x111   :  { %v7274_v52 = vadd.f32 %v6453_v51, %v84_v44  ;;  %v306_v25 = vpop.f32.mrb[3].mxu0  ;;  %6485 = vmatpush3.msra.mxu0 %v7268_v49 }
 0x112   :  { %6475 = vmatpush3.msra.mxu1 %v7270_v50  ;;  %v7278_v53 = vadd.f32 %v306_v25, %v84_v44  ;;  %6494 = vmatprep.subr.mxu0 %v8283_v23 }
 0x113   :  { %6479 = vmatprep.subr.mxu1 %v8283_v23 }
 0x1cf   :  { %v403_v57 = vpop.f32.mrb[8].mxu1 }
 0x1d0   :  { %v635_v59 = vmul.f32 0.25, %v403_v57  ;;  %v6458_v60 = vpop.f32.mrb[9].mxu1 }
 0x1d2   :  { %v639_v62 = vadd.f32 %v635_v59, %v7236_v58 }
 0x1d3   :  { %v479_v63 = vpop.f32.mrb[10].mxu1 }
 0x1d4   :  { %v636_v1 = vmul.f32 0.25, %v479_v63  ;;  %v6463_v2 = vpop.f32.mrb[11].mxu1  ;;  %v644_v3 = vsel %vm643_vm4, %v639_v62, -inf }
 0x1d5   :  { %645 = vmax.xlane.f32.xlu0 %v644_v3 }
 0x1d6   :  { %v640_v5 = vadd.f32 %v636_v1, %v7243_v0 }
 0x1d7   :  { %v555_v6 = vpop.f32.mrb[12].mxu1 }
 0x1d8   :  { %v637_v8 = vmul.f32 0.25, %v555_v6  ;;  %v647_v9 = vsel %vm643_vm4, %v640_v5, -inf  ;;  %v6468_v10 = vpop.f32.mrb[13].mxu1 }
 0x1d9   :  { %648 = vmax.xlane.f32.xlu0 %v647_v9 }
 0x1da   :  { %v641_v11 = vadd.f32 %v637_v8, %v7251_v7 }
 0x1db   :  { %v631_v12 = vpop.f32.mrb[14].mxu1 }
 0x1dc   :  { %v638_v14 = vmul.f32 0.25, %v631_v12  ;;  %v650_v15 = vsel %vm643_vm4, %v641_v11, -inf  ;;  %v6473_v16 = vpop.f32.mrb[15].mxu1 }
 0x1dd   :  { %651 = vmax.xlane.f32.xlu1 %v650_v15 }
 0x1de   :  { %v642_v17 = vadd.f32 %v638_v14, %v7256_v13 }
 0x1e0   :  { %v653_v18 = vsel %vm643_vm4, %v642_v17, -inf }
 0x1e1   :  { %654 = vmax.xlane.f32.xlu1 %v653_v18 }
 0x262   :  { %v646_v19 = vpop.xlane.xlu0 %645 }
 0x263   :  { %v656_v20 = vsub.f32 %v639_v62, %v646_v19 }
 0x265   :  { %v660_v21 = vmul.f32 1.442695, %v656_v20 }
 0x266   :  { %v649_v22 = vpop.xlane.xlu0 %648 }
 0x267   :  { %6850 = vpow2.f32 %v660_v21  ;;  %v657_v24 = vsub.f32 %v640_v5, %v649_v22 }
 0x269   :  { %v662_v26 = vmul.f32 1.442695, %v657_v24 }
 0x26a   :  { %v652_v28 = vpop.xlane.xlu1 %651 }
 0x26b   :  { %6852 = vpow2.f32 %v662_v26  ;;  %v658_v29 = vsub.f32 %v641_v11, %v652_v28 }
 0x26d   :  { %v664_v30 = vmul.f32 1.442695, %v658_v29 }
 0x26e   :  { %v655_v27 = vpop.xlane.xlu1 %654 }
 0x26f   :  { %6854 = vpow2.f32 %v664_v30  ;;  %v659_v54 = vsub.f32 %v642_v17, %v655_v27 }
 0x271   :  { %v6851_v31 = vpop.eup %6850  ;;  %v666_v55 = vmul.f32 1.442695, %v659_v54 }
 0x272   :  { %v668_v32 = vsel %vm643_vm4, %v6851_v31, 0.0 }
 0x273   :  { %669 = vadd.xlane.f32.xlu0 %v668_v32  ;;  %6856 = vpow2.f32 %v666_v55 }
 0x275   :  { %v6853_v34 = vpop.eup %6852 }
 0x276   :  { %v671_v35 = vsel %vm643_vm4, %v6853_v34, 0.0 }
 0x277   :  { %672 = vadd.xlane.f32.xlu1 %v671_v35 }
 0x279   :  { %v6855_v38 = vpop.eup %6854 }
 0x27a   :  { %v674_v40 = vsel %vm643_vm4, %v6855_v38, 0.0 }
 0x27b   :  { %675 = vadd.xlane.f32.xlu0 %v674_v40 }
 0x27d   :  { %v6857_v56 = vpop.eup %6856 }
 0x27e   :  { %v677_v57 = vsel %vm643_vm4, %v6857_v56, 0.0 }
 0x288   :  { %1068 = vrot.lane.b32.xlu1 %v7164_v37, %s7017_s1 }
 0x28c   :  { %988 = vrot.lane.b32.xlu1 %v7161_v36, %s7017_s1 }
 0x290   :  { %1066 = vrot.lane.b32.xlu1 %v7172_v39, %s7017_s1 }
 0x291   :  { %990 = vrot.lane.b32.xlu0 %v7157_v33, %s7017_s1 }
 0x295   :  { %1146 = vrot.lane.b32.xlu0 %v7175_v41, %s7017_s1 }
 0x299   :  { %1144 = vrot.lane.b32.xlu0 %v7177_v43, %s7017_s1 }
 0x2b4   :  { %678 = vadd.xlane.f32.xlu1 %v677_v57 }
 0x2c5   :  { %1224 = vrot.lane.b32.xlu1 %v7183_v45, %s7017_s1 }
 0x2c9   :  { %1222 = vrot.lane.b32.xlu1 %v7188_v46, %s7017_s1 }
 0x300   :  { %v670_v59 = vpop.xlane.xlu0 %669 }
 0x301   :  { %6858 = vrcp.f32 %v670_v59 }
 0x304   :  { %v673_v60 = vpop.xlane.xlu1 %672 }
 0x305   :  { %6860 = vrcp.f32 %v673_v60 }
 0x308   :  { %v676_v61 = vpop.xlane.xlu0 %675  ;;  %v1069_v5 = vpop.permute.xlu1 %1068 }
 0x309   :  { %6862 = vrcp.f32 %v676_v61 }
 0x30b   :  { %v6859_v62 = vpop.eup %6858 }
 0x30c   :  { %v681_v63 = vmul.f32 %v6859_v62, %v6851_v31  ;;  %v991_v3 = vpop.permute.xlu0 %990  ;;  %v989_v9 = vpop.permute.xlu1 %988 }
 0x30e   :  { %6477 = vmatmul.mubr.msk.f32.vlgmr.msra.gmra.mrb[16].mxu1 %vm643_vm4, %v681_v63  ;;  %688 = vst.msk [vmem:[%s8282_s9] sm:$0xff] %vm643_vm4, %v681_v63 }
 0x30f   :  { %v6861_v1 = vpop.eup %6860  ;;  %6480 = vmatpush3.msra.mxu1 %v7278_v53  ;;  %6481 = vmatprep.mubr.msk.f32.mxu1 %vm7016_vm0, %v8283_v23 }
 0x310   :  { %v683_v2 = vmul.f32 %v6861_v1, %v6853_v34  ;;  %6489 = vmatprep.subr.mxu1 %v8283_v23  ;;  %v1147_v8 = vpop.permute.xlu0 %1146  ;;  %v1067_v11 = vpop.permute.xlu1 %1066 }
 0x312   :  { %6482 = vmatmul.mubr.msk.f32.vlgmr.msra.gmra.mrb[18].mxu1 %vm643_vm4, %v683_v2  ;;  %689 = vst.msk [vmem:[%s8282_s9 + $0x8] sm:$0xff] %vm643_vm4, %v683_v2 }
 0x313   :  { %v6863_v4 = vpop.eup %6862  ;;  %6490 = vmatpush3.msra.mxu1 %v7274_v52  ;;  %6491 = vmatprep.mubr.msk.f32.mxu1 %vm7016_vm0, %v8283_v23 }
 0x314   :  { %v685_v6 = vmul.f32 %v6863_v4, %v6855_v38  ;;  %6499 = vmatprep.subr.mxu1 %v8283_v23  ;;  %v1145_v10 = vpop.permute.xlu0 %1144 }
 0x316   :  { %6487 = vmatmul.mubr.msk.f32.vlgmr.msra.gmra.mrb[4].mxu0 %vm643_vm4, %v685_v6  ;;  %690 = vst.msk [vmem:[%s8282_s9 + $0x10] sm:$0xff] %vm643_vm4, %v685_v6 }
 0x317   :  { %6495 = vmatpush3.xpose.msk.msra.mxu0 %vm330_vm1, %v991_v3  ;;  %6496 = vmatprep.mubr.msk.f32.mxu0 %vm7016_vm0, %v8283_v23 }
 0x318   :  { %6504 = vmatprep.subr.mxu0 %v8283_v23 }
 0x31a   :  { %6497 = vmatmul.mubr.msk.f32.vlgmr.msra.gmra.mrb[6].mxu0 %vm330_vm1, %v989_v9 }
 0x31b   :  { %6505 = vmatpush3.xpose.msk.msra.mxu0 %vm330_vm1, %v1147_v8  ;;  %6506 = vmatprep.mubr.msk.f32.mxu0 %vm7016_vm0, %v8283_v23 }
 0x31c   :  { %6514 = vmatprep.subr.mxu0 %v8283_v23 }
 0x31e   :  { %6507 = vmatmul.mubr.msk.f32.vlgmr.msra.gmra.mrb[8].mxu0 %vm330_vm1, %v1145_v10 }
 0x31f   :  { %6516 = vmatprep.mubr.msk.f32.mxu0 %vm7016_vm0, %v8283_v23 }
 0x341   :  { %v679_v12 = vpop.xlane.xlu1 %678 }
 0x342   :  { %6864 = vrcp.f32 %v679_v12 }
 0x345   :  { %v1225_v16 = vpop.permute.xlu1 %1224 }
 0x349   :  { %v1223_v17 = vpop.permute.xlu1 %1222 }
 0x34c   :  { %v6865_v14 = vpop.eup %6864 }
 0x34d   :  { %v687_v15 = vmul.f32 %v6865_v14, %v6857_v56 }
 0x34f   :  { %6492 = vmatmul.mubr.msk.f32.vlgmr.msra.gmra.mrb[20].mxu1 %vm643_vm4, %v687_v15  ;;  %691 = vst.msk [vmem:[%s8282_s9 + $0x18] sm:$0xff] %vm643_vm4, %v687_v15 }
 0x350   :  { %6500 = vmatpush3.xpose.msk.msra.mxu1 %vm330_vm1, %v1069_v5  ;;  %6501 = vmatprep.mubr.msk.f32.mxu1 %vm7016_vm0, %v8283_v23 }
 0x351   :  { %6509 = vmatprep.subr.mxu1 %v8283_v23 }
 0x353   :  { %6502 = vmatmul.mubr.msk.f32.vlgmr.msra.gmra.mrb[22].mxu1 %vm330_vm1, %v1067_v11 }
 0x354   :  { %6510 = vmatpush3.xpose.msk.msra.mxu1 %vm330_vm1, %v1225_v16  ;;  %6511 = vmatprep.mubr.msk.f32.mxu1 %vm7016_vm0, %v8283_v23 }
 0x355   :  { %6519 = vmatprep.subr.mxu1 %v8283_v23 }
 0x357   :  { %6512 = vmatmul.mubr.msk.f32.vlgmr.msra.gmra.mrb[24].mxu1 %vm330_vm1, %v1223_v17 }
 0x358   :  { %6521 = vmatprep.mubr.msk.f32.mxu1 %vm7016_vm0, %v8283_v23 }
 0x3e1   :  { %v761_v18 = vpop.f32.mrb[16].mxu1 }
 0x3e2   :  { %984 = vst.msk [vmem:[#allocation2] sm:$0xff] %vm330_vm1, %v761_v18  ;;  %v6478_v19 = vpop.f32.mrb[17].mxu1 }
 0x3e5   :  { %v834_v20 = vpop.f32.mrb[18].mxu1 }
 0x3e6   :  { %985 = vst.msk [vmem:[#allocation2 + $0x8] sm:$0xff] %vm330_vm1, %v834_v20  ;;  %v6483_v21 = vpop.f32.mrb[19].mxu1 }
 0x3e9   :  { %v907_v22 = vpop.f32.mrb[4].mxu0 }
 0x3ea   :  { %986 = vst.msk [vmem:[#allocation2 + $0x10] sm:$0xff] %vm330_vm1, %v907_v22  ;;  %v6488_v24 = vpop.f32.mrb[5].mxu0 }
 0x3ed   :  { %v1062_v26 = vpop.f32.mrb[6].mxu0 }
 0x3ee   :  { %v1300_v28 = vmul.f32 0.25, %v1062_v26  ;;  %v6498_v29 = vpop.f32.mrb[7].mxu0 }
 0x3f0   :  { %v1304_v30 = vadd.f32 %v1300_v28, %v7236_v58 }
 0x3f1   :  { %v1218_v31 = vpop.f32.mrb[8].mxu0 }
 0x3f2   :  { %v1302_v32 = vmul.f32 0.25, %v1218_v31  ;;  %v6508_v34 = vpop.f32.mrb[9].mxu0  ;;  %v1308_v35 = vsel %vm643_vm4, %v1304_v30, -inf }
 0x3f3   :  { %1309 = vmax.xlane.f32.xlu0 %v1308_v35 }
 0x3f4   :  { %v1306_v38 = vadd.f32 %v1302_v32, %v7251_v7 }
 0x3f6   :  { %v1314_v40 = vsel %vm643_vm4, %v1306_v38, -inf }
 0x3f7   :  { %1315 = vmax.xlane.f32.xlu0 %v1314_v40 }
 0x422   :  { %v980_v42 = vpop.f32.mrb[20].mxu1 }
 0x423   :  { %987 = vst.msk [vmem:[#allocation2 + $0x18] sm:$0xff] %vm330_vm1, %v980_v42  ;;  %v6493_v44 = vpop.f32.mrb[21].mxu1 }
 0x426   :  { %v1140_v47 = vpop.f32.mrb[22].mxu1 }
 0x427   :  { %v1301_v48 = vmul.f32 0.25, %v1140_v47  ;;  %v6503_v51 = vpop.f32.mrb[23].mxu1 }
 0x429   :  { %v1305_v25 = vadd.f32 %v1301_v48, %v7243_v0 }
 0x42a   :  { %v1296_v27 = vpop.f32.mrb[24].mxu1 }
 0x42b   :  { %v1303_v54 = vmul.f32 0.25, %v1296_v27  ;;  %v6513_v55 = vpop.f32.mrb[25].mxu1  ;;  %v1311_v56 = vsel %vm643_vm4, %v1305_v25, -inf }
 0x42c   :  { %1312 = vmax.xlane.f32.xlu1 %v1311_v56 }
 0x42d   :  { %v1307_v57 = vadd.f32 %v1303_v54, %v7256_v13 }
 0x42f   :  { %v1317_v59 = vsel %vm643_vm4, %v1307_v57, -inf }
 0x430   :  { %1318 = vmax.xlane.f32.xlu0 %v1317_v59 }
 0x43d   :  { %1450 = vrot.lane.b32.xlu1 %v7278_v53, %s7017_s1 }
 0x441   :  { %1526 = vrot.lane.b32.xlu1 %v7268_v49, %s7017_s1 }
 0x445   :  { %1602 = vrot.lane.b32.xlu1 %v7274_v52, %s7017_s1 }
 0x446   :  { %1374 = vrot.lane.b32.xlu0 %v7270_v50, %s7017_s1 }
 0x449   :  { %1778 = vrot.lane.b32.xlu1 %v7164_v37, %s7018_s17 }
 0x44a   :  { %1700 = vrot.lane.b32.xlu0 %v7157_v33, %s7018_s17 }
 0x480   :  { %v1310_v60 = vpop.xlane.xlu0 %1309 }
 0x481   :  { %v1320_v61 = vsub.f32 %v1304_v30, %v1310_v60 }
 0x483   :  { %v1324_v62 = vmul.f32 1.442695, %v1320_v61 }
 0x484   :  { %v1316_v63 = vpop.xlane.xlu0 %1315 }
 0x485   :  { %6866 = vpow2.f32 %v1324_v62  ;;  %v1322_v1 = vsub.f32 %v1306_v38, %v1316_v63 }
 0x487   :  { %v1328_v2 = vmul.f32 1.442695, %v1322_v1 }
 0x489   :  { %6868 = vpow2.f32 %v1328_v2 }
 0x48f   :  { %v6867_v3 = vpop.eup %6866 }
 0x490   :  { %v1332_v4 = vsel %vm643_vm4, %v6867_v3, 0.0 }
 0x491   :  { %1333 = vadd.xlane.f32.xlu0 %v1332_v4 }
 0x493   :  { %v6869_v5 = vpop.eup %6868 }
 0x494   :  { %v1338_v6 = vsel %vm643_vm4, %v6869_v5, 0.0 }
 0x495   :  { %1339 = vadd.xlane.f32.xlu0 %v1338_v6 }
 0x4ab   :  { %1698 = vrot.lane.b32.xlu0 %v7161_v36, %s7018_s17 }
 0x4af   :  { %1856 = vrot.lane.b32.xlu0 %v7175_v41, %s7018_s17 }
 0x4b3   :  { %1854 = vrot.lane.b32.xlu0 %v7177_v43, %s7018_s17 }
 0x4b9   :  { %v1313_v8 = vpop.xlane.xlu1 %1312 }
 0x4ba   :  { %v1321_v9 = vsub.f32 %v1305_v25, %v1313_v8 }
 0x4bc   :  { %v1326_v10 = vmul.f32 1.442695, %v1321_v9 }
 0x4bd   :  { %v1451_v11 = vpop.permute.xlu1 %1450  ;;  %v1319_v12 = vpop.xlane.xlu0 %1318 }
 0x4be   :  { %6870 = vpow2.f32 %v1326_v10  ;;  %6520 = vmatpush3.msra.mxu1 %v1451_v11  ;;  %v1323_v17 = vsub.f32 %v1307_v57, %v1319_v12 }
 0x4bf   :  { %6529 = vmatprep.subr.mxu1 %v8283_v23 }
 0x4c0   :  { %v1330_v18 = vmul.f32 1.442695, %v1323_v17 }
 0x4c1   :  { %v1375_v14 = vpop.permute.xlu0 %1374  ;;  %v1527_v29 = vpop.permute.xlu1 %1526 }
 0x4c2   :  { %6515 = vmatpush3.msra.mxu0 %v1375_v14  ;;  %6872 = vpow2.f32 %v1330_v18 }
 0x4c3   :  { %6524 = vmatprep.subr.mxu0 %v8283_v23 }
 0x4c5   :  { %v1701_v21 = vpop.permute.xlu0 %1700  ;;  %v1603_v38 = vpop.permute.xlu1 %1602 }
 0x4c8   :  { %v6871_v15 = vpop.eup %6870 }
 0x4c9   :  { %v1335_v16 = vsel %vm643_vm4, %v6871_v15, 0.0  ;;  %v1779_v40 = vpop.permute.xlu1 %1778 }
 0x4ca   :  { %1336 = vadd.xlane.f32.xlu1 %v1335_v16 }
 0x4cc   :  { %v6873_v19 = vpop.eup %6872 }
 0x4cd   :  { %v1341_v20 = vsel %vm643_vm4, %v6873_v19, 0.0 }
 0x4db   :  { %1776 = vrot.lane.b32.xlu1 %v7172_v39, %s7018_s17 }
 0x4ff   :  { %1342 = vadd.xlane.f32.xlu1 %v1341_v20 }
 0x510   :  { %1934 = vrot.lane.b32.xlu1 %v7183_v45, %s7018_s17 }
 0x514   :  { %1932 = vrot.lane.b32.xlu1 %v7188_v46, %s7018_s17 }
 0x51e   :  { %v1334_v22 = vpop.xlane.xlu0 %1333 }
 0x51f   :  { %6874 = vrcp.f32 %v1334_v22 }
 0x522   :  { %v1340_v24 = vpop.xlane.xlu0 %1339 }
 0x523   :  { %6876 = vrcp.f32 %v1340_v24 }
 0x526   :  { %v1699_v31 = vpop.permute.xlu0 %1698 }
 0x529   :  { %v6875_v26 = vpop.eup %6874 }
 0x52a   :  { %v7389_v28 = vmul.f32 %v6875_v26, %v6867_v3  ;;  %v1857_v34 = vpop.permute.xlu0 %1856 }
 0x52c   :  { %6517 = vmatmul.mubr.msk.f32.vlgmr.msra.gmra.mrb[10].mxu0 %vm643_vm4, %v7389_v28 }
 0x52d   :  { %v6877_v30 = vpop.eup %6876  ;;  %6525 = vmatpush3.msra.mxu0 %v1527_v29  ;;  %6526 = vmatprep.mubr.msk.f32.mxu0 %vm7016_vm0, %v8283_v23 }
 0x52e   :  { %v7395_v32 = vmul.f32 %v6877_v30, %v6869_v5  ;;  %6534 = vmatprep.subr.mxu0 %v8283_v23  ;;  %v1855_v35 = vpop.permute.xlu0 %1854 }
 0x530   :  { %6527 = vmatmul.mubr.msk.f32.vlgmr.msra.gmra.mrb[12].mxu0 %vm643_vm4, %v7395_v32 }
 0x531   :  { %6536 = vmatprep.mubr.msk.f32.mxu0 %vm7016_vm0, %v8283_v23 }
 0x534   :  { %6535 = vmatpush3.xpose.msk.msra.mxu0 %vm330_vm1, %v1701_v21 }
 0x535   :  { %6544 = vmatprep.subr.mxu0 %v8283_v23 }
 0x537   :  { %6537 = vmatmul.mubr.msk.f32.vlgmr.msra.gmra.mrb[14].mxu0 %vm330_vm1, %v1699_v31 }
 0x538   :  { %6545 = vmatpush3.xpose.msk.msra.mxu0 %vm330_vm1, %v1857_v34  ;;  %6546 = vmatprep.mubr.msk.f32.mxu0 %vm7016_vm0, %v8283_v23 }
 0x539   :  { %6554 = vmatprep.subr.mxu0 %v8283_v23 }
 0x53b   :  { %6547 = vmatmul.mubr.msk.f32.vlgmr.msra.gmra.mrb[16].mxu0 %vm330_vm1, %v1855_v35 }
 0x53c   :  { %6556 = vmatprep.mubr.msk.f32.mxu0 %vm7016_vm0, %v8283_v23 }
 0x557   :  { %v1337_v42 = vpop.xlane.xlu1 %1336 }
 0x558   :  { %6878 = vrcp.f32 %v1337_v42 }
 0x55b   :  { %v1777_v48 = vpop.permute.xlu1 %1776 }
 0x562   :  { %v6879_v44 = vpop.eup %6878 }
 0x563   :  { %v7412_v47 = vmul.f32 %v6879_v44, %v6871_v15 }
 0x565   :  { %6522 = vmatmul.mubr.msk.f32.vlgmr.msra.gmra.mrb[26].mxu1 %vm643_vm4, %v7412_v47 }
 0x566   :  { %6530 = vmatpush3.msra.mxu1 %v1603_v38  ;;  %6531 = vmatprep.mubr.msk.f32.mxu1 %vm7016_vm0, %v8283_v23 }
 0x567   :  { %6539 = vmatprep.subr.mxu1 %v8283_v23 }
 0x58c   :  { %v1343_v51 = vpop.xlane.xlu1 %1342 }
 0x58d   :  { %6880 = vrcp.f32 %v1343_v51 }
 0x590   :  { %v1935_v54 = vpop.permute.xlu1 %1934 }
 0x594   :  { %v1933_v55 = vpop.permute.xlu1 %1932 }
 0x597   :  { %v6881_v25 = vpop.eup %6880 }
 0x598   :  { %v7419_v27 = vmul.f32 %v6881_v25, %v6873_v19 }
 0x59a   :  { %6532 = vmatmul.mubr.msk.f32.vlgmr.msra.gmra.mrb[28].mxu1 %vm643_vm4, %v7419_v27 }
 0x59b   :  { %6540 = vmatpush3.xpose.msk.msra.mxu1 %vm330_vm1, %v1779_v40  ;;  %6541 = vmatprep.mubr.msk.f32.mxu1 %vm7016_vm0, %v8283_v23 }
 0x59c   :  { %6549 = vmatprep.subr.mxu1 %v8283_v23 }
 0x59e   :  { %6542 = vmatmul.mubr.msk.f32.vlgmr.msra.gmra.mrb[30].mxu1 %vm330_vm1, %v1777_v48 }
 0x59f   :  { %6550 = vmatpush3.xpose.msk.msra.mxu1 %vm330_vm1, %v1935_v54  ;;  %6551 = vmatprep.mubr.msk.f32.mxu1 %vm7016_vm0, %v8283_v23 }
 0x5a0   :  { %6559 = vmatprep.subr.mxu1 %v8283_v23 }
 0x5a2   :  { %6552 = vmatmul.mubr.msk.f32.vlgmr.msra.gmra.mrb[32].mxu1 %vm330_vm1, %v1933_v55 }
 0x5a3   :  { %6561 = vmatprep.mubr.msk.f32.mxu1 %vm7016_vm0, %v8283_v23 }
 0x5ff   :  { %v7435_v56 = vpop.f32.mrb[10].mxu0 }
 0x600   :  { %v6518_v57 = vpop.f32.mrb[11].mxu0 }
 0x603   :  { %v7437_v59 = vpop.f32.mrb[12].mxu0 }
 0x604   :  { %v6528_v60 = vpop.f32.mrb[13].mxu0 }
 0x60a   :  { %v1772_v61 = vpop.f32.mrb[14].mxu0 }
 0x60b   :  { %v2010_v62 = vmul.f32 0.25, %v1772_v61  ;;  %v6538_v63 = vpop.f32.mrb[15].mxu0 }
 0x60d   :  { %v2014_v1 = vadd.f32 %v2010_v62, %v7236_v58 }
 0x60e   :  { %v1928_v2 = vpop.f32.mrb[16].mxu0 }
 0x60f   :  { %v2012_v3 = vmul.f32 0.25, %v1928_v2  ;;  %v6548_v4 = vpop.f32.mrb[17].mxu0  ;;  %v2018_v5 = vsel %vm643_vm4, %v2014_v1, -inf }
 0x610   :  { %2019 = vmax.xlane.f32.xlu0 %v2018_v5 }
 0x611   :  { %v2016_v6 = vadd.f32 %v2012_v3, %v7251_v7 }
 0x613   :  { %v2024_v8 = vsel %vm643_vm4, %v2016_v6, -inf }
 0x614   :  { %2025 = vmax.xlane.f32.xlu0 %v2024_v8 }
 0x638   :  { %v7443_v9 = vpop.f32.mrb[26].mxu1 }
 0x639   :  { %v6523_v10 = vpop.f32.mrb[27].mxu1 }
 0x66d   :  { %v7445_v11 = vpop.f32.mrb[28].mxu1 }
 0x66e   :  { %v6533_v12 = vpop.f32.mrb[29].mxu1 }
 0x671   :  { %v1850_v14 = vpop.f32.mrb[30].mxu1 }
 0x672   :  { %v2011_v15 = vmul.f32 0.25, %v1850_v14  ;;  %v6543_v16 = vpop.f32.mrb[31].mxu1 }
 0x674   :  { %v2015_v17 = vadd.f32 %v2011_v15, %v7243_v0 }
 0x675   :  { %v2006_v18 = vpop.f32.mrb[32].mxu1 }
 0x676   :  { %v2013_v19 = vmul.f32 0.25, %v2006_v18  ;;  %v6553_v20 = vpop.f32.mrb[33].mxu1  ;;  %v2021_v21 = vsel %vm643_vm4, %v2015_v17, -inf }
 0x677   :  { %2022 = vmax.xlane.f32.xlu1 %v2021_v21 }
 0x678   :  { %v2017_v22 = vadd.f32 %v2013_v19, %v7256_v13 }
 0x67a   :  { %v2027_v24 = vsel %vm643_vm4, %v2017_v22, -inf }
 0x67b   :  { %2028 = vmax.xlane.f32.xlu0 %v2027_v24 }
 0x688   :  { %2158 = vrot.lane.b32.xlu1 %v7278_v53, %s7018_s17 }
 0x68c   :  { %2233 = vrot.lane.b32.xlu1 %v7268_v49, %s7018_s17 }
 0x690   :  { %2308 = vrot.lane.b32.xlu1 %v7274_v52, %s7018_s17 }
 0x691   :  { %2083 = vrot.lane.b32.xlu0 %v7270_v50, %s7018_s17 }
 0x694   :  { %2484 = vrot.lane.b32.xlu1 %v7164_v37, %s7019_s18 }
 0x695   :  { %2406 = vrot.lane.b32.xlu0 %v7157_v33, %s7019_s18 }
 0x69d   :  { %v2020_v26 = vpop.xlane.xlu0 %2019 }
 0x69e   :  { %v2030_v29 = vsub.f32 %v2014_v1, %v2020_v26 }
 0x6a0   :  { %v2034_v31 = vmul.f32 1.442695, %v2030_v29 }
 0x6a1   :  { %v2026_v30 = vpop.xlane.xlu0 %2025 }
 0x6a2   :  { %v2032_v34 = vsub.f32 %v2016_v6, %v2026_v30  ;;  %6882 = vpow2.f32 %v2034_v31 }
 0x6a4   :  { %v2038_v35 = vmul.f32 1.442695, %v2032_v34 }
 0x6a6   :  { %6884 = vpow2.f32 %v2038_v35 }
 0x6ac   :  { %v6883_v38 = vpop.eup %6882 }
 0x6ad   :  { %v2042_v40 = vsel %vm643_vm4, %v6883_v38, 0.0 }
 0x6b0   :  { %v6885_v42 = vpop.eup %6884 }
 0x6b1   :  { %v2048_v44 = vsel %vm643_vm4, %v6885_v42, 0.0 }
 0x6b4   :  { %2043 = vadd.xlane.f32.xlu0 %v2042_v40 }
 0x6b8   :  { %2049 = vadd.xlane.f32.xlu0 %v2048_v44 }
 0x6ce   :  { %2404 = vrot.lane.b32.xlu0 %v7161_v36, %s7019_s18 }
 0x6d2   :  { %2562 = vrot.lane.b32.xlu0 %v7175_v41, %s7019_s18 }
 0x6d6   :  { %2560 = vrot.lane.b32.xlu0 %v7177_v43, %s7019_s18 }
 0x704   :  { %v2023_v48 = vpop.xlane.xlu1 %2022 }
 0x705   :  { %v2031_v51 = vsub.f32 %v2015_v17, %v2023_v48 }
 0x707   :  { %v2036_v25 = vmul.f32 1.442695, %v2031_v51 }
 0x708   :  { %v2159_v54 = vpop.permute.xlu1 %2158  ;;  %v2029_v55 = vpop.xlane.xlu0 %2028 }
 0x709   :  { %6886 = vpow2.f32 %v2036_v25  ;;  %6560 = vmatpush3.msra.mxu1 %v2159_v54  ;;  %v2033_v62 = vsub.f32 %v2017_v22, %v2029_v55 }
 0x70a   :  { %6569 = vmatprep.subr.mxu1 %v8283_v23 }
 0x70b   :  { %v2040_v63 = vmul.f32 1.442695, %v2033_v62 }
 0x70c   :  { %v2084_v57 = vpop.permute.xlu0 %2083  ;;  %v2234_v10 = vpop.permute.xlu1 %2233 }
 0x70d   :  { %6555 = vmatpush3.msra.mxu0 %v2084_v57  ;;  %6888 = vpow2.f32 %v2040_v63 }
 0x70e   :  { %6564 = vmatprep.subr.mxu0 %v8283_v23 }
 0x710   :  { %v2407_v1 = vpop.permute.xlu0 %2406  ;;  %v2309_v18 = vpop.permute.xlu1 %2308 }
 0x713   :  { %v6887_v60 = vpop.eup %6886 }
 0x714   :  { %v2045_v61 = vsel %vm643_vm4, %v6887_v60, 0.0  ;;  %v2485_v19 = vpop.permute.xlu1 %2484 }
 0x715   :  { %2046 = vadd.xlane.f32.xlu1 %v2045_v61 }
 0x717   :  { %v6889_v4 = vpop.eup %6888 }
 0x718   :  { %v2051_v5 = vsel %vm643_vm4, %v6889_v4, 0.0 }
 0x726   :  { %2482 = vrot.lane.b32.xlu1 %v7172_v39, %s7019_s18 }
 0x741   :  { %v2044_v2 = vpop.xlane.xlu0 %2043 }
 0x742   :  { %6890 = vrcp.f32 %v2044_v2 }
 0x745   :  { %v2050_v3 = vpop.xlane.xlu0 %2049 }
 0x746   :  { %6892 = vrcp.f32 %v2050_v3 }
 0x749   :  { %v2405_v14 = vpop.permute.xlu0 %2404 }
 0x74a   :  { %2052 = vadd.xlane.f32.xlu1 %v2051_v5 }
 0x74c   :  { %v6891_v6 = vpop.eup %6890 }
 0x74d   :  { %v7477_v8 = vmul.f32 %v6891_v6, %v6883_v38  ;;  %v2563_v16 = vpop.permute.xlu0 %2562 }
 0x74f   :  { %6557 = vmatmul.mubr.msk.f32.vlgmr.msra.gmra.mrb[18].mxu0 %vm643_vm4, %v7477_v8 }
 0x750   :  { %v6893_v12 = vpop.eup %6892  ;;  %6565 = vmatpush3.msra.mxu0 %v2234_v10  ;;  %6566 = vmatprep.mubr.msk.f32.mxu0 %vm7016_vm0, %v8283_v23 }
 0x751   :  { %v7483_v15 = vmul.f32 %v6893_v12, %v6885_v42  ;;  %6574 = vmatprep.subr.mxu0 %v8283_v23  ;;  %v2561_v17 = vpop.permute.xlu0 %2560 }
 0x753   :  { %6567 = vmatmul.mubr.msk.f32.vlgmr.msra.gmra.mrb[20].mxu0 %vm643_vm4, %v7483_v15 }
 0x754   :  { %6576 = vmatprep.mubr.msk.f32.mxu0 %vm7016_vm0, %v8283_v23 }
 0x757   :  { %6575 = vmatpush3.xpose.msk.msra.mxu0 %vm330_vm1, %v2407_v1 }
 0x758   :  { %6584 = vmatprep.subr.mxu0 %v8283_v23 }
 0x75a   :  { %6577 = vmatmul.mubr.msk.f32.vlgmr.msra.gmra.mrb[22].mxu0 %vm330_vm1, %v2405_v14 }
 0x75b   :  { %6585 = vmatpush3.xpose.msk.msra.mxu0 %vm330_vm1, %v2563_v16  ;;  %2640 = vrot.lane.b32.xlu1 %v7183_v45, %s7019_s18 }
 0x75c   :  { %6586 = vmatprep.mubr.msk.f32.mxu0 %vm7016_vm0, %v8283_v23  ;;  %6594 = vmatprep.subr.mxu0 %v8283_v23 }
 0x75e   :  { %6587 = vmatmul.mubr.msk.f32.vlgmr.msra.gmra.mrb[24].mxu0 %vm330_vm1, %v2561_v17 }
 0x75f   :  { %2638 = vrot.lane.b32.xlu1 %v7188_v46, %s7019_s18  ;;  %6596 = vmatprep.mubr.msk.f32.mxu0 %vm7016_vm0, %v8283_v23 }
 0x7a2   :  { %v2047_v20 = vpop.xlane.xlu1 %2046 }
 0x7a3   :  { %6894 = vrcp.f32 %v2047_v20 }
 0x7a6   :  { %v2483_v24 = vpop.permute.xlu1 %2482 }
 0x7ad   :  { %v6895_v21 = vpop.eup %6894 }
 0x7ae   :  { %v7504_v22 = vmul.f32 %v6895_v21, %v6887_v60 }
 0x7b0   :  { %6562 = vmatmul.mubr.msk.f32.vlgmr.msra.gmra.mrb[34].mxu1 %vm643_vm4, %v7504_v22 }
 0x7b1   :  { %6570 = vmatpush3.msra.mxu1 %v2309_v18  ;;  %6571 = vmatprep.mubr.msk.f32.mxu1 %vm7016_vm0, %v8283_v23 }
 0x7b2   :  { %6579 = vmatprep.subr.mxu1 %v8283_v23 }
 0x7d7   :  { %v2053_v26 = vpop.xlane.xlu1 %2052 }
 0x7d8   :  { %6896 = vrcp.f32 %v2053_v26 }
 0x7db   :  { %v2641_v31 = vpop.permute.xlu1 %2640 }
 0x7df   :  { %v2639_v34 = vpop.permute.xlu1 %2638 }
 0x7e2   :  { %v6897_v29 = vpop.eup %6896 }
 0x7e3   :  { %v7511_v30 = vmul.f32 %v6897_v29, %v6889_v4 }
 0x7e5   :  { %6572 = vmatmul.mubr.msk.f32.vlgmr.msra.gmra.mrb[36].mxu1 %vm643_vm4, %v7511_v30 }
 0x7e6   :  { %6580 = vmatpush3.xpose.msk.msra.mxu1 %vm330_vm1, %v2485_v19  ;;  %6581 = vmatprep.mubr.msk.f32.mxu1 %vm7016_vm0, %v8283_v23 }
 0x7e7   :  { %6589 = vmatprep.subr.mxu1 %v8283_v23 }
 0x7e9   :  { %6582 = vmatmul.mubr.msk.f32.vlgmr.msra.gmra.mrb[38].mxu1 %vm330_vm1, %v2483_v24 }
 0x7ea   :  { %6590 = vmatpush3.xpose.msk.msra.mxu1 %vm330_vm1, %v2641_v31  ;;  %6591 = vmatprep.mubr.msk.f32.mxu1 %vm7016_vm0, %v8283_v23 }
 0x7eb   :  { %6599 = vmatprep.subr.mxu1 %v8283_v23 }
 0x7ed   :  { %6592 = vmatmul.mubr.msk.f32.vlgmr.msra.gmra.mrb[40].mxu1 %vm330_vm1, %v2639_v34 }
 0x7ee   :  { %6601 = vmatprep.mubr.msk.f32.mxu1 %vm7016_vm0, %v8283_v23 }
 0x822   :  { %v7527_v35 = vpop.f32.mrb[18].mxu0 }
 0x823   :  { %v6558_v38 = vpop.f32.mrb[19].mxu0 }
 0x826   :  { %v7529_v40 = vpop.f32.mrb[20].mxu0 }
 0x827   :  { %v6568_v42 = vpop.f32.mrb[21].mxu0 }
 0x82d   :  { %v2478_v44 = vpop.f32.mrb[22].mxu0 }
 0x82e   :  { %v2716_v48 = vmul.f32 0.25, %v2478_v44  ;;  %v6578_v51 = vpop.f32.mrb[23].mxu0 }
 0x830   :  { %v2720_v25 = vadd.f32 %v2716_v48, %v7236_v58 }
 0x831   :  { %v2634_v54 = vpop.f32.mrb[24].mxu0 }
 0x832   :  { %v2718_v55 = vmul.f32 0.25, %v2634_v54  ;;  %v6588_v57 = vpop.f32.mrb[25].mxu0  ;;  %v2724_v60 = vsel %vm643_vm4, %v2720_v25, -inf }
 0x833   :  { %2725 = vmax.xlane.f32.xlu0 %v2724_v60 }
 0x834   :  { %v2722_v61 = vadd.f32 %v2718_v55, %v7251_v7 }
 0x836   :  { %v2730_v62 = vsel %vm643_vm4, %v2722_v61, -inf }
 0x837   :  { %2731 = vmax.xlane.f32.xlu0 %v2730_v62 }
 0x883   :  { %v7535_v63 = vpop.f32.mrb[34].mxu1 }
 0x884   :  { %v6563_v1 = vpop.f32.mrb[35].mxu1 }
 0x8b8   :  { %v7537_v2 = vpop.f32.mrb[36].mxu1 }
 0x8b9   :  { %v6573_v3 = vpop.f32.mrb[37].mxu1 }
 0x8bc   :  { %v2556_v4 = vpop.f32.mrb[38].mxu1 }
 0x8bd   :  { %v2717_v5 = vmul.f32 0.25, %v2556_v4  ;;  %v6583_v6 = vpop.f32.mrb[39].mxu1 }
 0x8bf   :  { %v2721_v10 = vadd.f32 %v2717_v5, %v7243_v0 }
 0x8c0   :  { %v2712_v12 = vpop.f32.mrb[40].mxu1  ;;  %v2726_v20 = vpop.xlane.xlu0 %2725 }
 0x8c1   :  { %v2719_v14 = vmul.f32 0.25, %v2712_v12  ;;  %v6593_v16 = vpop.f32.mrb[41].mxu1  ;;  %v2727_v17 = vsel %vm643_vm4, %v2721_v10, -inf  ;;  %v2736_v21 = vsub.f32 %v2720_v25, %v2726_v20 }
 0x8c2   :  { %2728 = vmax.xlane.f32.xlu1 %v2727_v17 }
 0x8c3   :  { %v2723_v18 = vadd.f32 %v2719_v14, %v7256_v13  ;;  %v2740_v26 = vmul.f32 1.442695, %v2736_v21 }
 0x8c4   :  { %v2732_v24 = vpop.xlane.xlu0 %2731 }
 0x8c5   :  { %v2733_v19 = vsel %vm643_vm4, %v2723_v18, -inf  ;;  %v2738_v29 = vsub.f32 %v2722_v61, %v2732_v24  ;;  %6898 = vpow2.f32 %v2740_v26 }
 0x8c6   :  { %2734 = vmax.xlane.f32.xlu0 %v2733_v19 }
 0x8c7   :  { %v2744_v31 = vmul.f32 1.442695, %v2738_v29 }
 0x8c9   :  { %6900 = vpow2.f32 %v2744_v31 }
 0x8cf   :  { %v6899_v34 = vpop.eup %6898 }
 0x8d0   :  { %v2748_v38 = vsel %vm643_vm4, %v6899_v34, 0.0 }
 0x8d3   :  { %2864 = vrot.lane.b32.xlu1 %v7278_v53, %s7019_s18  ;;  %v6901_v42 = vpop.eup %6900 }
 0x8d4   :  { %v2754_v44 = vsel %vm643_vm4, %v6901_v42, 0.0 }
 0x8d7   :  { %2939 = vrot.lane.b32.xlu1 %v7268_v49, %s7019_s18 }
 0x8db   :  { %3014 = vrot.lane.b32.xlu1 %v7274_v52, %s7019_s18 }
 0x8dc   :  { %2789 = vrot.lane.b32.xlu0 %v7270_v50, %s7019_s18 }
 0x8df   :  { %3190 = vrot.lane.b32.xlu1 %v7164_v37, %s7020_s19 }
 0x8e0   :  { %3112 = vrot.lane.b32.xlu0 %v7157_v33, %s7020_s19 }
 0x8ff   :  { %2749 = vadd.xlane.f32.xlu0 %v2748_v38 }
 0x903   :  { %2755 = vadd.xlane.f32.xlu0 %v2754_v44 }
 0x919   :  { %3110 = vrot.lane.b32.xlu0 %v7161_v36, %s7020_s19 }
 0x91d   :  { %3268 = vrot.lane.b32.xlu0 %v7175_v41, %s7020_s19 }
 0x921   :  { %3266 = vrot.lane.b32.xlu0 %v7177_v43, %s7020_s19 }
 0x94f   :  { %v2729_v48 = vpop.xlane.xlu1 %2728 }
 0x950   :  { %v2737_v51 = vsub.f32 %v2721_v10, %v2729_v48 }
 0x952   :  { %v2742_v25 = vmul.f32 1.442695, %v2737_v51 }
 0x953   :  { %v2865_v54 = vpop.permute.xlu1 %2864  ;;  %v2735_v55 = vpop.xlane.xlu0 %2734 }
 0x954   :  { %6902 = vpow2.f32 %v2742_v25  ;;  %6600 = vmatpush3.msra.mxu1 %v2865_v54  ;;  %v2739_v62 = vsub.f32 %v2723_v18, %v2735_v55 }
 0x955   :  { %6609 = vmatprep.subr.mxu1 %v8283_v23 }
 0x956   :  { %v2746_v1 = vmul.f32 1.442695, %v2739_v62 }
 0x957   :  { %v2790_v57 = vpop.permute.xlu0 %2789  ;;  %v2940_v16 = vpop.permute.xlu1 %2939 }
 0x958   :  { %6595 = vmatpush3.msra.mxu0 %v2790_v57  ;;  %6904 = vpow2.f32 %v2746_v1 }
 0x959   :  { %6604 = vmatprep.subr.mxu0 %v8283_v23 }
 0x95b   :  { %v3113_v3 = vpop.permute.xlu0 %3112  ;;  %v3015_v24 = vpop.permute.xlu1 %3014 }
 0x95e   :  { %v6903_v60 = vpop.eup %6902 }
 0x95f   :  { %v2751_v61 = vsel %vm643_vm4, %v6903_v60, 0.0  ;;  %v3191_v26 = vpop.permute.xlu1 %3190 }
 0x960   :  { %2752 = vadd.xlane.f32.xlu1 %v2751_v61 }
 0x962   :  { %v6905_v6 = vpop.eup %6904 }
 0x963   :  { %v2757_v10 = vsel %vm643_vm4, %v6905_v6, 0.0 }
 0x971   :  { %3188 = vrot.lane.b32.xlu1 %v7172_v39, %s7020_s19 }
 0x98c   :  { %v2750_v4 = vpop.xlane.xlu0 %2749 }
 0x98d   :  { %6906 = vrcp.f32 %v2750_v4 }
 0x990   :  { %v2756_v5 = vpop.xlane.xlu0 %2755 }
 0x991   :  { %6908 = vrcp.f32 %v2756_v5 }
 0x994   :  { %v3111_v18 = vpop.permute.xlu0 %3110 }
 0x995   :  { %2758 = vadd.xlane.f32.xlu1 %v2757_v10 }
 0x997   :  { %v6907_v12 = vpop.eup %6906 }
 0x998   :  { %v7569_v14 = vmul.f32 %v6907_v12, %v6899_v34  ;;  %v3269_v20 = vpop.permute.xlu0 %3268 }
 0x99a   :  { %6597 = vmatmul.mubr.msk.f32.vlgmr.msra.gmra.mrb[26].mxu0 %vm643_vm4, %v7569_v14 }
 0x99b   :  { %v6909_v17 = vpop.eup %6908  ;;  %6605 = vmatpush3.msra.mxu0 %v2940_v16  ;;  %6606 = vmatprep.mubr.msk.f32.mxu0 %vm7016_vm0, %v8283_v23 }
 0x99c   :  { %v7575_v19 = vmul.f32 %v6909_v17, %v6901_v42  ;;  %6614 = vmatprep.subr.mxu0 %v8283_v23  ;;  %v3267_v21 = vpop.permute.xlu0 %3266 }
 0x99e   :  { %8292 = vst [vmem:[#allocation6_spill] sm:$0xff] %v7575_v19  ;;  %6607 = vmatmul.mubr.msk.f32.vlgmr.msra.gmra.mrb[28].mxu0 %vm643_vm4, %v7575_v19 }
 0x99f   :  { %6616 = vmatprep.mubr.msk.f32.mxu0 %vm7016_vm0, %v8283_v23 }
 0x9a2   :  { %6615 = vmatpush3.xpose.msk.msra.mxu0 %vm330_vm1, %v3113_v3 }
 0x9a3   :  { %6624 = vmatprep.subr.mxu0 %v8283_v23 }
 0x9a5   :  { %6617 = vmatmul.mubr.msk.f32.vlgmr.msra.gmra.mrb[30].mxu0 %vm330_vm1, %v3111_v18 }
 0x9a6   :  { %6625 = vmatpush3.xpose.msk.msra.mxu0 %vm330_vm1, %v3269_v20  ;;  %3346 = vrot.lane.b32.xlu1 %v7183_v45, %s7020_s19 }
 0x9a7   :  { %6626 = vmatprep.mubr.msk.f32.mxu0 %vm7016_vm0, %v8283_v23  ;;  %6634 = vmatprep.subr.mxu0 %v8283_v23 }
 0x9a9   :  { %6627 = vmatmul.mubr.msk.f32.vlgmr.msra.gmra.mrb[32].mxu0 %vm330_vm1, %v3267_v21 }
 0x9aa   :  { %3344 = vrot.lane.b32.xlu1 %v7188_v46, %s7020_s19  ;;  %6636 = vmatprep.mubr.msk.f32.mxu0 %vm7016_vm0, %v8283_v23 }
 0x9ed   :  { %v2753_v29 = vpop.xlane.xlu1 %2752 }
 0x9ee   :  { %6910 = vrcp.f32 %v2753_v29 }
 0x9f1   :  { %v3189_v38 = vpop.permute.xlu1 %3188 }
 0x9f8   :  { %v6911_v31 = vpop.eup %6910 }
 0x9f9   :  { %v7596_v34 = vmul.f32 %v6911_v31, %v6903_v60 }
 0x9fb   :  { %6602 = vmatmul.mubr.msk.f32.vlgmr.msra.gmra.mrb[42].mxu1 %vm643_vm4, %v7596_v34 }
 0x9fc   :  { %6610 = vmatpush3.msra.mxu1 %v3015_v24  ;;  %6611 = vmatprep.mubr.msk.f32.mxu1 %vm7016_vm0, %v8283_v23 }
 0x9fd   :  { %6619 = vmatprep.subr.mxu1 %v8283_v23 }
 0xa22   :  { %v2759_v42 = vpop.xlane.xlu1 %2758 }
 0xa23   :  { %6912 = vrcp.f32 %v2759_v42 }
 0xa26   :  { %v3347_v51 = vpop.permute.xlu1 %3346 }
 0xa2a   :  { %v3345_v25 = vpop.permute.xlu1 %3344 }
 0xa2d   :  { %v6913_v44 = vpop.eup %6912 }
 0xa2e   :  { %v7603_v48 = vmul.f32 %v6913_v44, %v6905_v6 }
 0xa30   :  { %6612 = vmatmul.mubr.msk.f32.vlgmr.msra.gmra.mrb[44].mxu1 %vm643_vm4, %v7603_v48 }
 0xa31   :  { %6620 = vmatpush3.xpose.msk.msra.mxu1 %vm330_vm1, %v3191_v26  ;;  %6621 = vmatprep.mubr.msk.f32.mxu1 %vm7016_vm0, %v8283_v23 }
 0xa32   :  { %6629 = vmatprep.subr.mxu1 %v8283_v23 }
 0xa34   :  { %6622 = vmatmul.mubr.msk.f32.vlgmr.msra.gmra.mrb[46].mxu1 %vm330_vm1, %v3189_v38 }
 0xa35   :  { %6630 = vmatpush3.xpose.msk.msra.mxu1 %vm330_vm1, %v3347_v51  ;;  %6631 = vmatprep.mubr.msk.f32.mxu1 %vm7016_vm0, %v8283_v23 }
 0xa36   :  { %6639 = vmatprep.subr.mxu1 %v8283_v23 }
 0xa38   :  { %6632 = vmatmul.mubr.msk.f32.vlgmr.msra.gmra.mrb[48].mxu1 %vm330_vm1, %v3345_v25 }
 0xa39   :  { %6641 = vmatprep.mubr.msk.f32.mxu1 %vm7016_vm0, %v8283_v23 }
 0xa6d   :  { %v7619_v54 = vpop.f32.mrb[26].mxu0 }
 0xa6e   :  { %v6598_v55 = vpop.f32.mrb[27].mxu0 }
 0xa71   :  { %v7621_v57 = vpop.f32.mrb[28].mxu0 }
 0xa72   :  { %v6608_v60 = vpop.f32.mrb[29].mxu0 }
 0xa78   :  { %v3184_v61 = vpop.f32.mrb[30].mxu0 }
 0xa79   :  { %v3422_v62 = vmul.f32 0.25, %v3184_v61  ;;  %v6618_v1 = vpop.f32.mrb[31].mxu0 }
 0xa7b   :  { %v3426_v3 = vadd.f32 %v3422_v62, %v7236_v58 }
 0xa7c   :  { %v3340_v4 = vpop.f32.mrb[32].mxu0 }
 0xa7d   :  { %v3424_v5 = vmul.f32 0.25, %v3340_v4  ;;  %v6628_v6 = vpop.f32.mrb[33].mxu0  ;;  %v3430_v10 = vsel %vm643_vm4, %v3426_v3, -inf }
 0xa7e   :  { %3431 = vmax.xlane.f32.xlu0 %v3430_v10 }
 0xa7f   :  { %v3428_v12 = vadd.f32 %v3424_v5, %v7251_v7 }
 0xa81   :  { %v3436_v16 = vsel %vm643_vm4, %v3428_v12, -inf }
 0xa82   :  { %3437 = vmax.xlane.f32.xlu0 %v3436_v16 }
 0xace   :  { %v7627_v17 = vpop.f32.mrb[42].mxu1 }
 0xacf   :  { %v6603_v18 = vpop.f32.mrb[43].mxu1 }
 0xb03   :  { %v7629_v20 = vpop.f32.mrb[44].mxu1 }
 0xb04   :  { %v6613_v21 = vpop.f32.mrb[45].mxu1 }
 0xb07   :  { %v3262_v24 = vpop.f32.mrb[46].mxu1 }
 0xb08   :  { %v3423_v26 = vmul.f32 0.25, %v3262_v24  ;;  %v6623_v29 = vpop.f32.mrb[47].mxu1 }
 0xb0a   :  { %v3427_v31 = vadd.f32 %v3423_v26, %v7243_v0 }
 0xb0b   :  { %v3418_v38 = vpop.f32.mrb[48].mxu1  ;;  %v3432_v60 = vpop.xlane.xlu0 %3431 }
 0xb0c   :  { %v3425_v42 = vmul.f32 0.25, %v3418_v38  ;;  %v6633_v44 = vpop.f32.mrb[49].mxu1  ;;  %v3433_v51 = vsel %vm643_vm4, %v3427_v31, -inf  ;;  %v3442_v61 = vsub.f32 %v3426_v3, %v3432_v60 }
 0xb0d   :  { %3434 = vmax.xlane.f32.xlu1 %v3433_v51 }
 0xb0e   :  { %v3429_v25 = vadd.f32 %v3425_v42, %v7256_v13  ;;  %v3446_v1 = vmul.f32 1.442695, %v3442_v61 }
 0xb0f   :  { %v3438_v62 = vpop.xlane.xlu0 %3437 }
 0xb10   :  { %v3439_v55 = vsel %vm643_vm4, %v3429_v25, -inf  ;;  %v3444_v4 = vsub.f32 %v3428_v12, %v3438_v62  ;;  %6914 = vpow2.f32 %v3446_v1 }
 0xb11   :  { %3440 = vmax.xlane.f32.xlu0 %v3439_v55 }
 0xb12   :  { %v3450_v5 = vmul.f32 1.442695, %v3444_v4 }
 0xb14   :  { %6916 = vpow2.f32 %v3450_v5 }
 0xb1a   :  { %v6915_v6 = vpop.eup %6914 }
 0xb1b   :  { %v3454_v10 = vsel %vm643_vm4, %v6915_v6, 0.0 }
 0xb1e   :  { %3570 = vrot.lane.b32.xlu1 %v7278_v53, %s7020_s19  ;;  %v6917_v16 = vpop.eup %6916 }
 0xb1f   :  { %v3460_v18 = vsel %vm643_vm4, %v6917_v16, 0.0 }
 0xb22   :  { %3645 = vrot.lane.b32.xlu1 %v7268_v49, %s7020_s19 }
 0xb26   :  { %3720 = vrot.lane.b32.xlu1 %v7274_v52, %s7020_s19 }
 0xb27   :  { %3495 = vrot.lane.b32.xlu0 %v7270_v50, %s7020_s19 }
 0xb2a   :  { %3896 = vrot.lane.b32.xlu1 %v7164_v37, %s7021_s20 }
 0xb2b   :  { %3818 = vrot.lane.b32.xlu0 %v7157_v33, %s7021_s20 }
 0xb4a   :  { %3455 = vadd.xlane.f32.xlu0 %v3454_v10 }
 0xb4e   :  { %3461 = vadd.xlane.f32.xlu0 %v3460_v18 }
 0xb64   :  { %3816 = vrot.lane.b32.xlu0 %v7161_v36, %s7021_s20 }
 0xb68   :  { %3974 = vrot.lane.b32.xlu0 %v7175_v41, %s7021_s20 }
 0xb6c   :  { %3972 = vrot.lane.b32.xlu0 %v7177_v43, %s7021_s20 }
 0xb9a   :  { %v3435_v3 = vpop.xlane.xlu1 %3434 }
 0xb9b   :  { %v3443_v12 = vsub.f32 %v3427_v31, %v3435_v3 }
 0xb9d   :  { %v3448_v21 = vmul.f32 1.442695, %v3443_v12 }
 0xb9e   :  { %v3571_v24 = vpop.permute.xlu1 %3570  ;;  %v3441_v26 = vpop.xlane.xlu0 %3440 }
 0xb9f   :  { %6918 = vpow2.f32 %v3448_v21  ;;  %6640 = vmatpush3.msra.mxu1 %v3571_v24  ;;  %v3445_v44 = vsub.f32 %v3429_v25, %v3441_v26 }
 0xba0   :  { %6649 = vmatprep.subr.mxu1 %v8283_v23 }
 0xba1   :  { %v3452_v31 = vmul.f32 1.442695, %v3445_v44 }
 0xba2   :  { %v3496_v29 = vpop.permute.xlu0 %3495  ;;  %v3646_v5 = vpop.permute.xlu1 %3645 }
 0xba3   :  { %6635 = vmatpush3.msra.mxu0 %v3496_v29  ;;  %6920 = vpow2.f32 %v3452_v31 }
 0xba4   :  { %6644 = vmatprep.subr.mxu0 %v8283_v23 }
 0xba6   :  { %v3819_v51 = vpop.permute.xlu0 %3818  ;;  %v3721_v3 = vpop.permute.xlu1 %3720 }
 0xba9   :  { %v6919_v38 = vpop.eup %6918 }
 0xbaa   :  { %v3457_v42 = vsel %vm643_vm4, %v6919_v38, 0.0  ;;  %v3897_v12 = vpop.permute.xlu1 %3896 }
 0xbab   :  { %3458 = vadd.xlane.f32.xlu1 %v3457_v42 }
 0xbad   :  { %v6921_v61 = vpop.eup %6920 }
 0xbae   :  { %v3463_v62 = vsel %vm643_vm4, %v6921_v61, 0.0 }
 0xbbc   :  { %3894 = vrot.lane.b32.xlu1 %v7172_v39, %s7021_s20 }
 0xbd7   :  { %v3456_v55 = vpop.xlane.xlu0 %3455 }
 0xbd8   :  { %6922 = vrcp.f32 %v3456_v55 }
 0xbdb   :  { %v3462_v60 = vpop.xlane.xlu0 %3461 }
 0xbdc   :  { %6924 = vrcp.f32 %v3462_v60 }
 0xbdf   :  { %v3817_v25 = vpop.permute.xlu0 %3816 }
 0xbe0   :  { %3464 = vadd.xlane.f32.xlu1 %v3463_v62 }
 0xbe2   :  { %v6923_v1 = vpop.eup %6922 }
 0xbe3   :  { %v7661_v4 = vmul.f32 %v6923_v1, %v6915_v6  ;;  %v3975_v6 = vpop.permute.xlu0 %3974 }
 0xbe5   :  { %8293 = vst [vmem:[#allocation7_spill] sm:$0xff] %v7661_v4  ;;  %6637 = vmatmul.mubr.msk.f32.vlgmr.msra.gmra.mrb[34].mxu0 %vm643_vm4, %v7661_v4 }
 0xbe6   :  { %v6925_v10 = vpop.eup %6924  ;;  %6645 = vmatpush3.msra.mxu0 %v3646_v5  ;;  %6646 = vmatprep.mubr.msk.f32.mxu0 %vm7016_vm0, %v8283_v23 }
 0xbe7   :  { %v7667_v18 = vmul.f32 %v6925_v10, %v6917_v16  ;;  %6654 = vmatprep.subr.mxu0 %v8283_v23  ;;  %v3973_v16 = vpop.permute.xlu0 %3972 }
 0xbe9   :  { %8294 = vst [vmem:[#allocation8_spill] sm:$0xff] %v7667_v18  ;;  %6647 = vmatmul.mubr.msk.f32.vlgmr.msra.gmra.mrb[36].mxu0 %vm643_vm4, %v7667_v18 }
 0xbea   :  { %6656 = vmatprep.mubr.msk.f32.mxu0 %vm7016_vm0, %v8283_v23 }
 0xbed   :  { %6655 = vmatpush3.xpose.msk.msra.mxu0 %vm330_vm1, %v3819_v51 }
 0xbee   :  { %6664 = vmatprep.subr.mxu0 %v8283_v23 }
 0xbf0   :  { %6657 = vmatmul.mubr.msk.f32.vlgmr.msra.gmra.mrb[38].mxu0 %vm330_vm1, %v3817_v25 }
 0xbf1   :  { %6665 = vmatpush3.xpose.msk.msra.mxu0 %vm330_vm1, %v3975_v6  ;;  %4052 = vrot.lane.b32.xlu1 %v7183_v45, %s7021_s20 }
 0xbf2   :  { %6666 = vmatprep.mubr.msk.f32.mxu0 %vm7016_vm0, %v8283_v23  ;;  %6674 = vmatprep.subr.mxu0 %v8283_v23 }
 0xbf4   :  { %6667 = vmatmul.mubr.msk.f32.vlgmr.msra.gmra.mrb[40].mxu0 %vm330_vm1, %v3973_v16 }
 0xbf5   :  { %4050 = vrot.lane.b32.xlu1 %v7188_v46, %s7021_s20  ;;  %6676 = vmatprep.mubr.msk.f32.mxu0 %vm7016_vm0, %v8283_v23 }
 0xc38   :  { %v3459_v21 = vpop.xlane.xlu1 %3458 }
 0xc39   :  { %6926 = vrcp.f32 %v3459_v21 }
 0xc3c   :  { %v3895_v29 = vpop.permute.xlu1 %3894 }
 0xc43   :  { %v6927_v24 = vpop.eup %6926 }
 0xc44   :  { %v7688_v26 = vmul.f32 %v6927_v24, %v6919_v38 }
 0xc46   :  { %6642 = vmatmul.mubr.msk.f32.vlgmr.msra.gmra.mrb[50].mxu1 %vm643_vm4, %v7688_v26 }
 0xc47   :  { %6650 = vmatpush3.msra.mxu1 %v3721_v3  ;;  %6651 = vmatprep.mubr.msk.f32.mxu1 %vm7016_vm0, %v8283_v23 }
 0xc48   :  { %6659 = vmatprep.subr.mxu1 %v8283_v23 }
 0xc6d   :  { %v3465_v42 = vpop.xlane.xlu1 %3464 }
 0xc6e   :  { %6928 = vrcp.f32 %v3465_v42 }
 0xc71   :  { %v4053_v38 = vpop.permute.xlu1 %4052 }
 0xc75   :  { %v4051_v51 = vpop.permute.xlu1 %4050 }
 0xc78   :  { %v6929_v44 = vpop.eup %6928 }
 0xc79   :  { %v7695_v31 = vmul.f32 %v6929_v44, %v6921_v61 }
 0xc7b   :  { %6652 = vmatmul.mubr.msk.f32.vlgmr.msra.gmra.mrb[52].mxu1 %vm643_vm4, %v7695_v31 }
 0xc7c   :  { %6660 = vmatpush3.xpose.msk.msra.mxu1 %vm330_vm1, %v3897_v12  ;;  %6661 = vmatprep.mubr.msk.f32.mxu1 %vm7016_vm0, %v8283_v23 }
 0xc7d   :  { %6669 = vmatprep.subr.mxu1 %v8283_v23 }
 0xc7f   :  { %6662 = vmatmul.mubr.msk.f32.vlgmr.msra.gmra.mrb[54].mxu1 %vm330_vm1, %v3895_v29 }
 0xc80   :  { %6670 = vmatpush3.xpose.msk.msra.mxu1 %vm330_vm1, %v4053_v38  ;;  %6671 = vmatprep.mubr.msk.f32.mxu1 %vm7016_vm0, %v8283_v23 }
 0xc81   :  { %6679 = vmatprep.subr.mxu1 %v8283_v23 }
 0xc83   :  { %6672 = vmatmul.mubr.msk.f32.vlgmr.msra.gmra.mrb[56].mxu1 %vm330_vm1, %v4051_v51 }
 0xc84   :  { %6681 = vmatprep.mubr.msk.f32.mxu1 %vm7016_vm0, %v8283_v23 }
 0xcb8   :  { %v7711_v55 = vpop.f32.mrb[34].mxu0 }
 0xcb9   :  { %v6638_v60 = vpop.f32.mrb[35].mxu0 }
 0xcbc   :  { %v7713_v61 = vpop.f32.mrb[36].mxu0 }
 0xcbd   :  { %v6648_v62 = vpop.f32.mrb[37].mxu0 }
 0xcc3   :  { %v3890_v1 = vpop.f32.mrb[38].mxu0 }
 0xcc4   :  { %v4128_v5 = vmul.f32 0.25, %v3890_v1  ;;  %v6658_v10 = vpop.f32.mrb[39].mxu0 }
 0xcc6   :  { %v4132_v25 = vadd.f32 %v4128_v5, %v7236_v58 }
 0xcc7   :  { %v4046_v6 = vpop.f32.mrb[40].mxu0 }
 0xcc8   :  { %v4130_v16 = vmul.f32 0.25, %v4046_v6  ;;  %v6668_v3 = vpop.f32.mrb[41].mxu0  ;;  %v4136_v12 = vsel %vm643_vm4, %v4132_v25, -inf }
 0xcc9   :  { %4137 = vmax.xlane.f32.xlu0 %v4136_v12 }
 0xcca   :  { %v4134_v21 = vadd.f32 %v4130_v16, %v7251_v7 }
 0xccc   :  { %v4142_v24 = vsel %vm643_vm4, %v4134_v21, -inf }
 0xccd   :  { %4143 = vmax.xlane.f32.xlu0 %v4142_v24 }
 0xd19   :  { %v7719_v29 = vpop.f32.mrb[50].mxu1 }
 0xd1a   :  { %v6643_v42 = vpop.f32.mrb[51].mxu1 }
 0xd4e   :  { %v7721_v44 = vpop.f32.mrb[52].mxu1 }
 0xd4f   :  { %v6653_v38 = vpop.f32.mrb[53].mxu1 }
 0xd52   :  { %v3968_v51 = vpop.f32.mrb[54].mxu1 }
 0xd53   :  { %v4129_v60 = vmul.f32 0.25, %v3968_v51  ;;  %v6663_v62 = vpop.f32.mrb[55].mxu1 }
 0xd55   :  { %v4133_v1 = vadd.f32 %v4129_v60, %v7243_v0 }
 0xd56   :  { %v4124_v5 = vpop.f32.mrb[56].mxu1  ;;  %v4138_v24 = vpop.xlane.xlu0 %4137 }
 0xd57   :  { %v4131_v10 = vmul.f32 0.25, %v4124_v5  ;;  %v6673_v6 = vpop.f32.mrb[57].mxu1  ;;  %v4139_v3 = vsel %vm643_vm4, %v4133_v1, -inf  ;;  %v4148_v42 = vsub.f32 %v4132_v25, %v4138_v24 }
 0xd58   :  { %4140 = vmax.xlane.f32.xlu1 %v4139_v3 }
 0xd59   :  { %v4135_v16 = vadd.f32 %v4131_v10, %v7256_v13  ;;  %v4152_v51 = vmul.f32 1.442695, %v4148_v42 }
 0xd5a   :  { %v4144_v38 = vpop.xlane.xlu0 %4143 }
 0xd5b   :  { %v4145_v12 = vsel %vm643_vm4, %v4135_v16, -inf  ;;  %v4150_v60 = vsub.f32 %v4134_v21, %v4144_v38  ;;  %6930 = vpow2.f32 %v4152_v51 }
 0xd5c   :  { %4146 = vmax.xlane.f32.xlu0 %v4145_v12 }
 0xd5d   :  { %v4156_v62 = vmul.f32 1.442695, %v4150_v60 }
 0xd5f   :  { %6932 = vpow2.f32 %v4156_v62 }
 0xd65   :  { %v6931_v5 = vpop.eup %6930 }
 0xd66   :  { %v4160_v10 = vsel %vm643_vm4, %v6931_v5, 0.0 }
 0xd69   :  { %4276 = vrot.lane.b32.xlu1 %v7278_v53, %s7021_s20  ;;  %v6933_v6 = vpop.eup %6932 }
 0xd6a   :  { %v4166_v3 = vsel %vm643_vm4, %v6933_v6, 0.0 }
 0xd6d   :  { %4351 = vrot.lane.b32.xlu1 %v7268_v49, %s7021_s20 }
 0xd71   :  { %4426 = vrot.lane.b32.xlu1 %v7274_v52, %s7021_s20 }
 0xd72   :  { %4201 = vrot.lane.b32.xlu0 %v7270_v50, %s7021_s20 }
 0xd75   :  { %4602 = vrot.lane.b32.xlu1 %v7164_v37, %s7022_s21 }
 0xd76   :  { %4524 = vrot.lane.b32.xlu0 %v7157_v33, %s7022_s21 }
 0xd95   :  { %4161 = vadd.xlane.f32.xlu0 %v4160_v10 }
 0xd99   :  { %4167 = vadd.xlane.f32.xlu0 %v4166_v3 }
 0xdaf   :  { %4522 = vrot.lane.b32.xlu0 %v7161_v36, %s7022_s21 }
 0xdb3   :  { %4680 = vrot.lane.b32.xlu0 %v7175_v41, %s7022_s21 }
 0xdb7   :  { %4678 = vrot.lane.b32.xlu0 %v7177_v43, %s7022_s21 }
 0xdbb   :  { %4907 = vrot.lane.b32.xlu0 %v7270_v50, %s7022_s21 }
 0xde5   :  { %v4141_v25 = vpop.xlane.xlu1 %4140 }
 0xde6   :  { %v4149_v21 = vsub.f32 %v4133_v1, %v4141_v25 }
 0xde8   :  { %v4154_v12 = vmul.f32 1.442695, %v4149_v21 }
 0xde9   :  { %v4277_v24 = vpop.permute.xlu1 %4276  ;;  %v4147_v42 = vpop.xlane.xlu0 %4146 }
 0xdea   :  { %6934 = vpow2.f32 %v4154_v12  ;;  %6680 = vmatpush3.msra.mxu1 %v4277_v24  ;;  %v4151_v62 = vsub.f32 %v4135_v16, %v4147_v42  ;;  %v8296_v42 = vmov 0.0  }
 0xdeb   :  { %6689 = vmatprep.subr.mxu1 %v8283_v23 }
 0xdec   :  { %v4158_v1 = vmul.f32 1.442695, %v4151_v62 }
 0xded   :  { %v4202_v38 = vpop.permute.xlu0 %4201 }
 0xdee   :  { %6675 = vmatpush3.msra.mxu0 %v4202_v38  ;;  %6936 = vpow2.f32 %v4158_v1 }
 0xdef   :  { %6684 = vmatprep.subr.mxu0 %v8283_v23 }
 0xdf1   :  { %v4525_v10 = vpop.permute.xlu0 %4524 }
 0xdf4   :  { %v6935_v51 = vpop.eup %6934 }
 0xdf5   :  { %v4163_v60 = vsel %vm643_vm4, %v6935_v51, 0.0 }
 0xdf6   :  { %4164 = vadd.xlane.f32.xlu1 %v4163_v60  ;;  %v4352_v60 = vpop.permute.xlu1 %4351 }
 0xdf8   :  { %v6937_v21 = vpop.eup %6936 }
 0xdf9   :  { %v4169_v12 = vsel %vm643_vm4, %v6937_v21, 0.0 }
 0xe07   :  { %4600 = vrot.lane.b32.xlu1 %v7172_v39, %s7022_s21 }
 0xe22   :  { %v4162_v3 = vpop.xlane.xlu0 %4161 }
 0xe23   :  { %6938 = vrcp.f32 %v4162_v3 }
 0xe26   :  { %v4168_v25 = vpop.xlane.xlu0 %4167 }
 0xe27   :  { %6940 = vrcp.f32 %v4168_v25 }
 0xe2a   :  { %v4523_v38 = vpop.permute.xlu0 %4522 }
 0xe2b   :  { %4170 = vadd.xlane.f32.xlu1 %v4169_v12 }
 0xe2d   :  { %v6939_v24 = vpop.eup %6938 }
 0xe2e   :  { %v7755_v23 = vmul.f32 %v6939_v24, %v6931_v5  ;;  %v4681_v1 = vpop.permute.xlu0 %4680 }
 0xe30   :  { %8295 = vst [vmem:[#allocation9_spill] sm:$0xff] %v7755_v23  ;;  %6677 = vmatmul.mubr.msk.f32.vlgmr.msra.gmra.mrb[42].mxu0 %vm643_vm4, %v7755_v23 }
 0xe31   :  { %v6941_v16 = vpop.eup %6940  ;;  %6685 = vmatpush3.msra.mxu0 %v4352_v60  ;;  %6686 = vmatprep.mubr.msk.f32.mxu0 %vm7016_vm0, %v8296_v42 }
 0xe32   :  { %v7761_v62 = vmul.f32 %v6941_v16, %v6933_v6  ;;  %6694 = vmatprep.subr.mxu0 %v8296_v42  ;;  %v4679_v5 = vpop.permute.xlu0 %4678 }
 0xe34   :  { %8297 = vst [vmem:[#allocation10_spill] sm:$0xff] %v7761_v62  ;;  %6687 = vmatmul.mubr.msk.f32.vlgmr.msra.gmra.mrb[44].mxu0 %vm643_vm4, %v7761_v62 }
 0xe35   :  { %6696 = vmatprep.mubr.msk.f32.mxu0 %vm7016_vm0, %v8296_v42 }
 0xe36   :  { %v4908_v6 = vpop.permute.xlu0 %4907 }
 0xe38   :  { %6695 = vmatpush3.xpose.msk.msra.mxu0 %vm330_vm1, %v4525_v10  ;;  %v4427_v10 = vpop.permute.xlu1 %4426 }
 0xe39   :  { %6704 = vmatprep.subr.mxu0 %v8296_v42 }
 0xe3b   :  { %6697 = vmatmul.mubr.msk.f32.vlgmr.msra.gmra.mrb[46].mxu0 %vm330_vm1, %v4523_v38 }
 0xe3c   :  { %6705 = vmatpush3.xpose.msk.msra.mxu0 %vm330_vm1, %v4681_v1  ;;  %4758 = vrot.lane.b32.xlu1 %v7183_v45, %s7022_s21  ;;  %v4603_v3 = vpop.permute.xlu1 %4602 }
 0xe3d   :  { %6706 = vmatprep.mubr.msk.f32.mxu0 %vm7016_vm0, %v8296_v42  ;;  %6714 = vmatprep.subr.mxu0 %v8296_v42 }
 0xe3f   :  { %6707 = vmatmul.mubr.msk.f32.vlgmr.msra.gmra.mrb[48].mxu0 %vm330_vm1, %v4679_v5 }
 0xe40   :  { %6715 = vmatpush3.msra.mxu0 %v4908_v6  ;;  %4756 = vrot.lane.b32.xlu1 %v7188_v46, %s7022_s21 }
 0xe41   :  { %6716 = vmatprep.mubr.msk.f32.mxu0 %vm7016_vm0, %v8296_v42  ;;  %6724 = vmatprep.subr.mxu0 %v8296_v42 }
 0xe44   :  { %4982 = vrot.lane.b32.xlu1 %v7278_v53, %s7022_s21 }
 0xe48   :  { %5057 = vrot.lane.b32.xlu1 %v7268_v49, %s7022_s21 }
 0xe4c   :  { %5132 = vrot.lane.b32.xlu1 %v7274_v52, %s7022_s21 }
 0xe83   :  { %v4165_v25 = vpop.xlane.xlu1 %4164 }
 0xe84   :  { %6942 = vrcp.f32 %v4165_v25 }
 0xe87   :  { %v4601_v38 = vpop.permute.xlu1 %4600 }
 0xe8e   :  { %v6943_v12 = vpop.eup %6942 }
 0xe8f   :  { %v7789_v24 = vmul.f32 %v6943_v12, %v6935_v51 }
 0xe91   :  { %8298 = vst [vmem:[#allocation11_spill] sm:$0xff] %v7789_v24  ;;  %6682 = vmatmul.mubr.msk.f32.vlgmr.msra.gmra.mrb[58].mxu1 %vm643_vm4, %v7789_v24 }
 0xe92   :  { %6690 = vmatpush3.msra.mxu1 %v4427_v10  ;;  %6691 = vmatprep.mubr.msk.f32.mxu1 %vm7016_vm0, %v8296_v42 }
 0xe93   :  { %6699 = vmatprep.subr.mxu1 %v8296_v42 }
 0xeb8   :  { %v4171_v60 = vpop.xlane.xlu1 %4170 }
 0xeb9   :  { %6944 = vrcp.f32 %v4171_v60 }
 0xebc   :  { %v4759_v16 = vpop.permute.xlu1 %4758 }
 0xec0   :  { %v4757_v51 = vpop.permute.xlu1 %4756 }
 0xec3   :  { %v6945_v1 = vpop.eup %6944 }
 0xec4   :  { %v7796_v5 = vmul.f32 %v6945_v1, %v6937_v21  ;;  %v4983_v21 = vpop.permute.xlu1 %4982 }
 0xec6   :  { %8299 = vst [vmem:[#allocation12_spill] sm:$0xff] %v7796_v5  ;;  %6692 = vmatmul.mubr.msk.f32.vlgmr.msra.gmra.mrb[60].mxu1 %vm643_vm4, %v7796_v5 }
 0xec7   :  { %6700 = vmatpush3.xpose.msk.msra.mxu1 %vm330_vm1, %v4603_v3  ;;  %6701 = vmatprep.mubr.msk.f32.mxu1 %vm7016_vm0, %v8296_v42 }
 0xec8   :  { %6709 = vmatprep.subr.mxu1 %v8296_v42 }
 0xeca   :  { %6702 = vmatmul.mubr.msk.f32.vlgmr.msra.gmra.mrb[62].mxu1 %vm330_vm1, %v4601_v38 }
 0xecb   :  { %6710 = vmatpush3.xpose.msk.msra.mxu1 %vm330_vm1, %v4759_v16  ;;  %6711 = vmatprep.mubr.msk.f32.mxu1 %vm7016_vm0, %v8296_v42 }
 0xecc   :  { %6719 = vmatprep.subr.mxu1 %v8296_v42 }
 0xece   :  { %6712 = vmatmul.mubr.msk.f32.vlgmr.msra.gmra.mrb[64].mxu1 %vm330_vm1, %v4757_v51 }
 0xecf   :  { %6720 = vmatpush3.msra.mxu1 %v4983_v21  ;;  %6721 = vmatprep.mubr.msk.f32.mxu1 %vm7016_vm0, %v8296_v42 }
 0xed0   :  { %6729 = vmatprep.subr.mxu1 %v8296_v42 }
 0xf03   :  { %v7813_v6 = vpop.f32.mrb[42].mxu0 }
 0xf04   :  { %v6678_v10 = vpop.f32.mrb[43].mxu0 }
 0xf07   :  { %v7815_v3 = vpop.f32.mrb[44].mxu0 }
 0xf08   :  { %v6688_v25 = vpop.f32.mrb[45].mxu0 }
 0xf0e   :  { %v4596_v12 = vpop.f32.mrb[46].mxu0 }
 0xf0f   :  { %v4834_v38 = vmul.f32 0.25, %v4596_v12  ;;  %v6698_v60 = vpop.f32.mrb[47].mxu0 }
 0xf11   :  { %v4838_v16 = vadd.f32 %v4834_v38, %v7236_v58 }
 0xf12   :  { %v4752_v1 = vpop.f32.mrb[48].mxu0 }
 0xf13   :  { %v4836_v62 = vmul.f32 0.25, %v4752_v1  ;;  %v6708_v51 = vpop.f32.mrb[49].mxu0  ;;  %v4842_v21 = vsel %vm643_vm4, %v4838_v16, -inf }
 0xf14   :  { %4843 = vmax.xlane.f32.xlu0 %v4842_v21 }
 0xf15   :  { %v4840_v23 = vadd.f32 %v4836_v62, %v7251_v7 }
 0xf17   :  { %v4848_v18 = vsel %vm643_vm4, %v4840_v23, -inf }
 0xf18   :  { %4849 = vmax.xlane.f32.xlu0 %v4848_v18 }
 0xf64   :  { %v7821_v10 = vpop.f32.mrb[58].mxu1 }
 0xf65   :  { %v6683_v4 = vpop.f32.mrb[59].mxu1 }
 0xf99   :  { %v7823_v25 = vpop.f32.mrb[60].mxu1 }
 0xf9a   :  { %v6693_v12 = vpop.f32.mrb[61].mxu1 }
 0xf9d   :  { %v4674_v60 = vpop.f32.mrb[62].mxu1 }
 0xf9e   :  { %v4835_v5 = vmul.f32 0.25, %v4674_v60  ;;  %v6703_v38 = vpop.f32.mrb[63].mxu1 }
 0xfa0   :  { %v4839_v1 = vadd.f32 %v4835_v5, %v7243_v0 }
 0xfa1   :  { %v4830_v51 = vpop.f32.mrb[64].mxu1  ;;  %v4844_v4 = vpop.xlane.xlu0 %4843 }
 0xfa2   :  { %v4837_v19 = vmul.f32 0.25, %v4830_v51  ;;  %v6713_v24 = vpop.f32.mrb[65].mxu1  ;;  %v4845_v21 = vsel %vm643_vm4, %v4839_v1, -inf }
 0xfa3   :  { %4846 = vmax.xlane.f32.xlu1 %v4845_v21  ;;  %v4854_v24 = vsub.f32 %v4838_v16, %v4844_v4 }
 0xfa4   :  { %v4841_v62 = vadd.f32 %v4837_v19, %v7256_v13 }
 0xfa5   :  { %v4858_v5 = vmul.f32 1.442695, %v4854_v24  ;;  %v4850_v60 = vpop.xlane.xlu0 %4849 }
 0xfa6   :  { %v4851_v18 = vsel %vm643_vm4, %v4841_v62, -inf  ;;  %v4856_v38 = vsub.f32 %v4840_v23, %v4850_v60 }
 0xfa7   :  { %4852 = vmax.xlane.f32.xlu0 %v4851_v18  ;;  %6946 = vpow2.f32 %v4858_v5 }
 0xfb1   :  { %v6947_v12 = vpop.eup %6946 }
 0xfb2   :  { %v4866_v19 = vsel %vm643_vm4, %v6947_v12, 0.0 }
 0xfb4   :  { %5308 = vrot.lane.b32.xlu1 %v7164_v37, %s7023_s22  ;;  %v4862_v37 = vmul.f32 1.442695, %v4856_v38 }
 0xfb6   :  { %6948 = vpow2.f32 %v4862_v37 }
 0xfb8   :  { %5306 = vrot.lane.b32.xlu1 %v7172_v39, %s7023_s22 }
 0xfbd   :  { %5230 = vrot.lane.b32.xlu0 %v7157_v33, %s7023_s22  ;;  %v5058_v33 = vpop.permute.xlu1 %5057 }
 0xfc0   :  { %v6949_v51 = vpop.eup %6948 }
 0xfc1   :  { %v4872_v39 = vsel %vm643_vm4, %v6949_v51, 0.0  ;;  %v5133_v16 = vpop.permute.xlu1 %5132 }
 0xfdc   :  { %4867 = vadd.xlane.f32.xlu0 %v4866_v19 }
 0xff2   :  { %5228 = vrot.lane.b32.xlu0 %v7161_v36, %s7023_s22 }
0x1011   :  { %4873 = vadd.xlane.f32.xlu0 %v4872_v39 }
0x1027   :  { %5386 = vrot.lane.b32.xlu0 %v7175_v41, %s7023_s22 }
0x102b   :  { %5384 = vrot.lane.b32.xlu0 %v7177_v43, %s7023_s22 }
0x1030   :  { %v4847_v21 = vpop.xlane.xlu1 %4846 }
0x1031   :  { %v4855_v18 = vsub.f32 %v4839_v1, %v4847_v21 }
0x1033   :  { %v4860_v4 = vmul.f32 1.442695, %v4855_v18 }
0x1034   :  { %v4853_v24 = vpop.xlane.xlu0 %4852 }
0x1035   :  { %6950 = vpow2.f32 %v4860_v4  ;;  %v4857_v5 = vsub.f32 %v4841_v62, %v4853_v24 }
0x1037   :  { %v4864_v19 = vmul.f32 1.442695, %v4857_v5 }
0x1038   :  { %v5231_v60 = vpop.permute.xlu0 %5230 }
0x1039   :  { %6952 = vpow2.f32 %v4864_v19 }
0x103f   :  { %v6951_v36 = vpop.eup %6950 }
0x1040   :  { %v4869_v23 = vsel %vm643_vm4, %v6951_v36, 0.0 }
0x1041   :  { %4870 = vadd.xlane.f32.xlu1 %v4869_v23 }
0x1043   :  { %v6953_v43 = vpop.eup %6952 }
0x1044   :  { %v4875_v1 = vsel %vm643_vm4, %v6953_v43, 0.0 }
0x1052   :  { %5464 = vrot.lane.b32.xlu1 %v7183_v45, %s7023_s22 }
0x1069   :  { %v4868_v41 = vpop.xlane.xlu0 %4867 }
0x106a   :  { %6954 = vrcp.f32 %v4868_v41 }
0x106d   :  { %v5229_v45 = vpop.permute.xlu0 %5228 }
0x1074   :  { %v6955_v38 = vpop.eup %6954 }
0x1075   :  { %v7846_v37 = vmul.f32 %v6955_v38, %v6947_v12 }
0x1076   :  { %4876 = vadd.xlane.f32.xlu1 %v4875_v1 }
0x1077   :  { %6717 = vmatmul.mubr.msk.f32.vlgmr.msra.gmra.mrb[50].mxu0 %vm643_vm4, %v7846_v37 }
0x1078   :  { %6725 = vmatpush3.msra.mxu0 %v5058_v33  ;;  %6726 = vmatprep.mubr.msk.f32.mxu0 %vm7016_vm0, %v8296_v42 }
0x1079   :  { %6734 = vmatprep.subr.mxu0 %v8296_v42 }
0x1087   :  { %5462 = vrot.lane.b32.xlu1 %v7188_v46, %s7023_s22 }
0x109e   :  { %v4874_v62 = vpop.xlane.xlu0 %4873 }
0x109f   :  { %6956 = vrcp.f32 %v4874_v62 }
0x10a2   :  { %v5387_v21 = vpop.permute.xlu0 %5386 }
0x10a6   :  { %v5385_v46 = vpop.permute.xlu0 %5384 }
0x10a9   :  { %v6957_v12 = vpop.eup %6956 }
0x10aa   :  { %v7856_v39 = vmul.f32 %v6957_v12, %v6949_v51  ;;  %v5309_v51 = vpop.permute.xlu1 %5308 }
0x10ac   :  { %6727 = vmatmul.mubr.msk.f32.vlgmr.msra.gmra.mrb[52].mxu0 %vm643_vm4, %v7856_v39 }
0x10ad   :  { %6735 = vmatpush3.xpose.msk.msra.mxu0 %vm330_vm1, %v5231_v60  ;;  %6736 = vmatprep.mubr.msk.f32.mxu0 %vm7016_vm0, %v8296_v42 }
0x10ae   :  { %6744 = vmatprep.subr.mxu0 %v8296_v42  ;;  %v5307_v33 = vpop.permute.xlu1 %5306 }
0x10b0   :  { %6737 = vmatmul.mubr.msk.f32.vlgmr.msra.gmra.mrb[54].mxu0 %vm330_vm1, %v5229_v45 }
0x10b1   :  { %6745 = vmatpush3.xpose.msk.msra.mxu0 %vm330_vm1, %v5387_v21  ;;  %6746 = vmatprep.mubr.msk.f32.mxu0 %vm7016_vm0, %v8296_v42 }
0x10b2   :  { %6754 = vmatprep.subr.mxu0 %v8296_v42 }
0x10b4   :  { %6747 = vmatmul.mubr.msk.f32.vlgmr.msra.gmra.mrb[56].mxu0 %vm330_vm1, %v5385_v46 }
0x10b5   :  { %6756 = vmatprep.mubr.msk.f32.mxu0 %vm7016_vm0, %v8296_v42 }
0x10ce   :  { %v4871_v18 = vpop.xlane.xlu1 %4870 }
0x10cf   :  { %6958 = vrcp.f32 %v4871_v18 }
0x10d2   :  { %v5465_v24 = vpop.permute.xlu1 %5464 }
0x10d9   :  { %v6959_v4 = vpop.eup %6958 }
0x10da   :  { %v7872_v23 = vmul.f32 %v6959_v4, %v6951_v36 }
0x10dc   :  { %6722 = vmatmul.mubr.msk.f32.vlgmr.msra.gmra.mrb[66].mxu1 %vm643_vm4, %v7872_v23 }
0x10dd   :  { %6730 = vmatpush3.msra.mxu1 %v5133_v16  ;;  %6731 = vmatprep.mubr.msk.f32.mxu1 %vm7016_vm0, %v8296_v42 }
0x10de   :  { %6739 = vmatprep.subr.mxu1 %v8296_v42 }
0x1103   :  { %v4877_v5 = vpop.xlane.xlu1 %4876 }
0x1104   :  { %6960 = vrcp.f32 %v4877_v5 }
0x1107   :  { %v5463_v16 = vpop.permute.xlu1 %5462 }
0x110e   :  { %v6961_v19 = vpop.eup %6960 }
0x110f   :  { %v7879_v60 = vmul.f32 %v6961_v19, %v6953_v43 }
0x1111   :  { %6732 = vmatmul.mubr.msk.f32.vlgmr.msra.gmra.mrb[68].mxu1 %vm643_vm4, %v7879_v60 }
0x1112   :  { %6740 = vmatpush3.xpose.msk.msra.mxu1 %vm330_vm1, %v5309_v51  ;;  %6741 = vmatprep.mubr.msk.f32.mxu1 %vm7016_vm0, %v8296_v42 }
0x1113   :  { %6749 = vmatprep.subr.mxu1 %v8296_v42 }
0x1115   :  { %6742 = vmatmul.mubr.msk.f32.vlgmr.msra.gmra.mrb[70].mxu1 %vm330_vm1, %v5307_v33 }
0x1116   :  { %6750 = vmatpush3.xpose.msk.msra.mxu1 %vm330_vm1, %v5465_v24  ;;  %6751 = vmatprep.mubr.msk.f32.mxu1 %vm7016_vm0, %v8296_v42 }
0x1117   :  { %6759 = vmatprep.subr.mxu1 %v8296_v42 }
0x1119   :  { %6752 = vmatmul.mubr.msk.f32.vlgmr.msra.gmra.mrb[72].mxu1 %vm330_vm1, %v5463_v16  ;;  %vm3490_vm1 = vcmask 326912  }
0x111a   :  { %6761 = vmatprep.mubr.msk.f32.mxu1 %vm7016_vm0, %v8296_v42 }
0x114a   :  { %v4978_v36 = vpop.f32.mrb[50].mxu0 }
0x114b   :  { %v6718_v41 = vpop.f32.mrb[51].mxu0 }
0x117f   :  { %v5128_v43 = vpop.f32.mrb[52].mxu0 }
0x1180   :  { %v6728_v38 = vpop.f32.mrb[53].mxu0 }
0x1183   :  { %v5302_v1 = vpop.f32.mrb[54].mxu0 }
0x1184   :  { %v5540_v45 = vmul.f32 0.25, %v5302_v1  ;;  %v6738_v62 = vpop.f32.mrb[55].mxu0 }
0x1186   :  { %v5544_v12 = vadd.f32 %v5540_v45, %v7236_v58 }
0x1187   :  { %v5458_v21 = vpop.f32.mrb[56].mxu0 }
0x1188   :  { %v5542_v46 = vmul.f32 0.25, %v5458_v21  ;;  %v6748_v51 = vpop.f32.mrb[57].mxu0  ;;  %v5548_v33 = vsel %vm643_vm4, %v5544_v12, -inf }
0x1189   :  { %5549 = vmax.xlane.f32.xlu0 %v5548_v33 }
0x118a   :  { %v5546_v18 = vadd.f32 %v5542_v46, %v7251_v7 }
0x118c   :  { %v5554_v4 = vsel %vm643_vm4, %v5546_v18, -inf }
0x118d   :  { %5555 = vmax.xlane.f32.xlu0 %v5554_v4 }
0x11af   :  { %v7899_v24 = vpop.f32.mrb[66].mxu1 }
0x11b0   :  { %v6723_v5 = vpop.f32.mrb[67].mxu1 }
0x11e4   :  { %v7901_v19 = vpop.f32.mrb[68].mxu1 }
0x11e5   :  { %v6733_v16 = vpop.f32.mrb[69].mxu1 }
0x11e8   :  { %v5380_v41 = vpop.f32.mrb[70].mxu1 }
0x11e9   :  { %v5541_v38 = vmul.f32 0.25, %v5380_v41  ;;  %v6743_v58 = vpop.f32.mrb[71].mxu1 }
0x11eb   :  { %v5545_v1 = vadd.f32 %v5541_v38, %v7243_v0 }
0x11ec   :  { %v5536_v45 = vpop.f32.mrb[72].mxu1 }
0x11ed   :  { %v5543_v62 = vmul.f32 0.25, %v5536_v45  ;;  %v6753_v21 = vpop.f32.mrb[73].mxu1  ;;  %v5551_v51 = vsel %vm643_vm4, %v5545_v1, -inf }
0x11ee   :  { %5552 = vmax.xlane.f32.xlu1 %v5551_v51 }
0x11ef   :  { %v5547_v7 = vadd.f32 %v5543_v62, %v7256_v13 }
0x11f1   :  { %v5557_v46 = vsel %vm643_vm4, %v5547_v7, -inf }
0x11f2   :  { %5558 = vmax.xlane.f32.xlu0 %v5557_v46 }
0x1216   :  { %v5550_v33 = vpop.xlane.xlu0 %5549 }
0x1217   :  { %v5560_v4 = vsub.f32 %v5544_v12, %v5550_v33 }
0x1219   :  { %v5564_v5 = vmul.f32 1.442695, %v5560_v4 }
0x121a   :  { %v5556_v16 = vpop.xlane.xlu0 %5555 }
0x121b   :  { %6962 = vpow2.f32 %v5564_v5  ;;  %v5562_v41 = vsub.f32 %v5546_v18, %v5556_v16 }
0x121d   :  { %v5568_v58 = vmul.f32 1.442695, %v5562_v41 }
0x121f   :  { %6964 = vpow2.f32 %v5568_v58 }
0x1225   :  { %v6963_v0 = vpop.eup %6962 }
0x1226   :  { %v5572_v38 = vsel %vm643_vm4, %v6963_v0, 0.0 }
0x1227   :  { %5573 = vadd.xlane.f32.xlu0 %v5572_v38 }
0x1229   :  { %v7908_v45 = vpop.eup %6964 }
0x122a   :  { %v5578_v13 = vsel %vm643_vm4, %v7908_v45, 0.0 }
0x122b   :  { %5579 = vadd.xlane.f32.xlu0 %v5578_v13 }
0x1241   :  { %5613 = vrot.lane.b32.xlu0 %v7270_v50, %s7023_s22 }
0x1245   :  { %1681 = vrot.lane.b32.xlu0 %v7435_v56, %s7023_s22 }
0x1249   :  { %1685 = vrot.lane.b32.xlu0 %v7437_v59, %s7023_s22 }
0x124d   :  { %2387 = vrot.lane.b32.xlu0 %v7527_v35, %s7022_s21 }
0x1251   :  { %2391 = vrot.lane.b32.xlu0 %v7529_v40, %s7022_s21 }
0x1255   :  { %3093 = vrot.lane.b32.xlu0 %v7619_v54, %s7021_s20 }
0x1259   :  { %3097 = vrot.lane.b32.xlu0 %v7621_v57, %s7021_s20 }
0x125d   :  { %3799 = vrot.lane.b32.xlu0 %v7711_v55, %s7020_s19 }
0x1261   :  { %3803 = vrot.lane.b32.xlu0 %v7713_v61, %s7020_s19 }
0x1265   :  { %4505 = vrot.lane.b32.xlu0 %v7813_v6, %s7019_s18 }
0x1269   :  { %4509 = vrot.lane.b32.xlu0 %v7815_v3, %s7019_s18 }
0x126d   :  { %5211 = vrot.lane.b32.xlu0 %v4978_v36, %s7018_s17 }
0x1271   :  { %5215 = vrot.lane.b32.xlu0 %v5128_v43, %s7018_s17 }
0x127b   :  { %v5553_v50 = vpop.xlane.xlu1 %5552 }
0x127c   :  { %v5561_v56 = vsub.f32 %v5545_v1, %v5553_v50 }
0x127e   :  { %v5566_v59 = vmul.f32 1.442695, %v5561_v56 }
0x127f   :  { %v5559_v54 = vpop.xlane.xlu0 %5558 }
0x1280   :  { %6966 = vpow2.f32 %v5566_v59  ;;  %v5563_v57 = vsub.f32 %v5547_v7, %v5559_v54 }
0x1282   :  { %v5570_v55 = vmul.f32 1.442695, %v5563_v57 }
0x128a   :  { %v7936_v35 = vpop.eup %6966 }
0x128b   :  { %v5575_v40 = vsel %vm643_vm4, %v7936_v35, 0.0 }
0x128c   :  { %5576 = vadd.xlane.f32.xlu1 %v5575_v40 }
0x129d   :  { %5688 = vrot.lane.b32.xlu1 %v7278_v53, %s7023_s22 }
0x12a1   :  { %5763 = vrot.lane.b32.xlu1 %v7268_v49, %s7023_s22 }
0x12b4   :  { %v5574_v61 = vpop.xlane.xlu0 %5573 }
0x12b5   :  { %6968 = vrcp.f32 %v5574_v61  ;;  %v6842_v61 = vld [vmem:[%s8277_s4] sm:$0xff]  }
0x12b6   :  { %6970 = vpow2.f32 %v5570_v55 }
0x12b8   :  { %v5580_v6 = vpop.xlane.xlu0 %5579 }
0x12b9   :  { %6972 = vrcp.f32 %v5580_v6  ;;  %v6843_v6 = vld [vmem:[%s8277_s4 + $0x8] sm:$0xff]  }
0x12bc   :  { %v5614_v3 = vpop.permute.xlu0 %5613 }
0x12bd   :  { %6755 = vmatpush3.msra.mxu0 %v5614_v3 }
0x12be   :  { %6764 = vmatprep.subr.mxu0 %v8296_v42 }
0x12bf   :  { %v6969_v36 = vpop.eup %6968 }
0x12c0   :  { %v7945_v43 = vmul.f32 %v6969_v36, %v6963_v0  ;;  %v1682_v12 = vpop.permute.xlu0 %1681  ;;  %v7947_v53 = vpop.eup %6970  ;;  %v6844_v36 = vld [vmem:[%s8277_s4 + $0x10] sm:$0xff]  }
0x12c1   :  { %1694 = vst.msk [vmem:[#allocation2] sm:$0xff] %vm1693_vm7, %v1682_v12  ;;  %v5581_v18 = vsel %vm643_vm4, %v7947_v53, 0.0  ;;  %v6845_v12 = vld [vmem:[%s8277_s4 + $0x18] sm:$0xff]  }
0x12c2   :  { %6757 = vmatmul.mubr.msk.f32.vlgmr.msra.gmra.mrb[58].mxu0 %vm643_vm4, %v7945_v43 }
0x12c3   :  { %6766 = vmatprep.mubr.msk.f32.mxu0 %vm7016_vm0, %v8296_v42 }
0x12c4   :  { %v1686_v49 = vpop.permute.xlu0 %1685 }
0x12c5   :  { %1696 = vst.msk [vmem:[#allocation2 + $0x10] sm:$0xff] %vm1693_vm7, %v1686_v49  ;;  %5582 = vadd.xlane.f32.xlu1 %v5581_v18 }
0x12c8   :  { %v2388_v1 = vpop.permute.xlu0 %2387 }
0x12c9   :  { %2400 = vst.msk [vmem:[#allocation2] sm:$0xff] %vm2399_vm8, %v2388_v1 }
0x12cc   :  { %v2392_v62 = vpop.permute.xlu0 %2391 }
0x12cd   :  { %2402 = vst.msk [vmem:[#allocation2 + $0x10] sm:$0xff] %vm2399_vm8, %v2392_v62 }
0x12d0   :  { %v3094_v21 = vpop.permute.xlu0 %3093 }
0x12d1   :  { %3106 = vst.msk [vmem:[#allocation2] sm:$0xff] %vm3105_vm9, %v3094_v21 }
0x12d4   :  { %v3098_v51 = vpop.permute.xlu0 %3097 }
0x12d5   :  { %3108 = vst.msk [vmem:[#allocation2 + $0x10] sm:$0xff] %vm3105_vm9, %v3098_v51 }
0x12d6   :  { %5838 = vrot.lane.b32.xlu1 %v7274_v52, %s7023_s22 }
0x12d8   :  { %v3800_v7 = vpop.permute.xlu0 %3799 }
0x12d9   :  { %3812 = vst.msk [vmem:[#allocation2] sm:$0xff] %vm3811_vm10, %v3800_v7 }
0x12da   :  { %1683 = vrot.lane.b32.xlu1 %v7443_v9, %s7023_s22 }
0x12dc   :  { %v3804_v46 = vpop.permute.xlu0 %3803 }
0x12dd   :  { %3814 = vst.msk [vmem:[#allocation2 + $0x10] sm:$0xff] %vm3811_vm10, %v3804_v46 }
0x12de   :  { %1687 = vrot.lane.b32.xlu1 %v7445_v11, %s7023_s22 }
0x12e0   :  { %v4506_v33 = vpop.permute.xlu0 %4505 }
0x12e1   :  { %4518 = vst.msk [vmem:[#allocation2] sm:$0xff] %vm4517_vm11, %v4506_v33 }
0x12e2   :  { %2389 = vrot.lane.b32.xlu1 %v7535_v63, %s7022_s21 }
0x12e4   :  { %v4510_v52 = vpop.permute.xlu0 %4509 }
0x12e5   :  { %4520 = vst.msk [vmem:[#allocation2 + $0x10] sm:$0xff] %vm4517_vm11, %v4510_v52 }
0x12e6   :  { %2393 = vrot.lane.b32.xlu1 %v7537_v2, %s7022_s21 }
0x12e8   :  { %v5212_v9 = vpop.permute.xlu0 %5211 }
0x12e9   :  { %5224 = vst.msk [vmem:[#allocation2] sm:$0xff] %vm5223_vm12, %v5212_v9 }
0x12ea   :  { %3095 = vrot.lane.b32.xlu1 %v7627_v17, %s7021_s20  ;;  %v6973_v17 = vpop.eup %6972 }
0x12ec   :  { %v5216_v11 = vpop.permute.xlu0 %5215 }
0x12ed   :  { %5226 = vst.msk [vmem:[#allocation2 + $0x10] sm:$0xff] %vm5223_vm12, %v5216_v11 }
0x12ee   :  { %3099 = vrot.lane.b32.xlu1 %v7629_v20, %s7021_s20  ;;  %v7995_v20 = vmul.f32 %v6973_v17, %v7908_v45 }
0x12f2   :  { %3801 = vrot.lane.b32.xlu1 %v7719_v29, %s7020_s19 }
0x12f6   :  { %3805 = vrot.lane.b32.xlu1 %v7721_v44, %s7020_s19 }
0x12fa   :  { %4507 = vrot.lane.b32.xlu1 %v7821_v10, %s7019_s18 }
0x12fe   :  { %4511 = vrot.lane.b32.xlu1 %v7823_v25, %s7019_s18 }
0x1302   :  { %5213 = vrot.lane.b32.xlu1 %v7899_v24, %s7018_s17 }
0x1306   :  { %5217 = vrot.lane.b32.xlu1 %v7901_v19, %s7018_s17 }
0x1319   :  { %v5577_v63 = vpop.xlane.xlu1 %5576 }
0x131a   :  { %6974 = vrcp.f32 %v5577_v63 }
0x131d   :  { %v5689_v2 = vpop.permute.xlu1 %5688 }
0x131e   :  { %6760 = vmatpush3.msra.mxu1 %v5689_v2 }
0x131f   :  { %6769 = vmatprep.subr.mxu1 %v8296_v42 }
0x1321   :  { %v5764_v29 = vpop.permute.xlu1 %5763 }
0x1322   :  { %6765 = vmatpush3.msra.mxu0 %v5764_v29  ;;  %v6275_v29 = vld [vmem:[%s8278_s5] ss:$0 sm:$0xff] }
0x1323   :  { %6767 = vmatmul.mubr.msk.f32.vlgmr.msra.gmra.mrb[60].mxu0 %vm643_vm4, %v7995_v20  ;;  %6774 = vmatprep.subr.bf16.mxu0 %v6842_v61 }
0x1324   :  { %v6975_v44 = vpop.eup %6974  ;;  %6775 = vmatpush3.bf16.msra.mxu0 %v6842_v61 }
0x1325   :  { %v8000_v10 = vmul.f32 %v6975_v44, %v7936_v35  ;;  %6776 = vmatprep.subr.bf16.mxu0 %v6843_v6 }
0x1327   :  { %6762 = vmatmul.mubr.msk.f32.vlgmr.msra.gmra.mrb[74].mxu1 %vm643_vm4, %v8000_v10 }
0x1328   :  { %6771 = vmatprep.mubr.msk.f32.mxu1 %vm7016_vm0, %v8296_v42  ;;  %6777 = vmatpush3.bf16.msra.mxu0 %v6843_v6  ;;  %vm2784_vm0 = vcmask 261312  }
0x1329   :  { %6778 = vmatprep.subr.bf16.mxu0 %v6844_v36 }
0x132c   :  { %6779 = vmatpush3.bf16.msra.mxu0 %v6844_v36 }
0x132d   :  { %6780 = vmatprep.subr.bf16.mxu0 %v6845_v12 }
0x1330   :  { %6781 = vmatpush3.bf16.msra.mxu0 %v6845_v12 }
0x1352   :  { %v5583_v25 = vpop.xlane.xlu1 %5582 }
0x1353   :  { %6976 = vrcp.f32 %v5583_v25 }
0x1356   :  { %v5839_v24 = vpop.permute.xlu1 %5838 }
0x1357   :  { %6770 = vmatpush3.msra.mxu1 %v5839_v24 }
0x135a   :  { %v1684_v19 = vpop.permute.xlu1 %1683 }
0x135b   :  { %1695 = vst.msk [vmem:[#allocation2 + $0x8] sm:$0xff] %vm1693_vm7, %v1684_v19 }
0x135d   :  { %v6977_v4 = vpop.eup %6976 }
0x135e   :  { %v8008_v5 = vmul.f32 %v6977_v4, %v7947_v53  ;;  %v1688_v16 = vpop.permute.xlu1 %1687  ;;  %v6848_v53 = vld [vmem:[%s8277_s4 + $0x30] sm:$0xff]  }
0x135f   :  { %1697 = vst.msk [vmem:[#allocation2 + $0x18] sm:$0xff] %vm1693_vm7, %v1688_v16  ;;  %v6986_v4 = vld [vmem:[%s8273_s0 + $0x10] sm:$0xff] }
0x1360   :  { %6772 = vmatmul.mubr.msk.f32.vlgmr.msra.gmra.mrb[76].mxu1 %vm643_vm4, %v8008_v5  ;;  %vm5608_vm4 = vcmask 523712  }
0x1362   :  { %v2390_v41 = vpop.permute.xlu1 %2389 }
0x1363   :  { %2401 = vst.msk [vmem:[#allocation2 + $0x8] sm:$0xff] %vm2399_vm8, %v2390_v41 }
0x1366   :  { %v2394_v42 = vpop.permute.xlu1 %2393 }
0x1367   :  { %2403 = vst.msk [vmem:[#allocation2 + $0x18] sm:$0xff] %vm2399_vm8, %v2394_v42 }
0x136a   :  { %v3096_v58 = vpop.permute.xlu1 %3095 }
0x136b   :  { %3107 = vst.msk [vmem:[#allocation2 + $0x8] sm:$0xff] %vm3105_vm9, %v3096_v58 }
0x136e   :  { %v3100_v0 = vpop.permute.xlu1 %3099 }
0x136f   :  { %3109 = vst.msk [vmem:[#allocation2 + $0x18] sm:$0xff] %vm3105_vm9, %v3100_v0  ;;  %v6987_v0 = vld [vmem:[%s8273_s0 + $0x8] sm:$0xff] }
0x1372   :  { %v3802_v38 = vpop.permute.xlu1 %3801 }
0x1373   :  { %3813 = vst.msk [vmem:[#allocation2 + $0x8] sm:$0xff] %vm3811_vm10, %v3802_v38 }
0x1376   :  { %v3806_v45 = vpop.permute.xlu1 %3805 }
0x1377   :  { %3815 = vst.msk [vmem:[#allocation2 + $0x18] sm:$0xff] %vm3811_vm10, %v3806_v45  ;;  %v6988_v45 = vld [vmem:[%s8273_s0] sm:$0xff] }
0x137a   :  { %v4508_v13 = vpop.permute.xlu1 %4507 }
0x137b   :  { %4519 = vst.msk [vmem:[#allocation2 + $0x8] sm:$0xff] %vm4517_vm11, %v4508_v13 }
0x137e   :  { %v4512_v50 = vpop.permute.xlu1 %4511 }
0x137f   :  { %4521 = vst.msk [vmem:[#allocation2 + $0x18] sm:$0xff] %vm4517_vm11, %v4512_v50 }
0x1382   :  { %v5214_v56 = vpop.permute.xlu1 %5213 }
0x1383   :  { %5225 = vst.msk [vmem:[#allocation2 + $0x8] sm:$0xff] %vm5223_vm12, %v5214_v56  ;;  %v6989_v56 = vld [vmem:[%s8273_s0 + $0x18] sm:$0xff]  ;;  %s7027_s0 = smov 56  }
0x1386   :  { %v5218_v59 = vpop.permute.xlu1 %5217 }
0x1387   :  { %5227 = vst.msk [vmem:[#allocation2 + $0x18] sm:$0xff] %vm5223_vm12, %v5218_v59 }
0x1395   :  { %v5684_v35 = vpop.f32.mrb[58].mxu0 }
0x1396   :  { %5917 = vrot.lane.b32.xlu0 %v5684_v35, %s7017_s1  ;;  %v6758_v40 = vpop.f32.mrb[59].mxu0  ;;  %v8300_v35 = vld [vmem:[#allocation11_spill] sm:$0xff] }
0x1397   :  { %v8301_v40 = vld [vmem:[#allocation6_spill] sm:$0xff] }
0x13f6   :  { %v5834_v54 = vpop.f32.mrb[60].mxu0 }
0x13f7   :  { %5921 = vrot.lane.b32.xlu0 %v5834_v54, %s7017_s1  ;;  %v6768_v57 = vpop.f32.mrb[61].mxu0  ;;  %v8302_v54 = vld [vmem:[#allocation12_spill] sm:$0xff] }
0x13f8   :  { %v8303_v57 = vld [vmem:[#allocation7_spill] sm:$0xff] }
0x13fa   :  { %v5759_v55 = vpop.f32.mrb[74].mxu1 }
0x13fb   :  { %1356 = vrot.lane.b32.xlu0 %v7389_v28, %s7024_s27  ;;  %5919 = vrot.lane.b32.xlu1 %v5759_v55, %s7017_s1  ;;  %v6763_v3 = vpop.f32.mrb[75].mxu1  ;;  %v6846_v28 = vld [vmem:[%s8277_s4 + $0x20] sm:$0xff]   ;;  %v8304_v55 = vld [vmem:[#allocation8_spill] sm:$0xff] }
0x13fc   :  { %6782 = vmatprep.subr.bf16.mxu0 %v6846_v28 }
0x13fd   :  { %6783 = vmatpush3.bf16.msra.mxu0 %v6846_v28 }
0x13ff   :  { %2066 = vrot.lane.b32.xlu0 %v7477_v8, %s7023_s22 }
0x1403   :  { %2070 = vrot.lane.b32.xlu0 %v7483_v15, %s7023_s22  ;;  %v6847_v15 = vld [vmem:[%s8277_s4 + $0x28] sm:$0xff]  }
0x1404   :  { %6784 = vmatprep.subr.bf16.mxu0 %v6847_v15 }
0x1405   :  { %6785 = vmatpush3.bf16.msra.mxu0 %v6847_v15 }
0x1406   :  { %6786 = vmatprep.subr.bf16.mxu0 %v6848_v53 }
0x1407   :  { %2772 = vrot.lane.b32.xlu0 %v7569_v14, %s7025_s11  ;;  %v6849_v14 = vld [vmem:[%s8277_s4 + $0x38] sm:$0xff]  }
0x1408   :  { %v5918_v8 = vpop.permute.xlu0 %5917 }
0x1409   :  { %5930 = vst.msk [vmem:[#allocation2] sm:$0xff] %vm5929_vm13, %v5918_v8  ;;  %6787 = vmatpush3.bf16.msra.mxu0 %v6848_v53 }
0x140a   :  { %6788 = vmatprep.subr.bf16.mxu0 %v6849_v14 }
0x140d   :  { %6789 = vmatpush3.bf16.msra.mxu0 %v6849_v14 }
0x1433   :  { %v5909_v49 = vpop.f32.mrb[76].mxu1 }
0x1434   :  { %5923 = vrot.lane.b32.xlu1 %v5909_v49, %s7017_s1  ;;  %v6773_v18 = vpop.f32.mrb[77].mxu1 }
0x1438   :  { %1358 = vrot.lane.b32.xlu1 %v7412_v47, %s7024_s27 }
0x143c   :  { %1360 = vrot.lane.b32.xlu1 %v7395_v32, %s7024_s27 }
0x1440   :  { %1362 = vrot.lane.b32.xlu1 %v7419_v27, %s7024_s27 }
0x1444   :  { %2068 = vrot.lane.b32.xlu1 %v7504_v22, %s7023_s22 }
0x1448   :  { %2072 = vrot.lane.b32.xlu1 %v7511_v30, %s7023_s22  ;;  %v5934_v30 = vld [vmem:[#allocation2] sm:$0xff] }
0x144c   :  { %2774 = vrot.lane.b32.xlu1 %v7596_v34, %s7025_s11 }
0x1450   :  { %2778 = vrot.lane.b32.xlu1 %v7603_v48, %s7025_s11 }
0x1469   :  { %v5922_v1 = vpop.permute.xlu0 %5921 }
0x146a   :  { %5932 = vst.msk [vmem:[#allocation2 + $0x10] sm:$0xff] %vm5929_vm13, %v5922_v1 }
0x146d   :  { %v1357_v32 = vpop.permute.xlu0 %1356  ;;  %v5920_v47 = vpop.permute.xlu1 %5919 }
0x146e   :  { %1369 = vst.msk [vmem:[%s8282_s9] sm:$0xff] %vm1368_vm14, %v1357_v32 }
0x146f   :  { %5931 = vst.msk [vmem:[#allocation2 + $0x8] sm:$0xff] %vm5929_vm13, %v5920_v47 }
0x1471   :  { %v2067_v27 = vpop.permute.xlu0 %2066  ;;  %v5936_v46 = vld [vmem:[#allocation2 + $0x10] sm:$0xff] }
0x1472   :  { %2079 = vst.msk [vmem:[%s8282_s9] sm:$0xff] %vm2078_vm15, %v2067_v27 }
0x1475   :  { %v2071_v22 = vpop.permute.xlu0 %2070 }
0x1476   :  { %v5935_v34 = vld [vmem:[#allocation2 + $0x8] sm:$0xff] }
0x1477   :  { %v5938_v48 = vpack.c.bf16 %v5935_v34, %v5934_v30 }
0x1479   :  { %6790 = vmatprep.mubr.bf16.mxu0 %v5938_v48  ;;  %v2773_v62 = vpop.permute.xlu0 %2772 }
0x147a   :  { %2785 = vst.msk [vmem:[%s8282_s9] sm:$0xff] %vm2784_vm0, %v2773_v62 }
0x14a6   :  { %v5924_v21 = vpop.permute.xlu1 %5923 }
0x14a7   :  { %5933 = vst.msk [vmem:[#allocation2 + $0x18] sm:$0xff] %vm5929_vm13, %v5924_v21 }
0x14aa   :  { %v1359_v51 = vpop.permute.xlu1 %1358 }
0x14ab   :  { %1370 = vst.msk [vmem:[%s8282_s9 + $0x8] sm:$0xff] %vm1368_vm14, %v1359_v51 }
0x14ae   :  { %v1361_v7 = vpop.permute.xlu1 %1360  ;;  %v5937_v33 = vld [vmem:[#allocation2 + $0x18] sm:$0xff] }
0x14af   :  { %1371 = vst.msk [vmem:[%s8282_s9 + $0x10] sm:$0xff] %vm1368_vm14, %v1361_v7  ;;  %v5939_v52 = vpack.c.bf16 %v5937_v33, %v5936_v46 }
0x14b0   :  { %2081 = vst.msk [vmem:[%s8282_s9 + $0x10] sm:$0xff] %vm2078_vm15, %v2071_v22 }
0x14b1   :  { %6791 = vmatmul.mubr.bf16.vlgmr.msra.gmra.mrb[64].mxu0 %v5939_v52 }
0x14b2   :  { %v1363_v9 = vpop.permute.xlu1 %1362 }
0x14b3   :  { %1372 = vst.msk [vmem:[%s8282_s9 + $0x18] sm:$0xff] %vm1368_vm14, %v1363_v9 }
0x14b6   :  { %v2069_v11 = vpop.permute.xlu1 %2068 }
0x14b7   :  { %2080 = vst.msk [vmem:[%s8282_s9 + $0x8] sm:$0xff] %vm2078_vm15, %v2069_v11 }
0x14ba   :  { %v2073_v63 = vpop.permute.xlu1 %2072 }
0x14bb   :  { %2082 = vst.msk [vmem:[%s8282_s9 + $0x18] sm:$0xff] %vm2078_vm15, %v2073_v63 }
0x14be   :  { %v2775_v2 = vpop.permute.xlu1 %2774 }
0x14bf   :  { %2786 = vst.msk [vmem:[%s8282_s9 + $0x8] sm:$0xff] %vm2784_vm0, %v2775_v2 }
0x14c2   :  { %v2779_v17 = vpop.permute.xlu1 %2778 }
0x14c3   :  { %2788 = vst.msk [vmem:[%s8282_s9 + $0x18] sm:$0xff] %vm2784_vm0, %v2779_v17 }
0x1584   :  { %v6792_v44 = vpop.f32.mrb[64].mxu0 }
0x1585   :  { %v6054_v25 = vadd.f32 %v6792_v44, %v6275_v29  ;;  %v6045_v24 = vpop.f32.mrb[65].mxu0 }
0x1586   :  { %v6793_v19 = vpop.f32.mrb[66].mxu0  ;;  %v6046_v41 = vadd.f32 %v6275_v29, %v6045_v24  ;;  %v6284_v24 = vld [vmem:[%s8279_s6] ss:$0 sm:$0xff]  ;;  %s7028_s6 = smov [#allocation3]  }
0x1587   :  { %v6062_v16 = vadd.f32 %v6986_v4, %v6054_v25  ;;  %v6048_v42 = vpop.f32.mrb[67].mxu0  ;;  %v6057_v50 = vadd.f32 %v6793_v19, %v6275_v29 }
0x1588   :  { %v6049_v58 = vadd.f32 %v6275_v29, %v6048_v42  ;;  %v6060_v13 = vadd.f32 %v6988_v45, %v6046_v41  ;;  %v6285_v42 = vld [vmem:[%s8280_s7] ss:$0 sm:$0xff] }
0x1589   :  { %6068 = vadd.xlane.f32.xlu0 %v6062_v16  ;;  %v6063_v59 = vadd.f32 %v6989_v56, %v6057_v50 }
0x158a   :  { %v6061_v38 = vadd.f32 %v6987_v0, %v6049_v58 }
0x158c   :  { %6066 = vadd.xlane.f32.xlu1 %v6061_v38 }
0x158d   :  { %6064 = vadd.xlane.f32.xlu0 %v6060_v13 }
0x1591   :  { %6070 = vadd.xlane.f32.xlu0 %v6063_v59 }
0x159d   :  { %3480 = vrot.lane.b32.xlu1 %v7688_v26, %s7022_s21  ;;  %v8305_v26 = vld [vmem:[#allocation9_spill] sm:$0xff] }
0x15a1   :  { %3484 = vrot.lane.b32.xlu1 %v7695_v31, %s7022_s21  ;;  %v8306_v31 = vld [vmem:[#allocation10_spill] sm:$0xff] }
0x15a5   :  { %4186 = vrot.lane.b32.xlu1 %v8300_v35, %s7026_s28 }
0x15a7   :  { %2776 = vrot.lane.b32.xlu0 %v8301_v40, %s7025_s11 }
0x15a9   :  { %4190 = vrot.lane.b32.xlu1 %v8302_v54, %s7026_s28 }
0x15ab   :  { %3478 = vrot.lane.b32.xlu0 %v8303_v57, %s7022_s21 }
0x15ad   :  { %4892 = vrot.lane.b32.xlu1 %v7872_v23, %s7021_s20 }
0x15af   :  { %3482 = vrot.lane.b32.xlu0 %v8304_v55, %s7022_s21 }
0x15b1   :  { %4896 = vrot.lane.b32.xlu1 %v7879_v60, %s7021_s20 }
0x15b3   :  { %4184 = vrot.lane.b32.xlu0 %v8305_v26, %s7026_s28 }
0x15b5   :  { %5598 = vrot.lane.b32.xlu1 %v8000_v10, %s7027_s0 }
0x15b7   :  { %4188 = vrot.lane.b32.xlu0 %v8306_v31, %s7026_s28 }
0x15bb   :  { %4890 = vrot.lane.b32.xlu0 %v7846_v37, %s7021_s20 }
0x1616   :  { %v6069_v61 = vpop.xlane.xlu0 %6068 }
0x1617   :  { %v6075_v6 = vmul.f32 0.0078125, %v6069_v61 }
0x1619   :  { %v8158_v23 = vsub.f32 %v6062_v16, %v6075_v6  ;;  %v6067_v3 = vpop.xlane.xlu1 %6066 }
0x161a   :  { %v6065_v36 = vpop.xlane.xlu0 %6064  ;;  %v6074_v8 = vmul.f32 0.0078125, %v6067_v3 }
0x161b   :  { %v6073_v12 = vmul.f32 0.0078125, %v6065_v36  ;;  %v6083_v60 = vmul.f32 %v8158_v23, %v8158_v23 }
0x161c   :  { %v8176_v1 = vsub.f32 %v6061_v38, %v6074_v8 }
0x161d   :  { %v8162_v28 = vsub.f32 %v6060_v13, %v6073_v12  ;;  %6089 = vadd.xlane.f32.xlu0 %v6083_v60  ;;  %v3481_v10 = vpop.permute.xlu1 %3480 }
0x161e   :  { %3492 = vst.msk [vmem:[%s8282_s9 + $0x8] sm:$0xff] %vm3490_vm1, %v3481_v10  ;;  %v6071_v37 = vpop.xlane.xlu0 %6070  ;;  %v6082_v22 = vmul.f32 %v8176_v1, %v8176_v1 }
0x161f   :  { %v6076_v15 = vmul.f32 0.0078125, %v6071_v37  ;;  %v6081_v53 = vmul.f32 %v8162_v28, %v8162_v28 }
0x1621   :  { %v8170_v14 = vsub.f32 %v6063_v59, %v6076_v15  ;;  %6085 = vadd.xlane.f32.xlu0 %v6081_v53  ;;  %v3485_v49 = vpop.permute.xlu1 %3484 }
0x1622   :  { %3494 = vst.msk [vmem:[%s8282_s9 + $0x18] sm:$0xff] %vm3490_vm1, %v3485_v49  ;;  %v2777_v18 = vpop.permute.xlu0 %2776 }
0x1623   :  { %2787 = vst.msk [vmem:[%s8282_s9 + $0x10] sm:$0xff] %vm2784_vm0, %v2777_v18  ;;  %v6084_v32 = vmul.f32 %v8170_v14, %v8170_v14 }
0x1625   :  { %6091 = vadd.xlane.f32.xlu1 %v6084_v32  ;;  %v4187_v47 = vpop.permute.xlu1 %4186 }
0x1626   :  { %4198 = vst.msk [vmem:[%s8282_s9 + $0x8] sm:$0xff] %vm4196_vm2, %v4187_v47  ;;  %v3479_v27 = vpop.permute.xlu0 %3478 }
0x1627   :  { %3491 = vst.msk [vmem:[%s8282_s9] sm:$0xff] %vm3490_vm1, %v3479_v27 }
0x1629   :  { %6087 = vadd.xlane.f32.xlu1 %v6082_v22  ;;  %v4191_v30 = vpop.permute.xlu1 %4190 }
0x162a   :  { %4200 = vst.msk [vmem:[%s8282_s9 + $0x18] sm:$0xff] %vm4196_vm2, %v4191_v30  ;;  %v3483_v34 = vpop.permute.xlu0 %3482 }
0x162b   :  { %3493 = vst.msk [vmem:[%s8282_s9 + $0x10] sm:$0xff] %vm3490_vm1, %v3483_v34 }
0x162d   :  { %v4893_v48 = vpop.permute.xlu1 %4892 }
0x162e   :  { %4904 = vst.msk [vmem:[%s8282_s9 + $0x8] sm:$0xff] %vm4902_vm3, %v4893_v48  ;;  %v4185_v62 = vpop.permute.xlu0 %4184 }
0x162f   :  { %4197 = vst.msk [vmem:[%s8282_s9] sm:$0xff] %vm4196_vm2, %v4185_v62 }
0x1631   :  { %v4897_v21 = vpop.permute.xlu1 %4896 }
0x1632   :  { %4906 = vst.msk [vmem:[%s8282_s9 + $0x18] sm:$0xff] %vm4902_vm3, %v4897_v21  ;;  %v4189_v51 = vpop.permute.xlu0 %4188 }
0x1633   :  { %4199 = vst.msk [vmem:[%s8282_s9 + $0x10] sm:$0xff] %vm4196_vm2, %v4189_v51 }
0x1635   :  { %v5599_v7 = vpop.permute.xlu1 %5598 }
0x1636   :  { %5610 = vst.msk [vmem:[%s8282_s9 + $0x8] sm:$0xff] %vm5608_vm4, %v5599_v7  ;;  %v4891_v46 = vpop.permute.xlu0 %4890 }
0x1637   :  { %4903 = vst.msk [vmem:[%s8282_s9] sm:$0xff] %vm4902_vm3, %v4891_v46  ;;  %4894 = vrot.lane.b32.xlu0 %v7856_v39, %s7021_s20 }
0x163a   :  { %5602 = vrot.lane.b32.xlu1 %v8008_v5, %s7027_s0 }
0x163b   :  { %5596 = vrot.lane.b32.xlu0 %v7945_v43, %s7027_s0 }
0x163f   :  { %5600 = vrot.lane.b32.xlu0 %v7995_v20, %s7027_s0 }
0x16aa   :  { %v6090_v33 = vpop.xlane.xlu0 %6089 }
0x16ab   :  { %v6095_v52 = vmul.f32 0.0078125, %v6090_v33 }
0x16ad   :  { %v6099_v9 = vadd.f32 1e-05, %v6095_v52 }
0x16ae   :  { %v6086_v11 = vpop.xlane.xlu0 %6085 }
0x16af   :  { %6978 = vrsqrt.f32 %v6099_v9  ;;  %v6093_v63 = vmul.f32 0.0078125, %v6086_v11 }
0x16b1   :  { %v6097_v2 = vadd.f32 1e-05, %v6093_v63 }
0x16b2   :  { %v4895_v17 = vpop.permute.xlu0 %4894  ;;  %v6092_v29 = vpop.xlane.xlu1 %6091 }
0x16b3   :  { %6980 = vrsqrt.f32 %v6097_v2  ;;  %4905 = vst.msk [vmem:[%s8282_s9 + $0x10] sm:$0xff] %vm4902_vm3, %v4895_v17  ;;  %v6096_v39 = vmul.f32 0.0078125, %v6092_v29 }
0x16b5   :  { %v6100_v43 = vadd.f32 1e-05, %v6096_v39 }
0x16b6   :  { %v5597_v5 = vpop.permute.xlu0 %5596  ;;  %v6088_v44 = vpop.xlane.xlu1 %6087 }
0x16b7   :  { %6982 = vrsqrt.f32 %v6100_v43  ;;  %5609 = vst.msk [vmem:[%s8282_s9] sm:$0xff] %vm5608_vm4, %v5597_v5  ;;  %v6094_v20 = vmul.f32 0.0078125, %v6088_v44 }
0x16b9   :  { %v6979_v25 = vpop.eup %6978  ;;  %v6098_v19 = vadd.f32 1e-05, %v6094_v20 }
0x16ba   :  { %v6107_v4 = vmul.f32 %v6979_v25, %v8158_v23  ;;  %v5601_v16 = vpop.permute.xlu0 %5600  ;;  %v5603_v41 = vpop.permute.xlu1 %5602 }
0x16bb   :  { %6984 = vrsqrt.f32 %v6098_v19  ;;  %5611 = vst.msk [vmem:[%s8282_s9 + $0x10] sm:$0xff] %vm5608_vm4, %v5601_v16  ;;  %5612 = vst.msk [vmem:[%s8282_s9 + $0x18] sm:$0xff] %vm5608_vm4, %v5603_v41  ;;  %s6140_s9 = sshll.u32 %s7028_s6, 4  ;;  %s6141_s9 = int_to_ptr.vmem [resolvable:$true] %s6140_s9 }
0x16bc   :  { %v6118_v58 = vmul.f32 %v6284_v24, %v6107_v4  ;;  %s6990_s7 = scalar_lea.vmem %s6141_s9, 512  ;;  %p6995_p1 = scmp.lt.s32.totalorder %s6141_s9, %s6141_s9 }
0x16bd   :  { %v6981_v0 = vpop.eup %6980  ;;  %p6991_p0 = scmp.ne.s32.totalorder %s6141_s9, %s6990_s7  ;;  %p6996_p2 = scmp.lt.s32.totalorder %s6990_s7, %s6990_s7 }
0x16be   :  { %v6105_v38 = vmul.f32 %v6981_v0, %v8162_v28  ;;  %v6129_v45 = vadd.f32 %v6285_v42, %v6118_v58 }
0x16bf   :  { %p6997_p3 = por %p6996_p2, %p6995_p1 }
0x16c0   :  { %v6116_v13 = vmul.f32 %v6284_v24, %v6105_v38  ;;  %6133 = vst [vmem:[#allocation3 + $0x10] sm:$0xff] %v6129_v45 }
0x16c1   :  { %v6983_v50 = vpop.eup %6982  ;;  %p6998_p4 = pnand %p6997_p3, %p6991_p0 }
0x16c2   :  { %v6108_v56 = vmul.f32 %v6983_v50, %v8170_v14  ;;  %v6127_v59 = vadd.f32 %v6285_v42, %v6116_v13 }
0x16c4   :  { %v6119_v35 = vmul.f32 %v6284_v24, %v6108_v56  ;;  %6131 = vst [vmem:[#allocation3] sm:$0xff] %v6127_v59 }
0x16c5   :  { %v6985_v40 = vpop.eup %6984 }
0x16c6   :  { %v6106_v54 = vmul.f32 %v6985_v40, %v8176_v1  ;;  %v6130_v57 = vadd.f32 %v6285_v42, %v6119_v35 }
0x16c8   :  { %v6117_v55 = vmul.f32 %v6284_v24, %v6106_v54  ;;  %6134 = vst [vmem:[#allocation3 + $0x18] sm:$0xff] %v6130_v57 }
0x16ca   :  { %v6128_v26 = vadd.f32 %v6285_v42, %v6117_v55 }
0x16cc   :  { %6132 = vst [vmem:[#allocation3 + $0x8] sm:$0xff] %v6128_v26 }
0x16cd   :  { %7001 = shalt.err (!%p6998_p4)
}
0x16ce   :  { %s7002_s18 = scalar_lea.hbm %s8281_s8, 512 }
0x16cf   :  { %p7003_p5 = scmp.ne.s32.totalorder %s8281_s8, %s7002_s18  ;;  %p7006_p6 = scmp.lt.u32.totalorder %s7002_s18, %s8281_s8 }
0x16d1   :  { %p7008_p7 = pnand %p7006_p6, %p7003_p5 }
0x16d3   :  { %7011 = shalt.err (!%p7008_p7)
}
0x16d4   :  { %s7029_s25 = smov 128  }
0x16d5   :  { %6146 = dma.vmem_to_hbm [thread:$0]  %s6141_s9, 512, %s8281_s8, [#allocation4], %s7029_s25, %s7029_s25, %s7024_s27  }
0x16d6   :  { %7012 = dma.done.wait [#allocation4], 512  }
0x16d7   :  { %7013 = vsyncadd [#allocation4], 4294966784 }
0x16d8   :  { %6154 = vsyncpa [#allocation4], 1 }

</bundles_post_ra>
